<compile_context>
chip_gen: v5e
topology: v5e:2x2
jax: 0.10.0
libtpu: 0.0.40
codegen_flags: <defaults>
</compile_context>

<pallas_src>
import jax
import jax.numpy as jnp
import numpy as np
from jax.experimental import pallas as pl
from jax.experimental.pallas import tpu as pltpu


# ---------------------------------------------------------------------------
# Kernel
# ---------------------------------------------------------------------------
def posenetfeat_kernel(x_ref, emb_ref, w1x, w1e, b1f, ws2, b2f, ws5, b5,
                       wa1_x5, ba1, wa2, ba2, out_ref):
    f32 = jnp.float32
    cdt = w1x.dtype            # matmul-operand dtype (bf16 fast path, f32 validation path)

    x = x_ref[0].astype(cdt)       # (3, TN)
    emb = emb_ref[0].astype(cdt)   # (32, TN)

    # stage 1: fused conv1 / e_conv1 (block-diagonal over output rows),
    # computed as two K-splits so no (35, TN) concat is ever built.
    pf1 = jnp.dot(w1x[...], x, preferred_element_type=f32)
    pf1 = pf1 + jnp.dot(w1e[...], emb, preferred_element_type=f32)
    pf1 = jnp.maximum(pf1 + b1f[...], 0.0)                                  # (128, TN)
    pf1_c = pf1.astype(cdt)

    # stacked [conv2/e_conv2 ; all_conv1 pf1-columns] against pf1
    y2 = jnp.dot(ws2[...], pf1_c, preferred_element_type=f32)              # (576, TN)
    pf2 = jnp.maximum(y2[:256] + b2f[...], 0.0)                             # (256, TN)
    a1 = y2[256:]                                                           # (320, TN)
    pf2_c = pf2.astype(cdt)

    # stacked [conv5 ; all_conv1 pf2-columns] against pf2
    y5 = jnp.dot(ws5[...], pf2_c, preferred_element_type=f32)              # (576, TN)
    x5 = jnp.maximum(y5[:256] + b5[...], 0.0)                               # (256, TN)
    a1 = a1 + y5[256:]

    # last all_conv1 column-split on x5, then bias + leaky_relu (slope 0.01)
    a1 = a1 + jnp.dot(wa1_x5[...], x5.astype(cdt), preferred_element_type=f32)
    a1 = a1 + ba1[...]
    a1 = jnp.maximum(a1, 0.01 * a1)                                         # leaky_relu

    # all_conv2 (no activation)
    out = jnp.dot(wa2[...], a1.astype(cdt), preferred_element_type=f32) + ba2[...]
    out_ref[0] = out.astype(out_ref.dtype)


# ---------------------------------------------------------------------------
# Wrapper-side weight preparation (done once in practice; cheap XLA ops)
# ---------------------------------------------------------------------------
def _blockdiag(a, b):
    """a: (o1, i1), b: (o2, i2) -> (o1+o2, i1+i2) block-diagonal matrix."""
    o1, i1 = a.shape
    o2, i2 = b.shape
    top = jnp.concatenate([a, jnp.zeros((o1, i2), a.dtype)], axis=1)
    bot = jnp.concatenate([jnp.zeros((o2, i1), b.dtype), b], axis=1)
    return jnp.concatenate([top, bot], axis=0)


def prepare_weights(p, dtype=jnp.bfloat16):
    """PyTorch-convention params (C_out, C_in)/(C_out,) -> fused kernel args."""
    f32 = jnp.float32
    # stage 1: block-diag over output rows, split over the K axis (x | emb)
    w1x = jnp.concatenate([p["w1"], jnp.zeros((64, 3), f32)], axis=0).astype(dtype)    # (128, 3)
    w1e = jnp.concatenate([jnp.zeros((64, 32), f32), p["ew1"]], axis=0).astype(dtype)  # (128, 32)
    b1f = jnp.concatenate([p["b1"], p["eb1"]])[:, None]                                # (128, 1)
    # stage 2 block-diag, stacked with all_conv1's pf1 columns
    w2f = _blockdiag(p["w2"], p["ew2"])                                                # (256, 128)
    wa1 = p["wa1"]                                                                     # (320, 640)
    ws2 = jnp.concatenate([w2f, wa1[:, 0:128]], axis=0).astype(dtype)                  # (576, 128)
    b2f = jnp.concatenate([p["b2"], p["eb2"]])[:, None]                                # (256, 1)
    # conv5 stacked with all_conv1's pf2 columns
    ws5 = jnp.concatenate([p["w5"], wa1[:, 128:384]], axis=0).astype(dtype)            # (576, 256)
    b5 = p["b5"][:, None]                                                              # (256, 1)
    wa1_x5 = wa1[:, 384:640].astype(dtype)                                             # (320, 256)
    ba1 = p["ba1"][:, None]                                                            # (320, 1)
    wa2 = p["wa2"].astype(dtype)                                                       # (160, 320)
    ba2 = p["ba2"][:, None]                                                            # (160, 1)
    return (w1x, w1e, b1f, ws2, b2f, ws5, b5, wa1_x5, ba1, wa2, ba2)


# ---------------------------------------------------------------------------
# Generation-aware tiling
# ---------------------------------------------------------------------------
def _tpu_vmem_bytes():
    try:
        info = pltpu.get_tpu_info()
        return int(getattr(info, "vmem_capacity_bytes", 64 << 20))
    except Exception:
        return 64 << 20            # conservative (v7x-safe) default


def _num_tensorcores():
    """Heuristic: v7x has 2 TensorCores per chip; v5e/v6e have 1."""
    try:
        kind = jax.devices()[0].device_kind.lower().replace(" ", "")
        if "v7" in kind or "tpu7" in kind:
            return 2
    except Exception:
        pass
    return 1


def _plan_points(N, B, num_cores, max_tile):
    """Pick (tile_n, N_pad): tile_n is a multiple of 128, N_pad a multiple of tile_n."""
    n128 = pl.cdiv(N, 128) * 128
    if B == 1 and num_cores > 1:
        # aim for >= ~4 grid steps per core so DMA pipelines, floor 512
        want = max(512, n128 // (4 * num_cores))
        want = max(128, (want // 128) * 128)
        tile = min(max_tile, want, n128)
    else:
        tile = min(max_tile, n128)
    N_pad = pl.cdiv(N, tile) * tile
    # for B==1 on multi-core parts, make sure every core gets at least one tile
    if B == 1 and num_cores > 1 and (N_pad // tile) < num_cores:
        tile = max(128, (n128 // num_cores // 128) * 128)
        N_pad = pl.cdiv(N, tile) * tile
    return tile, N_pad


# ---------------------------------------------------------------------------
# Public forward: x (B, 3, N), emb (B, 32, N)  ->  (B, 160, N)   (NCL, like PyTorch)
# ---------------------------------------------------------------------------
def posenetfeat_forward(x_ncl, emb_ncl, params, *, tile_n=None,
                        weight_dtype=jnp.bfloat16, out_dtype=jnp.float32):
    B, Cx, N = x_ncl.shape
    assert Cx == 3 and emb_ncl.shape == (B, 32, N)

    vmem_cap = _tpu_vmem_bytes()
    num_cores = _num_tensorcores()
    if vmem_cap >= (96 << 20):            # v5e / v6e: 128 MiB VMEM
        max_tile, vmem_limit = 4096, 64 << 20
    else:                                 # v7x (64 MiB) or unknown
        max_tile, vmem_limit = 2048, 48 << 20

    if tile_n is None:
        tile_n, N_pad = _plan_points(N, B, num_cores, max_tile)
    else:
        assert tile_n % 128 == 0 or tile_n == N
        N_pad = pl.cdiv(N, tile_n) * tile_n

    if N_pad != N:  # pad points so every store is lane-dense / unmasked
        pad = N_pad - N
        x_ncl = jnp.pad(x_ncl, ((0, 0), (0, 0), (0, pad)))
        emb_ncl = jnp.pad(emb_ncl, ((0, 0), (0, 0), (0, pad)))

    weights = prepare_weights(params, weight_dtype)
    grid = (B, N_pad // tile_n)

    def full_spec(arr):
        nd = arr.ndim
        return pl.BlockSpec(arr.shape, lambda b, n, _nd=nd: (0,) * _nd)

    out = pl.pallas_call(
        posenetfeat_kernel,
        out_shape=jax.ShapeDtypeStruct((B, 160, N_pad), out_dtype),
        grid_spec=pltpu.PrefetchScalarGridSpec(
            num_scalar_prefetch=0,
            grid=grid,
            in_specs=[pl.BlockSpec((1, 3, tile_n), lambda b, n: (b, 0, n)),
                      pl.BlockSpec((1, 32, tile_n), lambda b, n: (b, 0, n))]
                     + [full_spec(w) for w in weights],
            out_specs=pl.BlockSpec((1, 160, tile_n), lambda b, n: (b, 0, n)),
        ),
        compiler_params=pltpu.CompilerParams(
            dimension_semantics=("parallel", "parallel"),
            vmem_limit_bytes=vmem_limit,
        ),
    )(x_ncl, emb_ncl, *weights)

    if N_pad != N:
        out = out[:, :, :N]
    return out


# ---------------------------------------------------------------------------
# Synthetic params (PyTorch Conv1d convention: weight (C_out, C_in), bias (C_out,))
# ---------------------------------------------------------------------------
def init_params(key):
    defs = {
        "w1": (64, 3), "b1": (64,),
        "ew1": (64, 32), "eb1": (64,),
        "w2": (128, 64), "b2": (128,),
        "ew2": (128, 64), "eb2": (128,),
        "w5": (256, 256), "b5": (256,),
        "wa1": (320, 640), "ba1": (320,),
        "wa2": (160, 320), "ba2": (160,),
    }
    fan_in = {"w1": 3, "b1": 3, "ew1": 32, "eb1": 32,
              "w2": 64, "b2": 64, "ew2": 64, "eb2": 64,
              "w5": 256, "b5": 256, "wa1": 640, "ba1": 640,
              "wa2": 320, "ba2": 320}
    params = {}
    keys = jax.random.split(key, len(defs))
    for k, (name, shape) in zip(keys, defs.items()):
        bound = 1.0 / np.sqrt(fan_in[name])
        params[name] = jax.random.uniform(
            k, shape, minval=-bound, maxval=bound, dtype=jnp.float32)
    return params


# ---------------------------------------------------------------------------
# Pure-JAX f32 reference matching the PyTorch forward
# ---------------------------------------------------------------------------
def posenetfeat_reference(x_ncl, emb_ncl, p):
    def conv(t, w, b):  # t: (B, C_in, N), w: (C_out, C_in), b: (C_out,)
        return jnp.einsum("oc,bcn->bon", w, t) + b[None, :, None]

    x = jax.nn.relu(conv(x_ncl, p["w1"], p["b1"]))
    emb = jax.nn.relu(conv(emb_ncl, p["ew1"], p["eb1"]))
    pf1 = jnp.concatenate([x, emb], axis=1)
    x = jax.nn.relu(conv(x, p["w2"], p["b2"]))
    emb = jax.nn.relu(conv(emb, p["ew2"], p["eb2"]))
    pf2 = jnp.concatenate([x, emb], axis=1)
    x = jax.nn.relu(conv(pf2, p["w5"], p["b5"]))
    x = jnp.concatenate([pf1, pf2, x], axis=1)
    x = jax.nn.leaky_relu(conv(x, p["wa1"], p["ba1"]), negative_slope=0.01)
    x = conv(x, p["wa2"], p["ba2"])
    return x


if __name__ == "__main__":
    key = jax.random.PRNGKey(0)
    k_params, k_x, k_emb = jax.random.split(key, 3)
    params = init_params(k_params)

    # Case 1: B=2, N=64 (tiny, exact lane fit after padding to 128)
    B, N = 2, 64
    x = jax.random.normal(k_x, (B, 3, N), dtype=jnp.float32)
    emb = jax.random.normal(k_emb, (B, 32, N), dtype=jnp.float32)
    ref = jax.block_until_ready(posenetfeat_reference(x, emb, params))

    # f32 path validates the block-diagonal / stacked / column-split fusions exactly.
    out_f32 = jax.block_until_ready(
        posenetfeat_forward(x, emb, params, weight_dtype=jnp.float32))
    assert out_f32.shape == (B, 160, N), out_f32.shape
    np.testing.assert_allclose(np.asarray(out_f32), np.asarray(ref),
                               rtol=1e-4, atol=1e-4)

    # bf16 fast path (default): matmul operands bf16, f32 accumulation.
    out_bf16 = jax.block_until_ready(posenetfeat_forward(x, emb, params))
    assert out_bf16.shape == (B, 160, N), out_bf16.shape
    np.testing.assert_allclose(np.asarray(out_bf16), np.asarray(ref),
                               rtol=3e-2, atol=3e-2)

    # Case 2: B=1 with a non-lane-multiple point count (exercises pad + slice-back
    # and the B==1 point-axis split logic).
    B1, N1 = 1, 100
    x1 = jax.random.normal(jax.random.PRNGKey(1), (B1, 3, N1), dtype=jnp.float32)
    e1 = jax.random.normal(jax.random.PRNGKey(2), (B1, 32, N1), dtype=jnp.float32)
    ref1 = jax.block_until_ready(posenetfeat_reference(x1, e1, params))
    out1 = jax.block_until_ready(
        posenetfeat_forward(x1, e1, params, weight_dtype=jnp.float32))
    assert out1.shape == (B1, 160, N1), out1.shape
    np.testing.assert_allclose(np.asarray(out1), np.asarray(ref1),
                               rtol=1e-4, atol=1e-4)

    print("KERNEL_OK")
</pallas_src>

<mosaic_0001>
module attributes {stable_mosaic.version = 11 : i64} {
  func.func @posenetfeat_kernel(%arg0: i32, %arg1: i32, %arg2: memref<1x3x128xf32, #tpu.memory_space<vmem>>, %arg3: memref<1x32x128xf32, #tpu.memory_space<vmem>>, %arg4: memref<128x3xf32, #tpu.memory_space<vmem>>, %arg5: memref<128x32xf32, #tpu.memory_space<vmem>>, %arg6: memref<128x1xf32, #tpu.memory_space<vmem>>, %arg7: memref<576x128xf32, #tpu.memory_space<vmem>>, %arg8: memref<256x1xf32, #tpu.memory_space<vmem>>, %arg9: memref<576x256xf32, #tpu.memory_space<vmem>>, %arg10: memref<256x1xf32, #tpu.memory_space<vmem>>, %arg11: memref<320x256xf32, #tpu.memory_space<vmem>>, %arg12: memref<320x1xf32, #tpu.memory_space<vmem>>, %arg13: memref<160x320xf32, #tpu.memory_space<vmem>>, %arg14: memref<160x1xf32, #tpu.memory_space<vmem>>, %arg15: memref<1x160x128xf32, #tpu.memory_space<vmem>>) attributes {dimension_semantics = [#tpu.dimension_semantics<parallel>, #tpu.dimension_semantics<parallel>], iteration_bounds = array<i64: 2, 1>, scalar_prefetch = 0 : i64, scratch_operands = 0 : i64, tpu.core_type = #tpu.core_type<tc>, window_params = [{transform_indices = @transform_0, window_bounds = array<i64: 1, 3, 128>}, {transform_indices = @transform_1, window_bounds = array<i64: 1, 32, 128>}, {pipeline_mode = #tpu.pipeline_mode<synchronous>, transform_indices = @transform_2, window_bounds = array<i64: 128, 3>}, {pipeline_mode = #tpu.pipeline_mode<synchronous>, transform_indices = @transform_3, window_bounds = array<i64: 128, 32>}, {pipeline_mode = #tpu.pipeline_mode<synchronous>, transform_indices = @transform_4, window_bounds = array<i64: 128, 1>}, {pipeline_mode = #tpu.pipeline_mode<synchronous>, transform_indices = @transform_5, window_bounds = array<i64: 576, 128>}, {pipeline_mode = #tpu.pipeline_mode<synchronous>, transform_indices = @transform_6, window_bounds = array<i64: 256, 1>}, {pipeline_mode = #tpu.pipeline_mode<synchronous>, transform_indices = @transform_7, window_bounds = array<i64: 576, 256>}, {pipeline_mode = #tpu.pipeline_mode<synchronous>, transform_indices = @transform_8, window_bounds = array<i64: 256, 1>}, {pipeline_mode = #tpu.pipeline_mode<synchronous>, transform_indices = @transform_9, window_bounds = array<i64: 320, 256>}, {pipeline_mode = #tpu.pipeline_mode<synchronous>, transform_indices = @transform_10, window_bounds = array<i64: 320, 1>}, {pipeline_mode = #tpu.pipeline_mode<synchronous>, transform_indices = @transform_11, window_bounds = array<i64: 160, 320>}, {pipeline_mode = #tpu.pipeline_mode<synchronous>, transform_indices = @transform_12, window_bounds = array<i64: 160, 1>}, {transform_indices = @transform_13, window_bounds = array<i64: 1, 160, 128>}]} {
    %c0 = arith.constant 0 : index
    %c0_0 = arith.constant 0 : index
    %c0_1 = arith.constant 0 : index
    %0 = vector.load %arg2[%c0, %c0_0, %c0_1] : memref<1x3x128xf32, #tpu.memory_space<vmem>>, vector<1x3x128xf32>
    %1 = vector.shape_cast %0 : vector<1x3x128xf32> to vector<3x128xf32>
    %c0_2 = arith.constant 0 : index
    %c0_3 = arith.constant 0 : index
    %c0_4 = arith.constant 0 : index
    %2 = vector.load %arg3[%c0_2, %c0_3, %c0_4] : memref<1x32x128xf32, #tpu.memory_space<vmem>>, vector<1x32x128xf32>
    %3 = vector.shape_cast %2 : vector<1x32x128xf32> to vector<32x128xf32>
    %c0_5 = arith.constant 0 : index
    %c0_6 = arith.constant 0 : index
    %4 = vector.load %arg4[%c0_5, %c0_6] : memref<128x3xf32, #tpu.memory_space<vmem>>, vector<128x3xf32>
    %cst = arith.constant dense<0.000000e+00> : vector<128x128xf32>
    %5 = tpu.matmul %4, %1, %cst {dimension_numbers = #tpu.dot_dimension_numbers<[1], [0], [0], [1], [0, 0, 1, 1], [], []>} : vector<128x3xf32>, vector<3x128xf32>, vector<128x128xf32> -> vector<128x128xf32>
    %c0_7 = arith.constant 0 : index
    %c0_8 = arith.constant 0 : index
    %6 = vector.load %arg5[%c0_7, %c0_8] : memref<128x32xf32, #tpu.memory_space<vmem>>, vector<128x32xf32>
    %cst_9 = arith.constant dense<0.000000e+00> : vector<128x128xf32>
    %7 = tpu.matmul %6, %3, %cst_9 {dimension_numbers = #tpu.dot_dimension_numbers<[1], [0], [0], [1], [0, 0, 1, 1], [], []>} : vector<128x32xf32>, vector<32x128xf32>, vector<128x128xf32> -> vector<128x128xf32>
    %8 = arith.addf %5, %7 : vector<128x128xf32>
    %c0_10 = arith.constant 0 : index
    %c0_11 = arith.constant 0 : index
    %9 = vector.load %arg6[%c0_10, %c0_11] : memref<128x1xf32, #tpu.memory_space<vmem>>, vector<128x1xf32>
    %10 = vector.broadcast %9 : vector<128x1xf32> to vector<128x128xf32>
    %11 = arith.addf %8, %10 : vector<128x128xf32>
    %cst_12 = arith.constant 0.000000e+00 : f32
    %12 = vector.broadcast %cst_12 : f32 to vector<128x128xf32>
    %13 = arith.maximumf %11, %12 : vector<128x128xf32>
    %c0_13 = arith.constant 0 : index
    %c0_14 = arith.constant 0 : index
    %14 = vector.load %arg7[%c0_13, %c0_14] : memref<576x128xf32, #tpu.memory_space<vmem>>, vector<576x128xf32>
    %cst_15 = arith.constant dense<0.000000e+00> : vector<576x128xf32>
    %15 = tpu.matmul %14, %13, %cst_15 {dimension_numbers = #tpu.dot_dimension_numbers<[1], [0], [0], [1], [0, 0, 1, 1], [], []>} : vector<576x128xf32>, vector<128x128xf32>, vector<576x128xf32> -> vector<576x128xf32>
    %16 = vector.extract_strided_slice %15 {offsets = [0, 0], sizes = [256, 128], strides = [1, 1]} : vector<576x128xf32> to vector<256x128xf32>
    %c0_16 = arith.constant 0 : index
    %c0_17 = arith.constant 0 : index
    %17 = vector.load %arg8[%c0_16, %c0_17] : memref<256x1xf32, #tpu.memory_space<vmem>>, vector<256x1xf32>
    %18 = vector.broadcast %17 : vector<256x1xf32> to vector<256x128xf32>
    %19 = arith.addf %16, %18 : vector<256x128xf32>
    %cst_18 = arith.constant 0.000000e+00 : f32
    %20 = vector.broadcast %cst_18 : f32 to vector<256x128xf32>
    %21 = arith.maximumf %19, %20 : vector<256x128xf32>
    %22 = vector.extract_strided_slice %15 {offsets = [256, 0], sizes = [320, 128], strides = [1, 1]} : vector<576x128xf32> to vector<320x128xf32>
    %c0_19 = arith.constant 0 : index
    %c0_20 = arith.constant 0 : index
    %23 = vector.load %arg9[%c0_19, %c0_20] : memref<576x256xf32, #tpu.memory_space<vmem>>, vector<576x256xf32>
    %cst_21 = arith.constant dense<0.000000e+00> : vector<576x128xf32>
    %24 = tpu.matmul %23, %21, %cst_21 {dimension_numbers = #tpu.dot_dimension_numbers<[1], [0], [0], [1], [0, 0, 1, 1], [], []>} : vector<576x256xf32>, vector<256x128xf32>, vector<576x128xf32> -> vector<576x128xf32>
    %25 = vector.extract_strided_slice %24 {offsets = [0, 0], sizes = [256, 128], strides = [1, 1]} : vector<576x128xf32> to vector<256x128xf32>
    %c0_22 = arith.constant 0 : index
    %c0_23 = arith.constant 0 : index
    %26 = vector.load %arg10[%c0_22, %c0_23] : memref<256x1xf32, #tpu.memory_space<vmem>>, vector<256x1xf32>
    %27 = vector.broadcast %26 : vector<256x1xf32> to vector<256x128xf32>
    %28 = arith.addf %25, %27 : vector<256x128xf32>
    %cst_24 = arith.constant 0.000000e+00 : f32
    %29 = vector.broadcast %cst_24 : f32 to vector<256x128xf32>
    %30 = arith.maximumf %28, %29 : vector<256x128xf32>
    %31 = vector.extract_strided_slice %24 {offsets = [256, 0], sizes = [320, 128], strides = [1, 1]} : vector<576x128xf32> to vector<320x128xf32>
    %32 = arith.addf %22, %31 : vector<320x128xf32>
    %c0_25 = arith.constant 0 : index
    %c0_26 = arith.constant 0 : index
    %33 = vector.load %arg11[%c0_25, %c0_26] : memref<320x256xf32, #tpu.memory_space<vmem>>, vector<320x256xf32>
    %cst_27 = arith.constant dense<0.000000e+00> : vector<320x128xf32>
    %34 = tpu.matmul %33, %30, %cst_27 {dimension_numbers = #tpu.dot_dimension_numbers<[1], [0], [0], [1], [0, 0, 1, 1], [], []>} : vector<320x256xf32>, vector<256x128xf32>, vector<320x128xf32> -> vector<320x128xf32>
    %35 = arith.addf %32, %34 : vector<320x128xf32>
    %c0_28 = arith.constant 0 : index
    %c0_29 = arith.constant 0 : index
    %36 = vector.load %arg12[%c0_28, %c0_29] : memref<320x1xf32, #tpu.memory_space<vmem>>, vector<320x1xf32>
    %37 = vector.broadcast %36 : vector<320x1xf32> to vector<320x128xf32>
    %38 = arith.addf %35, %37 : vector<320x128xf32>
    %cst_30 = arith.constant 0.00999999977 : f32
    %39 = vector.broadcast %cst_30 : f32 to vector<320x128xf32>
    %40 = arith.mulf %39, %38 : vector<320x128xf32>
    %41 = arith.maximumf %38, %40 : vector<320x128xf32>
    %c0_31 = arith.constant 0 : index
    %c0_32 = arith.constant 0 : index
    %42 = vector.load %arg13[%c0_31, %c0_32] : memref<160x320xf32, #tpu.memory_space<vmem>>, vector<160x320xf32>
    %cst_33 = arith.constant dense<0.000000e+00> : vector<160x128xf32>
    %43 = tpu.matmul %42, %41, %cst_33 {dimension_numbers = #tpu.dot_dimension_numbers<[1], [0], [0], [1], [0, 0, 1, 1], [], []>} : vector<160x320xf32>, vector<320x128xf32>, vector<160x128xf32> -> vector<160x128xf32>
    %c0_34 = arith.constant 0 : index
    %c0_35 = arith.constant 0 : index
    %44 = vector.load %arg14[%c0_34, %c0_35] : memref<160x1xf32, #tpu.memory_space<vmem>>, vector<160x1xf32>
    %45 = vector.broadcast %44 : vector<160x1xf32> to vector<160x128xf32>
    %46 = arith.addf %43, %45 : vector<160x128xf32>
    %c0_36 = arith.constant 0 : index
    %c0_37 = arith.constant 0 : index
    %c0_38 = arith.constant 0 : index
    %47 = vector.load %arg15[%c0_36, %c0_37, %c0_38] : memref<1x160x128xf32, #tpu.memory_space<vmem>>, vector<1x160x128xf32>
    %48 = vector.shape_cast %47 : vector<1x160x128xf32> to vector<160x128xf32>
    %49 = vector.shape_cast %46 : vector<160x128xf32> to vector<1x160x128xf32>
    tpu.vector_store %arg15[%c0_36, %c0_37, %c0_38], %49 {strides = array<i32>} : memref<1x160x128xf32, #tpu.memory_space<vmem>>, vector<1x160x128xf32>,
    return
  }
  func.func @transform_0(%arg0: i32, %arg1: i32) -> (i32, i32, i32) {
    %c0_i32 = arith.constant 0 : i32
    %c0_i32_0 = arith.constant 0 : i32
    return %arg0, %c0_i32, %arg1 : i32, i32, i32
  }
  func.func @transform_1(%arg0: i32, %arg1: i32) -> (i32, i32, i32) {
    %c0_i32 = arith.constant 0 : i32
    %c0_i32_0 = arith.constant 0 : i32
    return %arg0, %c0_i32, %arg1 : i32, i32, i32
  }
  func.func @transform_2(%arg0: i32, %arg1: i32) -> (i32, i32) {
    %c0_i32 = arith.constant 0 : i32
    %c0_i32_0 = arith.constant 0 : i32
    %c0_i32_1 = arith.constant 0 : i32
    return %c0_i32, %c0_i32_0 : i32, i32
  }
  func.func @transform_3(%arg0: i32, %arg1: i32) -> (i32, i32) {
    %c0_i32 = arith.constant 0 : i32
    %c0_i32_0 = arith.constant 0 : i32
    %c0_i32_1 = arith.constant 0 : i32
    return %c0_i32, %c0_i32_0 : i32, i32
  }
  func.func @transform_4(%arg0: i32, %arg1: i32) -> (i32, i32) {
    %c0_i32 = arith.constant 0 : i32
    %c0_i32_0 = arith.constant 0 : i32
    %c0_i32_1 = arith.constant 0 : i32
    return %c0_i32, %c0_i32_0 : i32, i32
  }
  func.func @transform_5(%arg0: i32, %arg1: i32) -> (i32, i32) {
    %c0_i32 = arith.constant 0 : i32
    %c0_i32_0 = arith.constant 0 : i32
    %c0_i32_1 = arith.constant 0 : i32
    return %c0_i32, %c0_i32_0 : i32, i32
  }
  func.func @transform_6(%arg0: i32, %arg1: i32) -> (i32, i32) {
    %c0_i32 = arith.constant 0 : i32
    %c0_i32_0 = arith.constant 0 : i32
    %c0_i32_1 = arith.constant 0 : i32
    return %c0_i32, %c0_i32_0 : i32, i32
  }
  func.func @transform_7(%arg0: i32, %arg1: i32) -> (i32, i32) {
    %c0_i32 = arith.constant 0 : i32
    %c0_i32_0 = arith.constant 0 : i32
    %c0_i32_1 = arith.constant 0 : i32
    return %c0_i32, %c0_i32_0 : i32, i32
  }
  func.func @transform_8(%arg0: i32, %arg1: i32) -> (i32, i32) {
    %c0_i32 = arith.constant 0 : i32
    %c0_i32_0 = arith.constant 0 : i32
    %c0_i32_1 = arith.constant 0 : i32
    return %c0_i32, %c0_i32_0 : i32, i32
  }
  func.func @transform_9(%arg0: i32, %arg1: i32) -> (i32, i32) {
    %c0_i32 = arith.constant 0 : i32
    %c0_i32_0 = arith.constant 0 : i32
    %c0_i32_1 = arith.constant 0 : i32
    return %c0_i32, %c0_i32_0 : i32, i32
  }
  func.func @transform_10(%arg0: i32, %arg1: i32) -> (i32, i32) {
    %c0_i32 = arith.constant 0 : i32
    %c0_i32_0 = arith.constant 0 : i32
    %c0_i32_1 = arith.constant 0 : i32
    return %c0_i32, %c0_i32_0 : i32, i32
  }
  func.func @transform_11(%arg0: i32, %arg1: i32) -> (i32, i32) {
    %c0_i32 = arith.constant 0 : i32
    %c0_i32_0 = arith.constant 0 : i32
    %c0_i32_1 = arith.constant 0 : i32
    return %c0_i32, %c0_i32_0 : i32, i32
  }
  func.func @transform_12(%arg0: i32, %arg1: i32) -> (i32, i32) {
    %c0_i32 = arith.constant 0 : i32
    %c0_i32_0 = arith.constant 0 : i32
    %c0_i32_1 = arith.constant 0 : i32
    return %c0_i32, %c0_i32_0 : i32, i32
  }
  func.func @transform_13(%arg0: i32, %arg1: i32) -> (i32, i32, i32) {
    %c0_i32 = arith.constant 0 : i32
    %c0_i32_0 = arith.constant 0 : i32
    return %arg0, %c0_i32, %arg1 : i32, i32, i32
  }
}

</mosaic_0001>

<bundles_post_ra>
// kernel: tpu_custom_call.1
= control target key start
LH: loop header
LB: loop body
LE: loop exit
PB: predicated region body
PF: predicated region fallthrough
CT: control target
= control target key end

     0   :  { %s5902_s0 = inlined_call_operand.vmem [shape: f32[2,3,128], index: 0, kind: input, shape index: {}]   ;;  %s5903_s1 = inlined_call_operand.vmem [shape: f32[2,32,128], index: 1, kind: input, shape index: {}]   ;;  %s5904_s2 = inlined_call_operand.vmem [shape: f32[128,3], index: 2, kind: input, shape index: {}]   ;;  %s5905_s3 = inlined_call_operand.vmem [shape: f32[128,32], index: 3, kind: input, shape index: {}]   ;;  %s5906_s4 = inlined_call_operand.vmem [shape: f32[128,1], index: 4, kind: input, shape index: {}]   ;;  %s5907_s5 = inlined_call_operand.vmem [shape: f32[576,128], index: 5, kind: input, shape index: {}]   ;;  %s5908_s6 = inlined_call_operand.vmem [shape: f32[256,1], index: 6, kind: input, shape index: {}]   ;;  %s5909_s7 = inlined_call_operand.hbm [shape: f32[576,256], index: 7, kind: input, shape index: {}]   ;;  %s5910_s8 = inlined_call_operand.vmem [shape: f32[256,1], index: 8, kind: input, shape index: {}]   ;;  %s5911_s9 = inlined_call_operand.hbm [shape: f32[320,256], index: 9, kind: input, shape index: {}]   ;;  %s5912_s10 = inlined_call_operand.vmem [shape: f32[320,1], index: 10, kind: input, shape index: {}]   ;;  %s5913_s11 = inlined_call_operand.hbm [shape: f32[160,320], index: 11, kind: input, shape index: {}]   ;;  %s5914_s12 = inlined_call_operand.vmem [shape: f32[160,1], index: 12, kind: input, shape index: {}]   ;;  %s5915_s13 = inlined_call_operand.hbm [shape: f32[2,160,128], index: 13, kind: output, shape index: {}]  }
   0x1   :  { %5928 = sst [smem:[#allocation77_spill]] %s5911_s9 }
   0x2   :  { %5929 = sst [smem:[#allocation78_spill]] %s5915_s13 }
   0x3   :  { %18 = vsyncpa [#allocation3], 0 }
   0x4   :  { %19 = vsyncpa [#allocation6], 0 }
   0x5   :  { %20 = vsyncpa [#allocation4], 0 }
   0x6   :  { %22 = vsyncpa [#allocation4 + $0x1], 0  ;;  %s4230_s25 = smov 0   ;;  %s4232_s26 = smov 0  }
   0x7   :  { %s4234_s27 = smov 0   ;;  %s4236_s28 = smov 0  }
   0x8   :  { %s4238_s29 = smov 0   ;;  %s4240_s30 = smov 0  }
   0x9 LB: > { %5930 = sst [smem:[#allocation12_spill]] %s4128_s25  ;;  %s3793_s14 = sadd.s32 4294967295, %s4148_s30   ;;  %s4148_s30 = sphi %s4240_s30, %s28_s30   ;;  %s4144_s29 = sphi %s4238_s29, %s6081_s29   ;;  %s4140_s28 = sphi %s4236_s28, %s6080_s28   ;;  %s4136_s27 = sphi %s4234_s27, %s6079_s27   ;;  %s4132_s26 = sphi %s4232_s26, %s6078_s26   ;;  %s4128_s25 = sphi %s4230_s25, %s6077_s25  }
   0xa   : > { %5931 = sst [smem:[#allocation13_spill]] %s4132_s26  ;;  %s3794_s15 = sadd.s32 4294967294, %s4148_s30  }
   0xb   : > { %5932 = sst [smem:[#allocation14_spill]] %s4136_s27  ;;  %s40_s16 = sadd.s32 1, %s4144_s29 }
   0xc   : > { %5933 = sst [smem:[#allocation15_spill]] %s4144_s29  ;;  %s336_s17 = sadd.s32 1, %s4136_s27 }
   0xd   : > { %5934 = sst [smem:[#allocation16_spill]] %s4148_s30  ;;  %p42_p0 = scmp.ge.s32.totalorder %s40_s16, 2 }
   0xe   : > { %p346_p1 = scmp.ne.s32.totalorder %s4136_s27, %s4132_s26  ;;  %p347_p2 = scmp.eq.s32.totalorder %s3793_s14, 1 }
   0xf   : > { %p352_p3 = scmp.ne.s32.totalorder %s4132_s26, %s4128_s25  ;;  %s6083_s16 = smov (%p42_p0, %s40_s16), 0 }
  0x10   : > { %5935 = sst [smem:[#allocation17_spill]] %s6083_s16  ;;  %p4270_p4 = por %p347_p2, %p346_p1 }
  0x11   : > { %p353_p5 = scmp.eq.s32.totalorder %s3794_s15, 1  ;;  %s331_s19 = ssub.s32 %s4144_s29, %s6083_s16 }
  0x12   : > { %s5936_s18 = scalar_select %p4270_p4, 1, 0 }
  0x13   : > { %p3795_p6 = scmp.ge.s32.totalorder %s4148_s30, 1  ;;  %p334_p7 = scmp.eq.s32.totalorder %s331_s19, 0 }
  0x14   : > { %5937 = sst [smem:[#allocation18_spill]] %s5936_s18  ;;  %p4277_p8 = por %p353_p5, %p352_p3 }
  0x15   : > { %p360_p9 = scmp.lt.s32.totalorder %s4148_s30, 3  ;;  %p4289_p11 = scmp.eq.s32.totalorder %s3793_s14, 0 }
  0x16   : > { %s5938_s20 = scalar_select %p4277_p8, 1, 0 }
  0x17   : > { %s4283_s21 = scalar_select %p334_p7, %s4136_s27, %s336_s17  }
  0x18   : > { %5939 = sst [smem:[#allocation19_spill]] %s5938_s20  ;;  %p4285_p10 = pnand %p3795_p6, %p360_p9 }
  0x19   : > { %5940 = sst [smem:[#allocation20_spill]] %s4283_s21  ;;  %s4150_s16 = smov [#allocation5]  }
  0x1a   : > { %p3890_p12 = pneg %p4285_p10  ;;  %s5943_s9 = sld [smem:[#allocation77_spill]] }
  0x1b   : > { %s405_s14 = sshll.u32 %s4150_s16, 4  ;;  %s4151_s29 = smov 256   ;;  %s406_s14 = int_to_ptr.vmem [resolvable:$true] %s405_s14 }
  0x1c   : > { %p4300_p13 = pnand %p4289_p11, %p3890_p12  ;;  %s4152_s21 = smov 16  }
  0x1d   : > { %s386_s24 = sshll.u32 %s5909_s7, 4  ;;  %s4153_s15 = smov [#allocation2]   ;;  %s387_s24 = int_to_ptr.hbm [resolvable:$true] %s386_s24 }
  0x1e   : > { %s420_s18 = sshll.u32 %s5913_s11, 4  ;;  %s4154_s16 = smov [#allocation7]   ;;  %s421_s18 = int_to_ptr.hbm [resolvable:$true] %s420_s18 }
  0x1f   : > { %s422_s13 = sshll.u32 %s4154_s16, 4  ;;  %s4155_s26 = smov 384   ;;  %s423_s13 = int_to_ptr.vmem [resolvable:$true] %s422_s13 }
  0x20   : > { %s403_s19 = sshll.u32 %s5943_s9, 4  ;;  %s388_s9 = sshll.u32 %s4153_s15, 4  ;;  %s404_s19 = int_to_ptr.hbm [resolvable:$true] %s403_s19  ;;  %s389_s9 = int_to_ptr.vmem [resolvable:$true] %s388_s9 }
  0x21   : > { %3896 = dma.hbm_to_vmem [thread:$0]  (!%p4300_p13), %s404_s19, 10240, %s406_s14, [#allocation6], %s4151_s29, %s4151_s29, %s4152_s21  }
  0x22   : > { %3893 = dma.hbm_to_vmem [thread:$0]  (!%p4300_p13), %s387_s24, 18432, %s389_s9, [#allocation3], %s4151_s29, %s4151_s29, %s4152_s21  }
  0x23   : > { %s4156_s19 = smov 24   ;;  %462 = sbr.rel (%p4285_p10) target bundleno = 2097 (0x831), region = 72 }
  0x24   : > { %3899 = dma.hbm_to_vmem [thread:$0]  (!%p4300_p13), %s421_s18, 7680, %s423_s13, [#allocation6], %s4155_s26, %s4155_s26, %s4156_s19  }
  0x28   : > { %4115 = dma.done.wait (%p4289_p11), [#allocation3], 18432  }
  0x29   : > { %4117 = vsyncadd (%p4289_p11), [#allocation3], 4294948864 }
  0x2a   : > { %4119 = dma.done.wait (%p4289_p11), [#allocation6], 17920  }
  0x2b   : > { %4121 = vsyncadd (%p4289_p11), [#allocation6], 4294949376  ;;  %p527_p0 = scmp.lt.s32.totalorder %s4140_s28, 1  ;;  %v4157_v0 = vmov 0   ;;  %v826_v1 = vld [vmem:[%s5906_s4 + $0x78] sm:$0xff]  ;;  %v824_v2 = vld [vmem:[%s5906_s4 + $0x68] sm:$0xff] }
  0x2c   : > { %3971 = vset.pattern.permute.xlu2 %v4157_v0  ;;  %3970 = vset.pattern.permute.xlu1 %v4157_v0  ;;  %v822_v3 = vld [vmem:[%s5906_s4 + $0x58] sm:$0xff]  ;;  %vm742_vm0 = vcmask 1042432   ;;  %vm693_vm1 = vcmask 23552   ;;  %v547_v8 = vld [vmem:[%s5904_s2] sm:$0xff]  ;;  %vm579_vm2 = vcmask 261120   ;;  %v825_v11 = vld [vmem:[%s5906_s4 + $0x70] sm:$0xff] }
  0x2d   : > { %3969 = vset.pattern.permute.xlu0 %v4157_v0  ;;  %s528_s9 = scalar_select %p527_p0, %s4140_s28, 1  ;;  %894 = vperm.xlu1 %3970, %v824_v2   ;;  %v563_v10 = vld [vmem:[%s5905_s3] sm:$0xff]  ;;  %v821_v13 = vld [vmem:[%s5906_s4 + $0x50] sm:$0xff]  ;;  %v548_v14 = vld [vmem:[%s5904_s2 + $0x8] sm:$0xff]  ;;  %vm3340_vm3 = vcmask 523264  }
  0x2e   : > { %904 = vperm.xlu0 %3969, %v826_v1   ;;  %884 = vperm.xlu2 %3971, %v822_v3   ;;  %v823_v12 = vld [vmem:[%s5906_s4 + $0x60] sm:$0xff]  ;;  %v564_v15 = vld [vmem:[%s5905_s3 + $0x8] sm:$0xff]  ;;  %v818_v18 = vld [vmem:[%s5906_s4 + $0x38] sm:$0xff]  ;;  %s6071_s23 = sld [smem:[#allocation13_spill]]  ;;  %s3875_s15 = smul.u32 160, %s4140_s28 }
  0x2f   : > { %s3863_s13 = sshll.u32 %s528_s9, 5  ;;  %s3804_s25 = sshll.u32 %s528_s9, 2  ;;  %v820_v16 = vld [vmem:[%s5906_s4 + $0x48] sm:$0xff]  ;;  %v819_v17 = vld [vmem:[%s5906_s4 + $0x40] sm:$0xff]  ;;  %v549_v19 = vld [vmem:[%s5904_s2 + $0x10] sm:$0xff] }
  0x30   : > { %s541_s29 = scalar_lea.vmem %s5903_s1, %s3863_s13  ;;  %s533_s20 = scalar_lea.vmem %s5902_s0, %s3804_s25  ;;  %v565_v20 = vld [vmem:[%s5905_s3 + $0x10] sm:$0xff]  ;;  %v816_v22 = vld [vmem:[%s5906_s4 + $0x28] sm:$0xff]  ;;  %v815_v23 = vld [vmem:[%s5906_s4 + $0x20] sm:$0xff] }
  0x31   : > { %v546_v4 = vld [vmem:[%s541_s29 + $0x18] sm:$0xff]  ;;  %v545_v5 = vld [vmem:[%s541_s29 + $0x10] sm:$0xff]  ;;  %v542_v6 = vld [vmem:[%s533_s20] sm:$0x7]  ;;  %s6072_s9 = sld [smem:[#allocation78_spill]] }
  0x32   : > { %640 = vmatpush.msra.mxu0 %v546_v4  ;;  %v544_v7 = vld [vmem:[%s541_s29 + $0x8] sm:$0xff]  ;;  %3823 = vmatpush.msk.msra.mxu1 %vm742_vm0, %v542_v6  ;;  %v543_v9 = vld [vmem:[%s541_s29] sm:$0xff]  ;;  %v817_v21 = vld [vmem:[%s5906_s4 + $0x30] sm:$0xff] }
  0x33   : > { %3864 = vmatpush.msk.msra.mxu2 %vm742_vm0, %v542_v6  ;;  %3824 = vmatmul.msk.f32.vlgmr.msra.gmra.mxu1 %vm693_vm1, %v547_v8  ;;  %v550_v24 = vld [vmem:[%s5904_s2 + $0x18] sm:$0xff]  ;;  %v813_v28 = vld [vmem:[%s5906_s4 + $0x10] sm:$0xff]  ;;  %v812_v29 = vld [vmem:[%s5906_s4 + $0x8] sm:$0xff] }
  0x34   : > { %641 = vmatpush.msra.mxu0 %v545_v5  ;;  %3865 = vmatpush.msk.msra.mxu3 %vm742_vm0, %v542_v6  ;;  %v554_v25 = vld [vmem:[%s5904_s2 + $0x38] sm:$0xff]  ;;  %v551_v30 = vld [vmem:[%s5904_s2 + $0x20] sm:$0xff]  ;;  %v1258_v35 = vld [vmem:[%s5908_s6 + $0x70] sm:$0xff]  ;;  %s524_s17 = sand.u32 1, %s6071_s23  }
  0x35   : > { %889 = vperm.xlu1 %3970, %v823_v12   ;;  %3831 = vmatmul.msk.f32.vlgmr.msra.gmra.mxu2 %vm693_vm1, %v554_v25  ;;  %v566_v26 = vld [vmem:[%s5905_s3 + $0x18] sm:$0xff]  ;;  %v555_v31 = vld [vmem:[%s5904_s2 + $0x40] sm:$0xff]  ;;  %v552_v36 = vld [vmem:[%s5904_s2 + $0x28] sm:$0xff]  ;;  %s3874_s14 = smul.u32 160, %s524_s17  ;;  %s3653_s28 = scalar_lea.sflag [#allocation4], %s524_s17 }
  0x36   : > { %642 = vmatpush.msra.mxu0 %v544_v7  ;;  %899 = vperm.xlu0 %3969, %v825_v11   ;;  %v814_v27 = vld [vmem:[%s5906_s4 + $0x18] sm:$0xff]  ;;  %v567_v32 = vld [vmem:[%s5905_s3 + $0x20] sm:$0xff]  ;;  %v556_v37 = vld [vmem:[%s5904_s2 + $0x48] sm:$0xff] }
  0x37   : > { %879 = vperm.xlu2 %3971, %v821_v13   ;;  %v811_v33 = vld [vmem:[%s5906_s4] sm:$0xff]  ;;  %v1259_v34 = vld [vmem:[%s5908_s6 + $0x78] sm:$0xff]  ;;  %v568_v38 = vld [vmem:[%s5905_s3 + $0x28] sm:$0xff]  ;;  %s5826_s24 = scalar_lea.vmem [#allocation8], %s3874_s14  ;;  %s3665_s13 = scalar_lea.hbm %s6072_s9, %s3875_s15 }
  0x38   : > { %643 = vmatpush.msra.mxu0 %v543_v9  ;;  %v1257_v39 = vld [vmem:[%s5908_s6 + $0x68] sm:$0xff]  ;;  %v1256_v40 = vld [vmem:[%s5908_s6 + $0x60] sm:$0xff]  ;;  %v1275_v41 = vld [vmem:[%s5908_s6 + $0xf8] sm:$0xff]  ;;  %s3666_s26 = sshll.u32 %s5826_s24, 4  ;;  %s3668_s27 = sshll.u32 %s3665_s13, 4  ;;  %s3667_s26 = int_to_ptr.vmem [resolvable:$true] %s3666_s26  ;;  %s3669_s27 = int_to_ptr.hbm [resolvable:$true] %s3668_s27 }
  0x39   : > { %3807 = vmatmul.msk.f32.vlgmr.msra.gmra.mxu0 %vm579_vm2, %v563_v10  ;;  %v553_v42 = vld [vmem:[%s5904_s2 + $0x30] sm:$0xff]  ;;  %v1255_v45 = vld [vmem:[%s5908_s6 + $0x58] sm:$0xff]  ;;  %v1273_v50 = vld [vmem:[%s5908_s6 + $0xe8] sm:$0xff]  ;;  %s4076_s30 = sshra.s32 %s3669_s27, 4  ;;  %s4082_s21 = scalar_lea.hbm %s6072_s9, 320  ;;  %s4077_s30 = int_to_ptr.hbm [resolvable:$true] %s4076_s30 }
  0x3a   : > { %v557_v43 = vld [vmem:[%s5904_s2 + $0x50] sm:$0xff]  ;;  %v558_v48 = vld [vmem:[%s5904_s2 + $0x58] sm:$0xff]  ;;  %v1253_v51 = vld [vmem:[%s5908_s6 + $0x48] sm:$0xff]  ;;  %s4078_s18 = scalar_lea.hbm %s4077_s30, 160  ;;  %p4083_p5 = scmp.lt.s32.totalorder %s4077_s30, %s6072_s9 }
  0x3b   : > { %3825 = vmatmul.msk.f32.gmra.mxu1 %vm693_vm1, %v548_v14  ;;  %v569_v44 = vld [vmem:[%s5905_s3 + $0x30] sm:$0xff]  ;;  %3835 = vmatmul.msk.f32.vlgmr.msra.gmra.mxu3 %vm693_vm1, %v558_v48  ;;  %v570_v49 = vld [vmem:[%s5905_s3 + $0x38] sm:$0xff]  ;;  %v1272_v52 = vld [vmem:[%s5908_s6 + $0xe0] sm:$0xff]  ;;  %p4079_p1 = scmp.ne.s32.totalorder %s4077_s30, %s4078_s18  ;;  %p4084_p6 = scmp.lt.s32.totalorder %s4082_s21, %s4078_s18 }
  0x3c   : > { %v1274_v46 = vld [vmem:[%s5908_s6 + $0xf0] sm:$0xff]  ;;  %v559_v53 = vld [vmem:[%s5904_s2 + $0x60] sm:$0xff]  ;;  %v1271_v56 = vld [vmem:[%s5908_s6 + $0xd8] sm:$0xff] }
  0x3d   : > { %869 = vperm.xlu1 %3970, %v819_v17   ;;  %3832 = vmatmul.msk.f32.gmra.mxu2 %vm693_vm1, %v555_v31  ;;  %v1254_v47 = vld [vmem:[%s5908_s6 + $0x50] sm:$0xff]  ;;  %v571_v54 = vld [vmem:[%s5905_s3 + $0x40] sm:$0xff]  ;;  %v1251_v57 = vld [vmem:[%s5908_s6 + $0x38] sm:$0xff]  ;;  %p4080_p2 = pnand %p4079_p1, %p4270_p4  ;;  %p4085_p7 = por %p4084_p6, %p4083_p5 }
  0x3e   : > { %874 = vperm.xlu0 %3969, %v820_v16   ;;  %v1252_v55 = vld [vmem:[%s5908_s6 + $0x40] sm:$0xff]  ;;  %v560_v58 = vld [vmem:[%s5904_s2 + $0x68] sm:$0xff]  ;;  %v1270_v60 = vld [vmem:[%s5908_s6 + $0xd0] sm:$0xff] }
  0x3f   : > { %864 = vperm.xlu2 %3971, %v818_v18   ;;  %v572_v59 = vld [vmem:[%s5905_s3 + $0x48] sm:$0xff]  ;;  %v1250_v61 = vld [vmem:[%s5908_s6 + $0x30] sm:$0xff]  ;;  %v1268_v2 = vld [vmem:[%s5908_s6 + $0xc0] sm:$0xff]  ;;  %p4081_p3 = pneg %p4080_p2 }
  0x40   : > { %v1269_v62 = vld [vmem:[%s5908_s6 + $0xc8] sm:$0xff]  ;;  %v561_v63 = vld [vmem:[%s5904_s2 + $0x70] sm:$0xff]  ;;  %v1248_v3 = vld [vmem:[%s5908_s6 + $0x20] sm:$0xff] }
  0x41   : > { %3808 = vmatmul.msk.f32.gmra.mxu0 %vm579_vm2, %v564_v15  ;;  %v573_v0 = vld [vmem:[%s5905_s3 + $0x50] sm:$0xff]  ;;  %v1249_v1 = vld [vmem:[%s5908_s6 + $0x28] sm:$0xff]  ;;  %v562_v4 = vld [vmem:[%s5904_s2 + $0x78] sm:$0xff]  ;;  %p4086_p9 = pnand %p4085_p7, %p4081_p3 }
  0x42   : > { %v574_v5 = vld [vmem:[%s5905_s3 + $0x58] sm:$0xff]  ;;  %v1266_v8 = vld [vmem:[%s5908_s6 + $0xb0] sm:$0xff]  ;;  %v575_v9 = vld [vmem:[%s5905_s3 + $0x60] sm:$0xff] }
  0x43   : > { %3826 = vmatmul.msk.f32.gmra.mxu1 %vm693_vm1, %v549_v19  ;;  %3836 = vmatmul.msk.f32.gmra.mxu3 %vm693_vm1, %v559_v53  ;;  %v1267_v6 = vld [vmem:[%s5908_s6 + $0xb8] sm:$0xff]  ;;  %v1246_v10 = vld [vmem:[%s5908_s6 + $0x10] sm:$0xff]  ;;  %v1265_v11 = vld [vmem:[%s5908_s6 + $0xa8] sm:$0xff] }
  0x44   : > { %v1247_v7 = vld [vmem:[%s5908_s6 + $0x18] sm:$0xff]  ;;  %v1245_v12 = vld [vmem:[%s5908_s6 + $0x8] sm:$0xff]  ;;  %v1264_v14 = vld [vmem:[%s5908_s6 + $0xa0] sm:$0xff] }
  0x45   : > { %854 = vperm.xlu1 %3970, %v816_v22   ;;  %3833 = vmatmul.msk.f32.gmra.mxu2 %vm693_vm1, %v556_v37  ;;  %v576_v13 = vld [vmem:[%s5905_s3 + $0x68] sm:$0xff]  ;;  %v1244_v15 = vld [vmem:[%s5908_s6] sm:$0xff]  ;;  %v1263_v16 = vld [vmem:[%s5908_s6 + $0x98] sm:$0xff] }
  0x46   : > { %859 = vperm.xlu0 %3969, %v817_v21   ;;  %v577_v17 = vld [vmem:[%s5905_s3 + $0x70] sm:$0xff]  ;;  %v1261_v19 = vld [vmem:[%s5908_s6 + $0x88] sm:$0xff]  ;;  %v578_v21 = vld [vmem:[%s5905_s3 + $0x78] sm:$0xff] }
  0x47   : > { %849 = vperm.xlu2 %3971, %v815_v23   ;;  %v1262_v18 = vld [vmem:[%s5908_s6 + $0x90] sm:$0xff]  ;;  %v2125_v22 = vld [vmem:[%s5910_s8 + $0x78] sm:$0xff]  ;;  %v2118_v31 = vld [vmem:[%s5910_s8 + $0x40] sm:$0xff] }
  0x48   : > { %v2124_v23 = vld [vmem:[%s5910_s8 + $0x70] sm:$0xff]  ;;  %v2137_v48 = vld [vmem:[%s5910_s8 + $0xd8] sm:$0xff] }
  0x49   : > { %3809 = vmatmul.msk.f32.gmra.mxu0 %vm579_vm2, %v565_v20  ;;  %v1260_v20 = vld [vmem:[%s5908_s6 + $0x80] sm:$0xff] }
  0x4b   : > { %3827 = vmatmul.msk.f32.gmra.mxu1 %vm693_vm1, %v550_v24  ;;  %3837 = vmatmul.msk.f32.gmra.mxu3 %vm693_vm1, %v560_v58  ;;  %v2123_v24 = vld [vmem:[%s5910_s8 + $0x68] sm:$0xff]  ;;  %v2130_v58 = vld [vmem:[%s5910_s8 + $0xa0] sm:$0xff] }
  0x4d   : > { %839 = vperm.xlu1 %3970, %v813_v28   ;;  %3834 = vmatmul.msk.f32.gmra.mxu2 %vm693_vm1, %v557_v43  ;;  %v2120_v28 = vld [vmem:[%s5910_s8 + $0x50] sm:$0xff]  ;;  %v2141_v43 = vld [vmem:[%s5910_s8 + $0xf8] sm:$0xff] }
  0x4e   : > { %844 = vperm.xlu0 %3969, %v814_v27   ;;  %v2121_v27 = vld [vmem:[%s5910_s8 + $0x58] sm:$0xff] }
  0x4f   : > { %834 = vperm.xlu2 %3971, %v812_v29  }
  0x51   : > { %3810 = vmatmul.msk.f32.gmra.mxu0 %vm579_vm2, %v566_v26  ;;  %v2122_v26 = vld [vmem:[%s5910_s8 + $0x60] sm:$0xff] }
  0x53   : > { %3828 = vmatmul.msk.f32.gmra.mxu1 %vm693_vm1, %v551_v30  ;;  %3838 = vmatmul.msk.f32.gmra.mxu3 %vm693_vm1, %v561_v63  ;;  %v2119_v30 = vld [vmem:[%s5910_s8 + $0x48] sm:$0xff] }
  0x54   : > { %v2127_v63 = vld [vmem:[%s5910_s8 + $0x88] sm:$0xff] }
  0x55   : > { %1353 = vperm.xlu1 %3970, %v1259_v34   ;;  %v2116_v34 = vld [vmem:[%s5910_s8 + $0x30] sm:$0xff] }
  0x56   : > { %829 = vperm.xlu0 %3969, %v811_v33  }
  0x57   : > { %1348 = vperm.xlu2 %3971, %v1258_v35   ;;  %v2115_v35 = vld [vmem:[%s5910_s8 + $0x28] sm:$0xff] }
  0x59   : > { %3811 = vmatmul.msk.f32.gmra.mxu0 %vm579_vm2, %v567_v32  ;;  %v2117_v32 = vld [vmem:[%s5910_s8 + $0x38] sm:$0xff] }
  0x5b   : > { %3829 = vmatmul.msk.f32.gmra.mxu1 %vm693_vm1, %v552_v36  ;;  %3839 = vmatmul.msk.f32.gmra.mxu3 %vm693_vm1, %v562_v4  ;;  %v2114_v36 = vld [vmem:[%s5910_s8 + $0x20] sm:$0xff]  ;;  %v2814_v4 = vld [vmem:[%s5912_s10 + $0x70] sm:$0xff] }
  0x5d   : > { %1338 = vperm.xlu1 %3970, %v1256_v40   ;;  %v2111_v40 = vld [vmem:[%s5910_s8 + $0x8] sm:$0xff] }
  0x5e   : > { %1343 = vperm.xlu0 %3969, %v1257_v39   ;;  %v2112_v39 = vld [vmem:[%s5910_s8 + $0x10] sm:$0xff] }
  0x5f   : > { %1433 = vperm.xlu2 %3971, %v1275_v41  }
  0x61   : > { %3812 = vmatmul.msk.f32.gmra.mxu0 %vm579_vm2, %v568_v38  ;;  %v2113_v38 = vld [vmem:[%s5910_s8 + $0x18] sm:$0xff] }
  0x63   : > { %3830 = vmatmul.msk.f32.gmra.mxu1 %vm693_vm1, %v553_v42  ;;  %v2110_v42 = vld [vmem:[%s5910_s8] sm:$0xff] }
  0x65   : > { %1428 = vperm.xlu1 %3970, %v1274_v46   ;;  %v2139_v46 = vld [vmem:[%s5910_s8 + $0xe8] sm:$0xff] }
  0x66   : > { %1333 = vperm.xlu0 %3969, %v1255_v45  }
  0x67   : > { %1328 = vperm.xlu2 %3971, %v1254_v47   ;;  %v2138_v47 = vld [vmem:[%s5910_s8 + $0xe0] sm:$0xff] }
  0x69   : > { %3813 = vmatmul.msk.f32.gmra.mxu0 %vm579_vm2, %v569_v44  ;;  %v2140_v44 = vld [vmem:[%s5910_s8 + $0xf0] sm:$0xff] }
  0x6d   : > { %1323 = vperm.xlu1 %3970, %v1253_v51   ;;  %v2135_v51 = vld [vmem:[%s5910_s8 + $0xc8] sm:$0xff] }
  0x6e   : > { %1423 = vperm.xlu0 %3969, %v1273_v50   ;;  %v2136_v50 = vld [vmem:[%s5910_s8 + $0xd0] sm:$0xff] }
  0x6f   : > { %1418 = vperm.xlu2 %3971, %v1272_v52   ;;  %v2134_v52 = vld [vmem:[%s5910_s8 + $0xc0] sm:$0xff] }
  0x71   : > { %3814 = vmatmul.msk.f32.gmra.mxu0 %vm579_vm2, %v570_v49 }
  0x75   : > { %1413 = vperm.xlu1 %3970, %v1271_v56   ;;  %v2131_v56 = vld [vmem:[%s5910_s8 + $0xa8] sm:$0xff] }
  0x76   : > { %1318 = vperm.xlu0 %3969, %v1252_v55   ;;  %v2132_v55 = vld [vmem:[%s5910_s8 + $0xb0] sm:$0xff] }
  0x77   : > { %1313 = vperm.xlu2 %3971, %v1251_v57  }
  0x79   : > { %3815 = vmatmul.msk.f32.gmra.mxu0 %vm579_vm2, %v571_v54  ;;  %v2133_v54 = vld [vmem:[%s5910_s8 + $0xb8] sm:$0xff] }
  0x7d   : > { %1308 = vperm.xlu1 %3970, %v1250_v61  }
  0x7e   : > { %1408 = vperm.xlu0 %3969, %v1270_v60   ;;  %v2128_v60 = vld [vmem:[%s5910_s8 + $0x90] sm:$0xff] }
  0x7f   : > { %1403 = vperm.xlu2 %3971, %v1269_v62  }
  0x81   : > { %3816 = vmatmul.msk.f32.gmra.mxu0 %vm579_vm2, %v572_v59  ;;  %v2129_v59 = vld [vmem:[%s5910_s8 + $0x98] sm:$0xff] }
  0x85   : > { %1398 = vperm.xlu1 %3970, %v1268_v2  }
  0x86   : > { %1303 = vperm.xlu0 %3969, %v1249_v1   ;;  %v2815_v1 = vld [vmem:[%s5912_s10 + $0x78] sm:$0xff] }
  0x87   : > { %1298 = vperm.xlu2 %3971, %v1248_v3  }
  0x89   : > { %3817 = vmatmul.msk.f32.gmra.mxu0 %vm579_vm2, %v573_v0  ;;  %v2126_v0 = vld [vmem:[%s5910_s8 + $0x80] sm:$0xff] }
  0x8d   : > { %1293 = vperm.xlu1 %3970, %v1247_v7  }
  0x8e   : > { %1393 = vperm.xlu0 %3969, %v1267_v6   ;;  %v2812_v6 = vld [vmem:[%s5912_s10 + $0x60] sm:$0xff] }
  0x8f   : > { %1388 = vperm.xlu2 %3971, %v1266_v8  }
  0x91   : > { %3818 = vmatmul.msk.f32.gmra.mxu0 %vm579_vm2, %v574_v5  ;;  %v2813_v5 = vld [vmem:[%s5912_s10 + $0x68] sm:$0xff] }
  0x95   : > { %1383 = vperm.xlu1 %3970, %v1265_v11   ;;  %v2811_v11 = vld [vmem:[%s5912_s10 + $0x58] sm:$0xff] }
  0x96   : > { %1288 = vperm.xlu0 %3969, %v1246_v10  }
  0x97   : > { %1283 = vperm.xlu2 %3971, %v1245_v12   ;;  %v2830_v12 = vld [vmem:[%s5912_s10 + $0xf0] sm:$0xff] }
  0x99   : > { %3819 = vmatmul.msk.f32.gmra.mxu0 %vm579_vm2, %v575_v9  ;;  %v2831_v9 = vld [vmem:[%s5912_s10 + $0xf8] sm:$0xff] }
  0x9d   : > { %1278 = vperm.xlu1 %3970, %v1244_v15  }
  0x9e   : > { %1378 = vperm.xlu0 %3969, %v1264_v14  }
  0x9f   : > { %1373 = vperm.xlu2 %3971, %v1263_v16   ;;  %v2810_v16 = vld [vmem:[%s5912_s10 + $0x50] sm:$0xff] }
  0xa1   : > { %3820 = vmatmul.msk.f32.gmra.mxu0 %vm579_vm2, %v576_v13 }
  0xa5   : > { %1363 = vperm.xlu1 %3970, %v1261_v19   ;;  %v905_v19 = vpop.permute.xlu0 %904 }
  0xa6   : > { %1368 = vperm.xlu0 %3969, %v1262_v18   ;;  %v2809_v18 = vld [vmem:[%s5912_s10 + $0x48] sm:$0xff] }
  0xa7   : > { %1358 = vperm.xlu2 %3971, %v1260_v20  }
  0xa9   : > { %3821 = vmatmul.msk.f32.gmra.mxu0 %vm579_vm2, %v577_v17  ;;  %v2829_v17 = vld [vmem:[%s5912_s10 + $0xe8] sm:$0xff] }
  0xad   : > { %2214 = vperm.xlu1 %3970, %v2124_v23  }
  0xae   : > { %2219 = vperm.xlu0 %3969, %v2125_v22  }
  0xaf   : > { %2209 = vperm.xlu2 %3971, %v2123_v24   ;;  %v2828_v24 = vld [vmem:[%s5912_s10 + $0xe0] sm:$0xff] }
  0xb0   : > { %v4717_v61 = vpop.f32.mrf.mxu1 }
  0xb1   : > { %3822 = vmatmul.msk.f32.gmra.mxu0 %vm579_vm2, %v578_v21 }
  0xb5   : > { %2199 = vperm.xlu1 %3970, %v2121_v27   ;;  %v2827_v27 = vld [vmem:[%s5912_s10 + $0xd8] sm:$0xff] }
  0xb6   : > { %v4618_v25 = vpop.f32.mrf.mxu0  ;;  %2204 = vperm.xlu0 %3969, %v2122_v26   ;;  %v2808_v26 = vld [vmem:[%s5912_s10 + $0x40] sm:$0xff] }
  0xb7   : > { %2194 = vperm.xlu2 %3971, %v2120_v28   ;;  %v895_v28 = vpop.permute.xlu1 %894 }
  0xb8   : > { %v4743_v7 = vpop.f32.mrf.mxu1  ;;  %v4756_v14 = vpop.f32.mrf.mxu2 }
  0xbd   : > { %2184 = vperm.xlu1 %3970, %v2118_v31   ;;  %v900_v31 = vpop.permute.xlu0 %899 }
  0xbe   : > { %v4629_v29 = vpop.f32.mrf.mxu0  ;;  %2189 = vperm.xlu0 %3969, %v2119_v30   ;;  %v4730_v2 = vpop.f32.mrf.mxu3 }
  0xbf   : > { %2179 = vperm.xlu2 %3971, %v2117_v32   ;;  %v885_v30 = vpop.permute.xlu2 %884 }
  0xc0   : > { %v4754_v13 = vpop.f32.mrf.mxu1  ;;  %v787_v22 = vpop.f32.mrf.mxu2 }
  0xc5   : > { %2169 = vperm.xlu1 %3970, %v2115_v35  }
  0xc6   : > { %v4640_v33 = vpop.f32.mrf.mxu0  ;;  %2174 = vperm.xlu0 %3969, %v2116_v34   ;;  %v799_v10 = vpop.f32.mrf.mxu3 }
  0xc7   : > { %2164 = vperm.xlu2 %3971, %v2114_v36   ;;  %v2807_v36 = vld [vmem:[%s5912_s10 + $0x38] sm:$0xff] }
  0xc8   : > { %v4767_v21 = vpop.f32.mrf.mxu1 }
  0xcd   : > { %2154 = vperm.xlu1 %3970, %v2112_v39   ;;  %v2806_v39 = vld [vmem:[%s5912_s10 + $0x30] sm:$0xff] }
  0xce   : > { %v4651_v37 = vpop.f32.mrf.mxu0  ;;  %2159 = vperm.xlu0 %3969, %v2113_v38   ;;  %v802_v20 = vpop.f32.mrf.mxu3  ;;  %v2826_v38 = vld [vmem:[%s5912_s10 + $0xd0] sm:$0xff] }
  0xcf   : > { %2149 = vperm.xlu2 %3971, %v2111_v40   ;;  %v790_v40 = vpop.f32.mrf.mxu2 }
  0xd0   : > { %v4778_v34 = vpop.f32.mrf.mxu1 }
  0xd5   : > { %2299 = vperm.xlu1 %3970, %v2141_v43   ;;  %v880_v43 = vpop.permute.xlu2 %879 }
  0xd6   : > { %v4662_v41 = vpop.f32.mrf.mxu0  ;;  %2144 = vperm.xlu0 %3969, %v2110_v42   ;;  %v805_v32 = vpop.f32.mrf.mxu3 }
  0xd7   : > { %2294 = vperm.xlu2 %3971, %v2140_v44   ;;  %v890_v42 = vpop.permute.xlu1 %889  ;;  %v875_v44 = vpop.permute.xlu0 %874 }
  0xdd   : > { %2284 = vperm.xlu1 %3970, %v2138_v47  }
  0xde   : > { %v4673_v45 = vpop.f32.mrf.mxu0  ;;  %2289 = vperm.xlu0 %3969, %v2139_v46   ;;  %v808_v46 = vpop.f32.mrf.mxu3 }
  0xdf   : > { %2279 = vperm.xlu2 %3971, %v2137_v48  }
  0xe5   : > { %2269 = vperm.xlu1 %3970, %v2135_v51  }
  0xe6   : > { %v4684_v49 = vpop.f32.mrf.mxu0  ;;  %2274 = vperm.xlu0 %3969, %v2136_v50   ;;  %v2825_v50 = vld [vmem:[%s5912_s10 + $0xc8] sm:$0xff] }
  0xe7   : > { %2264 = vperm.xlu2 %3971, %v2134_v52  }
  0xed   : > { %2254 = vperm.xlu1 %3970, %v2132_v55   ;;  %v2824_v55 = vld [vmem:[%s5912_s10 + $0xc0] sm:$0xff] }
  0xee   : > { %v4695_v53 = vpop.f32.mrf.mxu0  ;;  %2259 = vperm.xlu0 %3969, %v2133_v54   ;;  %v2805_v54 = vld [vmem:[%s5912_s10 + $0x28] sm:$0xff] }
  0xef   : > { %2249 = vperm.xlu2 %3971, %v2131_v56   ;;  %v778_v56 = vpop.f32.mrf.mxu1 }
  0xf5   : > { %2239 = vperm.xlu1 %3970, %v2129_v59  }
  0xf6   : > { %v4706_v57 = vpop.f32.mrf.mxu0  ;;  %2244 = vperm.xlu0 %3969, %v2130_v58  }
  0xf7   : > { %2234 = vperm.xlu2 %3971, %v2128_v60  }
  0xfd   : > { %2224 = vperm.xlu1 %3970, %v2126_v0  }
  0xfe   : > { %v4719_v62 = vpop.f32.mrf.mxu0  ;;  %2229 = vperm.xlu0 %3969, %v2127_v63   ;;  %v793_v63 = vpop.f32.mrf.mxu2 }
  0xff   : > { %2917 = vperm.xlu2 %3971, %v2815_v1  }
 0x105   : > { %2907 = vperm.xlu1 %3970, %v2813_v5   ;;  %v870_v5 = vpop.permute.xlu1 %869 }
 0x106   : > { %v4732_v3 = vpop.f32.mrf.mxu0  ;;  %2912 = vperm.xlu0 %3969, %v2814_v4  }
 0x107   : > { %2902 = vperm.xlu2 %3971, %v2812_v6   ;;  %v794_v6 = vadd.f32 %v793_v63, %v4732_v3  ;;  %v2803_v3 = vld [vmem:[%s5912_s10 + $0x18] sm:$0xff]  ;;  %v2818_v63 = vld [vmem:[%s5912_s10 + $0x90] sm:$0xff] }
 0x10d   : > { %2897 = vperm.xlu1 %3970, %v2811_v11  }
 0x10e   : > { %v678_v8 = vpop.f32.mrf.mxu0  ;;  %2997 = vperm.xlu0 %3969, %v2831_v9  }
 0x10f   : > { %2992 = vperm.xlu2 %3971, %v2830_v12   ;;  %v797_v0 = vadd.f32 %v4730_v2, %v678_v8  ;;  %v865_v12 = vpop.permute.xlu2 %864  ;;  %v2823_v2 = vld [vmem:[%s5912_s10 + $0xb8] sm:$0xff] }
 0x111   : > { %v918_v8 = vadd.f32 %v885_v30, %v797_v0  ;;  %v939_v0 = vld [vmem:[%s5907_s5] sm:$0xff] }
 0x115   : > { %2987 = vperm.xlu1 %3970, %v2829_v17  }
 0x116   : > { %v681_v15 = vpop.f32.mrf.mxu0  ;;  %2892 = vperm.xlu0 %3969, %v2810_v16   ;;  %v860_v16 = vpop.permute.xlu0 %859 }
 0x117   : > { %2887 = vperm.xlu2 %3971, %v2809_v18   ;;  %v800_v58 = vadd.f32 %v799_v10, %v681_v15  ;;  %v2804_v10 = vld [vmem:[%s5912_s10 + $0x20] sm:$0xff]  ;;  %v791_v15 = vadd.f32 %v790_v40, %v4719_v62  ;;  %v788_v18 = vadd.f32 %v787_v22, %v4706_v57  ;;  %v785_v62 = vadd.f32 %v4756_v14, %v4695_v53  ;;  %v2822_v57 = vld [vmem:[%s5912_s10 + $0xb0] sm:$0xff] }
 0x118   : > { %v779_v22 = vadd.f32 %v778_v56, %v4673_v45  ;;  %v2802_v53 = vld [vmem:[%s5912_s10 + $0x10] sm:$0xff]  ;;  %v773_v40 = vadd.f32 %v4767_v21, %v4651_v37  ;;  %v2820_v37 = vld [vmem:[%s5912_s10 + $0xa0] sm:$0xff] }
 0x119   : > { %v919_v11 = vadd.f32 %v890_v42, %v800_v58  ;;  %v915_v30 = vadd.f32 %v870_v5, %v788_v18  ;;  %v914_v14 = vadd.f32 %v865_v12, %v785_v62  ;;  %v2838_v5 = vld [vmem:[%s5912_s10 + $0x130] sm:$0xff]  ;;  %v2835_v12 = vld [vmem:[%s5912_s10 + $0x118] sm:$0xff]  ;;  %v3225_v62 = vld [vmem:[%s5914_s12 + $0x28] sm:$0xff] }
 0x11a   : > { %v3222_v18 = vld [vmem:[%s5914_s12 + $0x10] sm:$0xff] }
 0x11b   : > { %v930_v42 = vmax.f32 %v914_v14, 0.0  ;;  %v3234_v14 = vld [vmem:[%s5914_s12 + $0x70] sm:$0xff] }
 0x11d   : > { %2882 = vperm.xlu1 %3970, %v2808_v26   ;;  %v916_v26 = vadd.f32 %v875_v44, %v791_v15  ;;  %v770_v44 = vadd.f32 %v4754_v13, %v4640_v33  ;;  %v2800_v33 = vld [vmem:[%s5912_s10] sm:$0xff]  ;;  %v2833_v15 = vld [vmem:[%s5912_s10 + $0x108] sm:$0xff] }
 0x11e   : > { %v684_v23 = vpop.f32.mrf.mxu0  ;;  %2982 = vperm.xlu0 %3969, %v2828_v24   ;;  %v934_v24 = vmax.f32 %v918_v8, 0.0  ;;  %v3221_v8 = vld [vmem:[%s5914_s12 + $0x8] sm:$0xff] }
 0x11f   : > { %2977 = vperm.xlu2 %3971, %v2827_v27   ;;  %v803_v51 = vadd.f32 %v802_v20, %v684_v23  ;;  %v917_v20 = vadd.f32 %v880_v43, %v794_v6  ;;  %v781_v23 = vpop.f32.mrf.mxu1  ;;  %v940_v6 = vld [vmem:[%s5907_s5 + $0x8] sm:$0xff] }
 0x120   : > { %v782_v27 = vadd.f32 %v781_v23, %v4684_v49  ;;  %v2821_v49 = vld [vmem:[%s5912_s10 + $0xa8] sm:$0xff]  ;;  %v3224_v23 = vld [vmem:[%s5914_s12 + $0x20] sm:$0xff] }
 0x121   : > { %v920_v4 = vadd.f32 %v895_v28, %v803_v51  ;;  %v933_v28 = vmax.f32 %v917_v20, 0.0  ;;  %v3223_v20 = vld [vmem:[%s5914_s12 + $0x18] sm:$0xff] }
 0x122   : > { %v913_v45 = vadd.f32 %v860_v16, %v782_v27  ;;  %v941_v16 = vld [vmem:[%s5907_s5 + $0x10] sm:$0xff]  ;;  %v3227_v27 = vld [vmem:[%s5914_s12 + $0x38] sm:$0xff] }
 0x123   : > { %v936_v17 = vmax.f32 %v920_v4, 0.0  ;;  %v2839_v4 = vld [vmem:[%s5912_s10 + $0x138] sm:$0xff] }
 0x125   : > { %2972 = vperm.xlu1 %3970, %v2826_v38   ;;  %v776_v38 = vadd.f32 %v4778_v34, %v4662_v41  ;;  %v2801_v41 = vld [vmem:[%s5912_s10 + $0x8] sm:$0xff]  ;;  %v767_v34 = vadd.f32 %v4743_v7, %v4629_v29  ;;  %v764_v29 = vadd.f32 %v4717_v61, %v4618_v25 }
 0x126   : > { %v687_v35 = vpop.f32.mrf.mxu0  ;;  %2877 = vperm.xlu0 %3969, %v2807_v36   ;;  %v845_v36 = vpop.permute.xlu0 %844  ;;  %v2817_v25 = vld [vmem:[%s5912_s10 + $0x88] sm:$0xff] }
 0x127   : > { %2872 = vperm.xlu2 %3971, %v2806_v39   ;;  %v806_v47 = vadd.f32 %v805_v32, %v687_v35  ;;  %v932_v32 = vmax.f32 %v916_v26, 0.0  ;;  %v850_v35 = vpop.permute.xlu2 %849  ;;  %v931_v39 = vmax.f32 %v915_v30, 0.0  ;;  %v910_v13 = vadd.f32 %v845_v36, %v773_v40  ;;  %v3226_v26 = vld [vmem:[%s5914_s12 + $0x30] sm:$0xff]  ;;  %v3235_v36 = vld [vmem:[%s5914_s12 + $0x78] sm:$0xff] }
 0x128   : > { %v945_v30 = vld [vmem:[%s5907_s5 + $0x30] sm:$0xff] }
 0x129   : > { %v921_v60 = vadd.f32 %v900_v31, %v806_v47  ;;  %v855_v31 = vpop.permute.xlu1 %854  ;;  %v911_v47 = vadd.f32 %v850_v35, %v776_v38  ;;  %v926_v7 = vmax.f32 %v910_v13, 0.0  ;;  %v947_v35 = vld [vmem:[%s5907_s5 + $0x40] sm:$0xff]  ;;  %v3238_v40 = vld [vmem:[%s5914_s12 + $0x90] sm:$0xff] }
 0x12a   : > { %v912_v43 = vadd.f32 %v855_v31, %v779_v22  ;;  %v3229_v31 = vld [vmem:[%s5914_s12 + $0x48] sm:$0xff]  ;;  %v3231_v22 = vld [vmem:[%s5914_s12 + $0x58] sm:$0xff]  ;;  %v3236_v38 = vld [vmem:[%s5914_s12 + $0x80] sm:$0xff] }
 0x12b   : > { %v937_v9 = vmax.f32 %v921_v60, 0.0 }
 0x12d   : > { %2867 = vperm.xlu1 %3970, %v2805_v54  }
 0x12e   : > { %v690_v48 = vpop.f32.mrf.mxu0  ;;  %2967 = vperm.xlu0 %3969, %v2825_v50   ;;  %v927_v50 = vmax.f32 %v911_v47, 0.0  ;;  %v830_v54 = vpop.permute.xlu0 %829  ;;  %v952_v47 = vld [vmem:[%s5907_s5 + $0x68] sm:$0xff] }
 0x12f   : > { %v809_v52 = vadd.f32 %v808_v46, %v690_v48  ;;  %2962 = vperm.xlu2 %3971, %v2824_v55   ;;  %v929_v46 = vmax.f32 %v913_v45, 0.0  ;;  %v928_v48 = vmax.f32 %v912_v43, 0.0  ;;  %v907_v56 = vadd.f32 %v830_v54, %v764_v29  ;;  %v948_v45 = vld [vmem:[%s5907_s5 + $0x48] sm:$0xff]  ;;  %v949_v43 = vld [vmem:[%s5907_s5 + $0x50] sm:$0xff]  ;;  %v959_v54 = vld [vmem:[%s5907_s5 + $0xa0] sm:$0xff] }
 0x131   : > { %v922_v59 = vadd.f32 %v905_v19, %v809_v52  ;;  %v935_v19 = vmax.f32 %v919_v11, 0.0  ;;  %v840_v21 = vpop.permute.xlu1 %839  ;;  %v835_v52 = vpop.permute.xlu2 %834  ;;  %v923_v61 = vmax.f32 %v907_v56, 0.0  ;;  %v2836_v11 = vld [vmem:[%s5912_s10 + $0x120] sm:$0xff]  ;;  %v961_v56 = vld [vmem:[%s5907_s5 + $0xb0] sm:$0xff] }
 0x132   : > { %v909_v51 = vadd.f32 %v840_v21, %v770_v44  ;;  %v908_v55 = vadd.f32 %v835_v52, %v767_v34  ;;  %v950_v44 = vld [vmem:[%s5907_s5 + $0x58] sm:$0xff]  ;;  %v957_v21 = vld [vmem:[%s5907_s5 + $0x90] sm:$0xff] }
 0x133   : > { %v938_v1 = vmax.f32 %v922_v59, 0.0  ;;  %v2819_v59 = vld [vmem:[%s5912_s10 + $0x98] sm:$0xff] }
 0x134   : > { %v925_v58 = vmax.f32 %v909_v51, 0.0  ;;  %v924_v60 = vmax.f32 %v908_v55, 0.0  ;;  %v954_v34 = vld [vmem:[%s5907_s5 + $0x78] sm:$0xff] }
 0x135   : > { %1011 = vmatpush.msrb.mxu2 %v938_v1  ;;  %2957 = vperm.xlu1 %3970, %v2823_v2   ;;  %v2816_v1 = vld [vmem:[%s5912_s10 + $0x80] sm:$0xff]  ;;  %v942_v2 = vld [vmem:[%s5907_s5 + $0x18] sm:$0xff] }
 0x136   : > { %2862 = vperm.xlu0 %3969, %v2804_v10   ;;  %v2834_v10 = vld [vmem:[%s5912_s10 + $0x110] sm:$0xff]  ;;  %v958_v51 = vld [vmem:[%s5907_s5 + $0x98] sm:$0xff] }
 0x137   : > { %1012 = vmatpush.msrb.mxu2 %v937_v9  ;;  %2857 = vperm.xlu2 %3971, %v2803_v3   ;;  %v2837_v9 = vld [vmem:[%s5912_s10 + $0x128] sm:$0xff]  ;;  %v3220_v3 = vld [vmem:[%s5914_s12] sm:$0xff] }
 0x139   : > { %1013 = vmatpush.msrb.mxu2 %v936_v17  ;;  %v2832_v17 = vld [vmem:[%s5912_s10 + $0x100] sm:$0xff] }
 0x13b   : > { %1014 = vmatpush.msrb.mxu2 %v935_v19  ;;  %v943_v19 = vld [vmem:[%s5907_s5 + $0x20] sm:$0xff] }
 0x13d   : > { %1015 = vmatpush.msrb.mxu2 %v934_v24  ;;  %2852 = vperm.xlu1 %3970, %v2802_v53   ;;  %v944_v24 = vld [vmem:[%s5907_s5 + $0x28] sm:$0xff]  ;;  %v3232_v53 = vld [vmem:[%s5914_s12 + $0x60] sm:$0xff] }
 0x13e   : > { %2952 = vperm.xlu0 %3969, %v2822_v57   ;;  %v3230_v57 = vld [vmem:[%s5914_s12 + $0x50] sm:$0xff] }
 0x13f   : > { %1016 = vmatpush.msrb.mxu2 %v933_v28  ;;  %2947 = vperm.xlu2 %3971, %v2821_v49   ;;  %v3228_v28 = vld [vmem:[%s5914_s12 + $0x40] sm:$0xff]  ;;  %v3233_v49 = vld [vmem:[%s5914_s12 + $0x68] sm:$0xff] }
 0x141   : > { %1017 = vmatpush.msrb.mxu2 %v932_v32  ;;  %v946_v32 = vld [vmem:[%s5907_s5 + $0x38] sm:$0xff] }
 0x143   : > { %1018 = vmatpush.msrb.mxu2 %v931_v39  ;;  %v3237_v39 = vld [vmem:[%s5914_s12 + $0x88] sm:$0xff] }
 0x145   : > { %1019 = vmatpush.msrb.mxu2 %v930_v42  ;;  %2942 = vperm.xlu1 %3970, %v2820_v37   ;;  %v3239_v42 = vld [vmem:[%s5914_s12 + $0x98] sm:$0xff] }
 0x146   : > { %2847 = vperm.xlu0 %3969, %v2801_v41   ;;  %v953_v41 = vld [vmem:[%s5907_s5 + $0x70] sm:$0xff] }
 0x147   : > { %1020 = vmatpush.msrb.mxu2 %v929_v46  ;;  %2842 = vperm.xlu2 %3971, %v2800_v33   ;;  %v951_v46 = vld [vmem:[%s5907_s5 + $0x60] sm:$0xff]  ;;  %v956_v33 = vld [vmem:[%s5907_s5 + $0x88] sm:$0xff] }
 0x149   : > { %1021 = vmatpush.msrb.mxu2 %v928_v48  ;;  %v955_v48 = vld [vmem:[%s5907_s5 + $0x80] sm:$0xff] }
 0x14b   : > { %1022 = vmatpush.msrb.mxu2 %v927_v50 }
 0x14d   : > { %1023 = vmatpush.msrb.mxu2 %v926_v7  ;;  %2932 = vperm.xlu1 %3970, %v2818_v63   ;;  %v960_v7 = vld [vmem:[%s5907_s5 + $0xa8] sm:$0xff]  ;;  %v1354_v63 = vpop.permute.xlu1 %1353 }
 0x14e   : > { %2937 = vperm.xlu0 %3969, %v2819_v59   ;;  %v962_v59 = vld [vmem:[%s5907_s5 + $0xb8] sm:$0xff] }
 0x14f   : > { %1024 = vmatpush.msrb.mxu2 %v925_v58  ;;  %2927 = vperm.xlu2 %3971, %v2817_v25   ;;  %v963_v25 = vld [vmem:[%s5907_s5 + $0xc0] sm:$0xff] }
 0x151   : > { %1025 = vmatpush.msrb.mxu2 %v924_v60 }
 0x153   : > { %1026 = vmatpush.msrb.mxu2 %v923_v61 }
 0x154   : > { %1027 = vmatmul.f32.vlgmr.msrb.gmra.mxu2 %v939_v0  ;;  %v1349_v0 = vpop.permute.xlu2 %1348 }
 0x155   : > { %3037 = vperm.xlu1 %3970, %v2839_v4   ;;  %v1339_v4 = vpop.permute.xlu1 %1338 }
 0x156   : > { %2922 = vperm.xlu0 %3969, %v2816_v1   ;;  %v964_v1 = vld [vmem:[%s5907_s5 + $0xc8] sm:$0xff] }
 0x157   : > { %3032 = vperm.xlu2 %3971, %v2838_v5  }
 0x15c   : > { %1030 = vmatmul.f32.gmra.mxu2 %v940_v6  ;;  %v1344_v6 = vpop.permute.xlu0 %1343 }
 0x15d   : > { %3022 = vperm.xlu1 %3970, %v2836_v11   ;;  %v5036_v11 = vpop.permute.xlu2 %1433 }
 0x15e   : > { %3027 = vperm.xlu0 %3969, %v2837_v9   ;;  %v965_v9 = vld [vmem:[%s5907_s5 + $0xd0] sm:$0xff] }
 0x15f   : > { %3017 = vperm.xlu2 %3971, %v2835_v12   ;;  %v5038_v12 = vpop.permute.xlu1 %1428 }
 0x164   : > { %1033 = vmatmul.f32.gmra.mxu2 %v941_v16 }
 0x165   : > { %3007 = vperm.xlu1 %3970, %v2833_v15   ;;  %v1334_v15 = vpop.permute.xlu0 %1333 }
 0x166   : > { %3012 = vperm.xlu0 %3969, %v2834_v10   ;;  %v966_v10 = vld [vmem:[%s5907_s5 + $0xd8] sm:$0xff] }
 0x167   : > { %3002 = vperm.xlu2 %3971, %v2832_v17   ;;  %v1329_v17 = vpop.permute.xlu2 %1328 }
 0x16c   : > { %1036 = vmatmul.f32.gmra.mxu2 %v942_v2  ;;  %v1324_v2 = vpop.permute.xlu1 %1323 }
 0x16d   : > { %3247 = vperm.xlu1 %3970, %v3221_v8   ;;  %v967_v8 = vld [vmem:[%s5907_s5 + $0xe0] sm:$0xff] }
 0x16e   : > { %3242 = vperm.xlu0 %3969, %v3220_v3  }
 0x16f   : > { %3252 = vperm.xlu2 %3971, %v3222_v18   ;;  %v5046_v18 = vpop.permute.xlu0 %1423 }
 0x174   : > { %1039 = vmatmul.f32.gmra.mxu2 %v943_v19  ;;  %v5048_v19 = vpop.permute.xlu2 %1418 }
 0x175   : > { %3262 = vperm.xlu1 %3970, %v3224_v23   ;;  %v5050_v23 = vpop.permute.xlu1 %1413 }
 0x176   : > { %3257 = vperm.xlu0 %3969, %v3223_v20  }
 0x177   : > { %3267 = vperm.xlu2 %3971, %v3225_v62   ;;  %v968_v62 = vld [vmem:[%s5907_s5 + $0xe8] sm:$0xff] }
 0x17c   : > { %1042 = vmatmul.f32.gmra.mxu2 %v944_v24  ;;  %v1319_v24 = vpop.permute.xlu0 %1318 }
 0x17d   : > { %3277 = vperm.xlu1 %3970, %v3227_v27   ;;  %v1314_v27 = vpop.permute.xlu2 %1313 }
 0x17e   : > { %3272 = vperm.xlu0 %3969, %v3226_v26  }
 0x17f   : > { %3282 = vperm.xlu2 %3971, %v3228_v28   ;;  %v969_v28 = vld [vmem:[%s5907_s5 + $0xf0] sm:$0xff] }
 0x184   : > { %1045 = vmatmul.f32.gmra.mxu2 %v945_v30  ;;  %v1309_v30 = vpop.permute.xlu1 %1308 }
 0x185   : > { %3292 = vperm.xlu1 %3970, %v3230_v57   ;;  %v5058_v57 = vpop.permute.xlu0 %1408 }
 0x186   : > { %3287 = vperm.xlu0 %3969, %v3229_v31  }
 0x187   : > { %3297 = vperm.xlu2 %3971, %v3231_v22   ;;  %v970_v22 = vld [vmem:[%s5907_s5 + $0xf8] sm:$0xff] }
 0x18c   : > { %1048 = vmatmul.f32.gmra.mxu2 %v946_v32  ;;  %v5063_v32 = vpop.permute.xlu2 %1403 }
 0x18d   : > { %3307 = vperm.xlu1 %3970, %v3233_v49  }
 0x18e   : > { %3302 = vperm.xlu0 %3969, %v3232_v53   ;;  %v5065_v53 = vpop.permute.xlu1 %1398 }
 0x18f   : > { %3312 = vperm.xlu2 %3971, %v3234_v14  }
 0x194   : > { %1051 = vmatmul.f32.gmra.mxu2 %v947_v35 }
 0x195   : > { %3322 = vperm.xlu1 %3970, %v3236_v38  }
 0x196   : > { %3317 = vperm.xlu0 %3969, %v3235_v36  }
 0x197   : > { %3327 = vperm.xlu2 %3971, %v3237_v39   ;;  %v1304_v39 = vpop.permute.xlu0 %1303 }
 0x19c   : > { %1054 = vmatmul.f32.gmra.mxu2 %v948_v45 }
 0x19d   : > { %3337 = vperm.xlu1 %3970, %v3239_v42   ;;  %v1299_v42 = vpop.permute.xlu2 %1298 }
 0x19e   : > { %3332 = vperm.xlu0 %3969, %v3238_v40  }
 0x1a4   : > { %1057 = vmatmul.f32.gmra.mxu2 %v949_v43 }
 0x1ac   : > { %1060 = vmatmul.f32.gmra.mxu2 %v950_v44 }
 0x1b4   : > { %1063 = vmatmul.f32.gmra.mxu2 %v951_v46  ;;  %v1294_v46 = vpop.permute.xlu1 %1293 }
 0x1bc   : > { %1066 = vmatmul.f32.gmra.mxu2 %v952_v47 }
 0x1c4   : > { %1069 = vmatmul.f32.gmra.mxu2 %v953_v41 }
 0x1cc   : > { %1072 = vmatmul.f32.gmra.mxu2 %v954_v34 }
 0x1d4   : > { %1075 = vmatmul.f32.gmra.mxu2 %v955_v48 }
 0x1d7   : > { %v4990_v37 = vpop.f32.mrf.mxu2 }
 0x1dc   : > { %1078 = vmatmul.f32.gmra.mxu2 %v956_v33 }
 0x1df   : > { %v4995_v13 = vpop.f32.mrf.mxu2 }
 0x1e4   : > { %1081 = vmatmul.f32.gmra.mxu2 %v957_v21 }
 0x1e7   : > { %v5000_v50 = vpop.f32.mrf.mxu2 }
 0x1ec   : > { %1084 = vmatmul.f32.gmra.mxu2 %v958_v51 }
 0x1ef   : > { %v5005_v52 = vpop.f32.mrf.mxu2 }
 0x1f4   : > { %1087 = vmatmul.f32.gmra.mxu2 %v959_v54  ;;  %v5069_v54 = vpop.permute.xlu0 %1393 }
 0x1f7   : > { %v5010_v29 = vpop.f32.mrf.mxu2 }
 0x1fc   : > { %1090 = vmatmul.f32.gmra.mxu2 %v960_v7 }
 0x1ff   : > { %v5015_v55 = vpop.f32.mrf.mxu2 }
 0x204   : > { %1093 = vmatmul.f32.gmra.mxu2 %v961_v56 }
 0x207   : > { %v5020_v58 = vpop.f32.mrf.mxu2 }
 0x20c   : > { %1096 = vmatmul.f32.gmra.mxu2 %v962_v59  ;;  %v5072_v59 = vpop.permute.xlu2 %1388 }
 0x20f   : > { %v5025_v60 = vpop.f32.mrf.mxu2 }
 0x210   : > { %v1443_v7 = vadd.f32 %v1314_v27, %v5025_v60 }
 0x214   : > { %1099 = vmatmul.f32.gmra.mxu2 %v963_v25  ;;  %v1442_v25 = vadd.f32 %v1309_v30, %v5020_v58 }
 0x216   : > { %v1474_v60 = vmax.f32 %v1442_v25, 0.0  ;;  %v1506_v25 = vld [vmem:[#allocation2 + $0x30] sm:$0xff] }
 0x217   : > { %v1052_v61 = vpop.f32.mrf.mxu2 }
 0x218   : > { %v1444_v21 = vadd.f32 %v1319_v24, %v1052_v61  ;;  %v1441_v61 = vadd.f32 %v1304_v39, %v5015_v55 }
 0x21c   : > { %1102 = vmatmul.f32.gmra.mxu2 %v964_v1  ;;  %v5077_v1 = vpop.permute.xlu1 %1383 }
 0x21f   : > { %v1055_v5 = vpop.f32.mrf.mxu2 }
 0x220   : > { %v1445_v48 = vadd.f32 %v1324_v2, %v1055_v5  ;;  %v1440_v5 = vadd.f32 %v1299_v42, %v5010_v29 }
 0x222   : > { %v1477_v56 = vmax.f32 %v1445_v48, 0.0 }
 0x224   : > { %1105 = vmatmul.f32.gmra.mxu2 %v965_v9  ;;  %v1473_v9 = vmax.f32 %v1441_v61, 0.0 }
 0x227   : > { %v1058_v16 = vpop.f32.mrf.mxu2 }
 0x228   : > { %v1446_v41 = vadd.f32 %v1329_v17, %v1058_v16  ;;  %v1289_v16 = vpop.permute.xlu0 %1288  ;;  %v1284_v17 = vpop.permute.xlu2 %1283 }
 0x229   : > { %v1438_v58 = vadd.f32 %v1289_v16, %v5000_v50  ;;  %v1437_v55 = vadd.f32 %v1284_v17, %v4995_v13  ;;  %v1508_v16 = vld [vmem:[#allocation2 + $0x40] sm:$0xff] }
 0x22a   : > { %v1478_v51 = vmax.f32 %v1446_v41, 0.0 }
 0x22c   : > { %1108 = vmatmul.f32.gmra.mxu2 %v966_v10 }
 0x22f   : > { %v1061_v3 = vpop.f32.mrf.mxu2 }
 0x230   : > { %v1447_v43 = vadd.f32 %v1334_v15, %v1061_v3  ;;  %v1472_v15 = vmax.f32 %v1440_v5, 0.0  ;;  %v1279_v3 = vpop.permute.xlu1 %1278 }
 0x231   : > { %v1436_v29 = vadd.f32 %v1279_v3, %v4990_v37  ;;  %v1500_v37 = vld [vmem:[#allocation2] sm:$0xff]  ;;  %v1503_v3 = vld [vmem:[#allocation2 + $0x18] sm:$0xff] }
 0x232   : > { %v1479_v33 = vmax.f32 %v1447_v43, 0.0 }
 0x234   : > { %1111 = vmatmul.f32.gmra.mxu2 %v967_v8  ;;  %v1470_v8 = vmax.f32 %v1438_v58, 0.0 }
 0x237   : > { %v1064_v20 = vpop.f32.mrf.mxu2 }
 0x238   : > { %v1448_v45 = vadd.f32 %v1339_v4, %v1064_v20  ;;  %v1475_v4 = vmax.f32 %v1443_v7, 0.0  ;;  %v1374_v7 = vpop.permute.xlu2 %1373 }
 0x23a   : > { %v1480_v34 = vmax.f32 %v1448_v45, 0.0 }
 0x23c   : > { %1114 = vmatmul.f32.gmra.mxu2 %v968_v62  ;;  %v1468_v62 = vmax.f32 %v1436_v29, 0.0  ;;  %v1505_v29 = vld [vmem:[#allocation2 + $0x28] sm:$0xff] }
 0x23f   : > { %v1067_v26 = vpop.f32.mrf.mxu2 }
 0x240   : > { %v1449_v36 = vadd.f32 %v1344_v6, %v1067_v26  ;;  %v1439_v6 = vadd.f32 %v1294_v46, %v5005_v52  ;;  %v1469_v52 = vmax.f32 %v1437_v55, 0.0 }
 0x242   : > { %v1481_v44 = vmax.f32 %v1449_v36, 0.0  ;;  %v1471_v2 = vmax.f32 %v1439_v6, 0.0 }
 0x244   : > { %1117 = vmatmul.f32.gmra.mxu2 %v969_v28 }
 0x247   : > { %v1070_v31 = vpop.f32.mrf.mxu2 }
 0x248   : > { %v1450_v14 = vadd.f32 %v1349_v0, %v1070_v31  ;;  %v1476_v0 = vmax.f32 %v1444_v21, 0.0 }
 0x24a   : > { %v1482_v40 = vmax.f32 %v1450_v14, 0.0 }
 0x24c   : > { %1120 = vmatmul.f32.gmra.mxu2 %v970_v22 }
 0x24f   : > { %v1073_v49 = vpop.f32.mrf.mxu2 }
 0x250   : > { %v1451_v35 = vadd.f32 %v1354_v63, %v1073_v49 }
 0x252   : > { %v1483_v38 = vmax.f32 %v1451_v35, 0.0 }
 0x254   : > { %1644 = vmatpush.msrb.mxu3 %v1483_v38 }
 0x256   : > { %1645 = vmatpush.msrb.mxu3 %v1482_v40  ;;  %v1502_v40 = vld [vmem:[#allocation2 + $0x10] sm:$0xff] }
 0x257   : > { %v5067_v47 = vpop.f32.mrf.mxu2 }
 0x258   : > { %1646 = vmatpush.msrb.mxu3 %v1481_v44 }
 0x25a   : > { %1647 = vmatpush.msrb.mxu3 %v1480_v34 }
 0x25c   : > { %1648 = vmatpush.msrb.mxu3 %v1479_v33  ;;  %v1379_v33 = vpop.permute.xlu0 %1378 }
 0x25e   : > { %1649 = vmatpush.msrb.mxu3 %v1478_v51 }
 0x25f   : > { %v5074_v63 = vpop.f32.mrf.mxu2 }
 0x260   : > { %1650 = vmatpush.msrb.mxu3 %v1477_v56 }
 0x262   : > { %1651 = vmatpush.msrb.mxu3 %v1476_v0 }
 0x264   : > { %1652 = vmatpush.msrb.mxu3 %v1475_v4 }
 0x266   : > { %1653 = vmatpush.msrb.mxu3 %v1474_v60  ;;  %v1364_v60 = vpop.permute.xlu1 %1363 }
 0x267   : > { %v5082_v10 = vpop.f32.mrf.mxu2  ;;  %v1453_v6 = vadd.f32 %v1364_v60, %v5074_v63  ;;  %v1512_v63 = vld [vmem:[#allocation2 + $0x60] sm:$0xff]  ;;  %v1550_v60 = vld [vmem:[#allocation2 + $0x190] sm:$0xff] }
 0x268   : > { %1654 = vmatpush.msrb.mxu3 %v1473_v9  ;;  %v1359_v9 = vpop.permute.xlu2 %1358 }
 0x269   : > { %v1452_v58 = vadd.f32 %v1359_v9, %v5067_v47  ;;  %v1485_v17 = vmax.f32 %v1453_v6, 0.0  ;;  %v1507_v47 = vld [vmem:[#allocation2 + $0x38] sm:$0xff] }
 0x26a   : > { %1655 = vmatpush.msrb.mxu3 %v1472_v15 }
 0x26b   : > { %v1484_v55 = vmax.f32 %v1452_v58, 0.0 }
 0x26c   : > { %1656 = vmatpush.msrb.mxu3 %v1471_v2  ;;  %v1501_v2 = vld [vmem:[#allocation2 + $0x8] sm:$0xff] }
 0x26e   : > { %1657 = vmatpush.msrb.mxu3 %v1470_v8  ;;  %v1514_v8 = vld [vmem:[#allocation2 + $0x70] sm:$0xff] }
 0x26f   : > { %v1085_v20 = vpop.f32.mrf.mxu2 }
 0x270   : > { %1658 = vmatpush.msrb.mxu3 %v1469_v52  ;;  %v1455_v61 = vadd.f32 %v1374_v7, %v1085_v20  ;;  %v1516_v52 = vld [vmem:[#allocation2 + $0x80] sm:$0xff]  ;;  %v1509_v20 = vld [vmem:[#allocation2 + $0x48] sm:$0xff] }
 0x272   : > { %1659 = vmatpush.msrb.mxu3 %v1468_v62  ;;  %v1518_v62 = vld [vmem:[#allocation2 + $0x90] sm:$0xff] }
 0x273   : > { %1660 = vmatmul.f32.vlgmr.msrb.gmra.mxu3 %v1500_v37  ;;  %v1530_v37 = vld [vmem:[#allocation2 + $0xf0] sm:$0xff] }
 0x277   : > { %v1088_v24 = vpop.f32.mrf.mxu2 }
 0x278   : > { %v1456_v0 = vadd.f32 %v1379_v33, %v1088_v24  ;;  %v1511_v24 = vld [vmem:[#allocation2 + $0x58] sm:$0xff]  ;;  %v1542_v33 = vld [vmem:[#allocation2 + $0x150] sm:$0xff] }
 0x27b   : > { %1663 = vmatmul.f32.gmra.mxu3 %v1502_v40  ;;  %v1527_v40 = vld [vmem:[#allocation2 + $0xd8] sm:$0xff] }
 0x27f   : > { %v1091_v50 = vpop.f32.mrf.mxu2 }
 0x287   : > { %v1094_v26 = vpop.f32.mrf.mxu2 }
 0x288   : > { %v1458_v51 = vadd.f32 %v5072_v59, %v1094_v26  ;;  %v1488_v59 = vmax.f32 %v1456_v0, 0.0  ;;  %v1513_v26 = vld [vmem:[#allocation2 + $0x68] sm:$0xff] }
 0x28f   : > { %v1097_v27 = vpop.f32.mrf.mxu2 }
 0x290   : > { %v1459_v21 = vadd.f32 %v5069_v54, %v1097_v27  ;;  %v1369_v54 = vpop.permute.xlu0 %1368  ;;  %v1522_v27 = vld [vmem:[#allocation2 + $0xb0] sm:$0xff] }
 0x291   : > { %v1454_v5 = vadd.f32 %v1369_v54, %v5082_v10  ;;  %v1510_v10 = vld [vmem:[#allocation2 + $0x50] sm:$0xff] }
 0x292   : > { %v1491_v56 = vmax.f32 %v1459_v21, 0.0 }
 0x293   : > { %v1486_v15 = vmax.f32 %v1454_v5, 0.0  ;;  %v1541_v5 = vld [vmem:[#allocation2 + $0x148] sm:$0xff] }
 0x297   : > { %v1100_v28 = vpop.f32.mrf.mxu2 }
 0x298   : > { %v1460_v48 = vadd.f32 %v5065_v53, %v1100_v28  ;;  %v1490_v53 = vmax.f32 %v1458_v51, 0.0  ;;  %v1515_v28 = vld [vmem:[#allocation2 + $0x78] sm:$0xff] }
 0x29f   : > { %v1103_v30 = vpop.f32.mrf.mxu2 }
 0x2a7   : > { %v1106_v13 = vpop.f32.mrf.mxu2 }
 0x2a8   : > { %v1462_v41 = vadd.f32 %v5058_v57, %v1106_v13  ;;  %v1492_v57 = vmax.f32 %v1460_v48, 0.0  ;;  %v1517_v13 = vld [vmem:[#allocation2 + $0x88] sm:$0xff] }
 0x2a9   : > { %v1533_v48 = vld [vmem:[#allocation2 + $0x108] sm:$0xff] }
 0x2af   : > { %v1109_v31 = vpop.f32.mrf.mxu2 }
 0x2b0   : > { %v1463_v44 = vadd.f32 %v5050_v23, %v1109_v31  ;;  %v1526_v31 = vld [vmem:[#allocation2 + $0xd0] sm:$0xff] }
 0x2b7   : > { %v1112_v22 = vpop.f32.mrf.mxu2 }
 0x2b8   : > { %v1464_v42 = vadd.f32 %v5048_v19, %v1112_v22  ;;  %v1494_v19 = vmax.f32 %v1462_v41, 0.0  ;;  %v1519_v22 = vld [vmem:[#allocation2 + $0x98] sm:$0xff]  ;;  %v1538_v41 = vld [vmem:[#allocation2 + $0x130] sm:$0xff] }
 0x2ba   : > { %v1496_v34 = vmax.f32 %v1464_v42, 0.0 }
 0x2bf   : > { %v1115_v49 = vpop.f32.mrf.mxu2 }
 0x2c0   : > { %v1465_v39 = vadd.f32 %v5046_v18, %v1115_v49  ;;  %v1504_v18 = vld [vmem:[#allocation2 + $0x20] sm:$0xff] }
 0x2c1   : > { %1666 = vmatmul.f32.gmra.mxu3 %v1504_v18  ;;  %v1528_v49 = vld [vmem:[#allocation2 + $0xe0] sm:$0xff] }
 0x2c2   : > { %v1497_v46 = vmax.f32 %v1465_v39, 0.0 }
 0x2c7   : > { %v1118_v14 = vpop.f32.mrf.mxu2 }
 0x2c8   : > { %v1466_v36 = vadd.f32 %v5038_v12, %v1118_v14  ;;  %v1461_v12 = vadd.f32 %v5063_v32, %v1103_v30  ;;  %v1457_v32 = vadd.f32 %v5077_v1, %v1091_v50  ;;  %v1487_v1 = vmax.f32 %v1455_v61, 0.0  ;;  %v1520_v50 = vld [vmem:[#allocation2 + $0xa0] sm:$0xff]  ;;  %v1521_v14 = vld [vmem:[#allocation2 + $0xa8] sm:$0xff] }
 0x2c9   : > { %1669 = vmatmul.f32.gmra.mxu3 %v1506_v25  ;;  %v1524_v30 = vld [vmem:[#allocation2 + $0xc0] sm:$0xff]  ;;  %v1546_v25 = vld [vmem:[#allocation2 + $0x170] sm:$0xff] }
 0x2ca   : > { %v1498_v43 = vmax.f32 %v1466_v36, 0.0  ;;  %v1493_v23 = vmax.f32 %v1461_v12, 0.0  ;;  %v1489_v4 = vmax.f32 %v1457_v32, 0.0  ;;  %v1532_v36 = vld [vmem:[#allocation2 + $0x100] sm:$0xff]  ;;  %v1537_v32 = vld [vmem:[#allocation2 + $0x128] sm:$0xff] }
 0x2cf   : > { %v1121_v35 = vpop.f32.mrf.mxu2 }
 0x2d0   : > { %v1467_v38 = vadd.f32 %v5036_v11, %v1121_v35  ;;  %v1495_v11 = vmax.f32 %v1463_v44, 0.0  ;;  %v1523_v35 = vld [vmem:[#allocation2 + $0xb8] sm:$0xff]  ;;  %v1529_v44 = vld [vmem:[#allocation2 + $0xe8] sm:$0xff] }
 0x2d1   : > { %1672 = vmatmul.f32.gmra.mxu3 %v1508_v16  ;;  %v1552_v16 = vld [vmem:[#allocation2 + $0x1a0] sm:$0xff] }
 0x2d2   : > { %v1499_v45 = vmax.f32 %v1467_v38, 0.0  ;;  %v1525_v38 = vld [vmem:[#allocation2 + $0xc8] sm:$0xff] }
 0x2d4   : > { %1877 = vmatpush.msrb.mxu1 %v1499_v45  ;;  %v1534_v45 = vld [vmem:[#allocation2 + $0x110] sm:$0xff] }
 0x2d6   : > { %1878 = vmatpush.msrb.mxu1 %v1498_v43  ;;  %v1536_v43 = vld [vmem:[#allocation2 + $0x120] sm:$0xff] }
 0x2d8   : > { %1879 = vmatpush.msrb.mxu1 %v1497_v46 }
 0x2d9   : > { %1675 = vmatmul.f32.gmra.mxu3 %v1510_v10  ;;  %v1547_v10 = vld [vmem:[#allocation2 + $0x178] sm:$0xff] }
 0x2da   : > { %1880 = vmatpush.msrb.mxu1 %v1496_v34  ;;  %v1531_v34 = vld [vmem:[#allocation2 + $0xf8] sm:$0xff] }
 0x2dc   : > { %1881 = vmatpush.msrb.mxu1 %v1495_v11  ;;  %v1540_v11 = vld [vmem:[#allocation2 + $0x140] sm:$0xff] }
 0x2de   : > { %1882 = vmatpush.msrb.mxu1 %v1494_v19 }
 0x2e0   : > { %1883 = vmatpush.msrb.mxu1 %v1493_v23  ;;  %v1535_v23 = vld [vmem:[#allocation2 + $0x118] sm:$0xff] }
 0x2e1   : > { %1678 = vmatmul.f32.gmra.mxu3 %v1512_v63  ;;  %v1556_v63 = vld [vmem:[#allocation2 + $0x1c0] sm:$0xff] }
 0x2e2   : > { %1884 = vmatpush.msrb.mxu1 %v1492_v57  ;;  %v1544_v57 = vld [vmem:[#allocation2 + $0x160] sm:$0xff] }
 0x2e4   : > { %1885 = vmatpush.msrb.mxu1 %v1491_v56 }
 0x2e6   : > { %1886 = vmatpush.msrb.mxu1 %v1490_v53  ;;  %v1539_v53 = vld [vmem:[#allocation2 + $0x138] sm:$0xff] }
 0x2e8   : > { %1887 = vmatpush.msrb.mxu1 %v1489_v4  ;;  %v1548_v4 = vld [vmem:[#allocation2 + $0x180] sm:$0xff] }
 0x2e9   : > { %1681 = vmatmul.f32.gmra.mxu3 %v1514_v8  ;;  %v1549_v8 = vld [vmem:[#allocation2 + $0x188] sm:$0xff] }
 0x2ea   : > { %1888 = vmatpush.msrb.mxu1 %v1488_v59 }
 0x2ec   : > { %1889 = vmatpush.msrb.mxu1 %v1487_v1  ;;  %v1543_v1 = vld [vmem:[#allocation2 + $0x158] sm:$0xff] }
 0x2ee   : > { %1890 = vmatpush.msrb.mxu1 %v1486_v15  ;;  %v1545_v15 = vld [vmem:[#allocation2 + $0x168] sm:$0xff] }
 0x2f0   : > { %1891 = vmatpush.msrb.mxu1 %v1485_v17 }
 0x2f1   : > { %1684 = vmatmul.f32.gmra.mxu3 %v1516_v52  ;;  %v1558_v52 = vld [vmem:[#allocation2 + $0x1d0] sm:$0xff] }
 0x2f2   : > { %1892 = vmatpush.msrb.mxu1 %v1484_v55  ;;  %v1554_v55 = vld [vmem:[#allocation2 + $0x1b0] sm:$0xff] }
 0x2f3   : > { %1893 = vmatmul.f32.vlgmr.msrb.gmra.mxu1 %v1501_v2 }
 0x2f6   : > { %v5101_v39 = vpop.f32.mrf.mxu3 }
 0x2f9   : > { %1687 = vmatmul.f32.gmra.mxu3 %v1518_v62  ;;  %v1551_v62 = vld [vmem:[#allocation2 + $0x198] sm:$0xff] }
 0x2fb   : > { %1896 = vmatmul.f32.gmra.mxu1 %v1503_v3 }
 0x2fe   : > { %v5103_v42 = vpop.f32.mrf.mxu3 }
 0x301   : > { %1690 = vmatmul.f32.gmra.mxu3 %v1520_v50  ;;  %v1560_v50 = vld [vmem:[#allocation2 + $0x1e0] sm:$0xff] }
 0x303   : > { %1899 = vmatmul.f32.gmra.mxu1 %v1505_v29 }
 0x309   : > { %1693 = vmatmul.f32.gmra.mxu3 %v1522_v27  ;;  %v1553_v27 = vld [vmem:[#allocation2 + $0x1a8] sm:$0xff] }
 0x30b   : > { %1902 = vmatmul.f32.gmra.mxu1 %v1507_v47 }
 0x311   : > { %1696 = vmatmul.f32.gmra.mxu3 %v1524_v30  ;;  %v1562_v30 = vld [vmem:[#allocation2 + $0x1f0] sm:$0xff] }
 0x313   : > { %1905 = vmatmul.f32.gmra.mxu1 %v1509_v20 }
 0x319   : > { %1699 = vmatmul.f32.gmra.mxu3 %v1526_v31  ;;  %v1555_v31 = vld [vmem:[#allocation2 + $0x1b8] sm:$0xff] }
 0x31b   : > { %1908 = vmatmul.f32.gmra.mxu1 %v1511_v24 }
 0x321   : > { %1702 = vmatmul.f32.gmra.mxu3 %v1528_v49 }
 0x323   : > { %1911 = vmatmul.f32.gmra.mxu1 %v1513_v26 }
 0x329   : > { %1705 = vmatmul.f32.gmra.mxu3 %v1530_v37 }
 0x32b   : > { %1914 = vmatmul.f32.gmra.mxu1 %v1515_v28 }
 0x331   : > { %1708 = vmatmul.f32.gmra.mxu3 %v1532_v36 }
 0x333   : > { %1917 = vmatmul.f32.gmra.mxu1 %v1517_v13 }
 0x339   : > { %1711 = vmatmul.f32.gmra.mxu3 %v1534_v45  ;;  %v2215_v45 = vpop.permute.xlu1 %2214 }
 0x33b   : > { %1920 = vmatmul.f32.gmra.mxu1 %v1519_v22 }
 0x341   : > { %1714 = vmatmul.f32.gmra.mxu3 %v1536_v43  ;;  %v2210_v43 = vpop.permute.xlu2 %2209 }
 0x343   : > { %1923 = vmatmul.f32.gmra.mxu1 %v1521_v14  ;;  %v1557_v14 = vld [vmem:[#allocation2 + $0x1c8] sm:$0xff] }
 0x344   : > { %v5105_v46 = vpop.f32.mrf.mxu3 }
 0x349   : > { %1717 = vmatmul.f32.gmra.mxu3 %v1538_v41 }
 0x34b   : > { %1926 = vmatmul.f32.gmra.mxu1 %v1523_v35  ;;  %v2220_v35 = vpop.permute.xlu0 %2219 }
 0x34c   : > { %v5107_v12 = vpop.f32.mrf.mxu3 }
 0x351   : > { %1720 = vmatmul.f32.gmra.mxu3 %v1540_v11  ;;  %v2200_v11 = vpop.permute.xlu1 %2199 }
 0x353   : > { %1929 = vmatmul.f32.gmra.mxu1 %v1525_v38  ;;  %v1559_v38 = vld [vmem:[#allocation2 + $0x1d8] sm:$0xff] }
 0x354   : > { %v5111_v19 = vpop.f32.mrf.mxu3 }
 0x359   : > { %1723 = vmatmul.f32.gmra.mxu3 %v1542_v33  ;;  %v2195_v33 = vpop.permute.xlu2 %2194 }
 0x35b   : > { %1932 = vmatmul.f32.gmra.mxu1 %v1527_v40 }
 0x35c   : > { %v5115_v51 = vpop.f32.mrf.mxu3 }
 0x361   : > { %1726 = vmatmul.f32.gmra.mxu3 %v1544_v57 }
 0x363   : > { %1935 = vmatmul.f32.gmra.mxu1 %v1529_v44  ;;  %v2205_v44 = vpop.permute.xlu0 %2204 }
 0x364   : > { %v5119_v56 = vpop.f32.mrf.mxu3 }
 0x369   : > { %1729 = vmatmul.f32.gmra.mxu3 %v1546_v25  ;;  %v1563_v25 = vld [vmem:[#allocation2 + $0x1f8] sm:$0xff] }
 0x36b   : > { %1938 = vmatmul.f32.gmra.mxu1 %v1531_v34  ;;  %v1561_v34 = vld [vmem:[#allocation2 + $0x1e8] sm:$0xff]  ;;  %v2190_v57 = vpop.permute.xlu0 %2189 }
 0x36c   : > { %v5123_v61 = vpop.f32.mrf.mxu3 }
 0x370   : > { %v5109_v18 = vpop.f32.mrf.mxu1 }
 0x371   : > { %1732 = vmatmul.f32.gmra.mxu3 %v1548_v4 }
 0x373   : > { %1941 = vmatmul.f32.gmra.mxu1 %v1533_v48 }
 0x374   : > { %v5127_v59 = vpop.f32.mrf.mxu3 }
 0x378   : > { %v5113_v21 = vpop.f32.mrf.mxu1 }
 0x379   : > { %1735 = vmatmul.f32.gmra.mxu3 %v1550_v60 }
 0x37b   : > { %1944 = vmatmul.f32.gmra.mxu1 %v1535_v23 }
 0x37c   : > { %v5131_v9 = vpop.f32.mrf.mxu3 }
 0x380   : > { %v5117_v7 = vpop.f32.mrf.mxu1 }
 0x381   : > { %1738 = vmatmul.f32.gmra.mxu3 %v1552_v16  ;;  %v2185_v16 = vpop.permute.xlu1 %2184 }
 0x383   : > { %1947 = vmatmul.f32.gmra.mxu1 %v1537_v32 }
 0x384   : > { %v5135_v17 = vpop.f32.mrf.mxu3 }
 0x388   : > { %v5121_v0 = vpop.f32.mrf.mxu1 }
 0x389   : > { %1741 = vmatmul.f32.gmra.mxu3 %v1554_v55 }
 0x38b   : > { %1950 = vmatmul.f32.gmra.mxu1 %v1539_v53 }
 0x38c   : > { %v1694_v3 = vpop.f32.mrf.mxu3 }
 0x390   : > { %v5125_v54 = vpop.f32.mrf.mxu1 }
 0x391   : > { %1744 = vmatmul.f32.gmra.mxu3 %v1556_v63 }
 0x393   : > { %1953 = vmatmul.f32.gmra.mxu1 %v1541_v5 }
 0x394   : > { %v1697_v47 = vpop.f32.mrf.mxu3 }
 0x398   : > { %v5129_v6 = vpop.f32.mrf.mxu1 }
 0x399   : > { %1747 = vmatmul.f32.gmra.mxu3 %v1558_v52 }
 0x39b   : > { %1956 = vmatmul.f32.gmra.mxu1 %v1543_v1 }
 0x39c   : > { %v1700_v24 = vpop.f32.mrf.mxu3 }
 0x3a0   : > { %v5133_v58 = vpop.f32.mrf.mxu1 }
 0x3a1   : > { %1750 = vmatmul.f32.gmra.mxu3 %v1560_v50  ;;  %v2180_v50 = vpop.permute.xlu2 %2179 }
 0x3a3   : > { %1959 = vmatmul.f32.gmra.mxu1 %v1545_v15 }
 0x3a4   : > { %v1703_v28 = vpop.f32.mrf.mxu3 }
 0x3a8   : > { %v5137_v2 = vpop.f32.mrf.mxu1 }
 0x3a9   : > { %1753 = vmatmul.f32.gmra.mxu3 %v1562_v30  ;;  %v2175_v30 = vpop.permute.xlu0 %2174 }
 0x3ab   : > { %1962 = vmatmul.f32.gmra.mxu1 %v1547_v10 }
 0x3ac   : > { %v1706_v22 = vpop.f32.mrf.mxu3 }
 0x3b0   : > { %v5139_v29 = vpop.f32.mrf.mxu1 }
 0x3b3   : > { %1965 = vmatmul.f32.gmra.mxu1 %v1549_v8 }
 0x3b4   : > { %v5141_v37 = vpop.f32.mrf.mxu3 }
 0x3b8   : > { %v1921_v20 = vpop.f32.mrf.mxu1 }
 0x3bb   : > { %1968 = vmatmul.f32.gmra.mxu1 %v1551_v62 }
 0x3bc   : > { %v5143_v40 = vpop.f32.mrf.mxu3 }
 0x3c0   : > { %v1924_v26 = vpop.f32.mrf.mxu1 }
 0x3c1   : > { %v1925_v8 = vadd.f32 %v1924_v26, %v5135_v17  ;;  %v1916_v17 = vadd.f32 %v5137_v2, %v5123_v61  ;;  %v2165_v2 = vpop.permute.xlu2 %2164 }
 0x3c3   : > { %1971 = vmatmul.f32.gmra.mxu1 %v1553_v27  ;;  %v2309_v61 = vadd.f32 %v2180_v50, %v1916_v17 }
 0x3c4   : > { %v5145_v48 = vpop.f32.mrf.mxu3 }
 0x3c8   : > { %v1927_v13 = vpop.f32.mrf.mxu1 }
 0x3c9   : > { %v1928_v15 = vadd.f32 %v1927_v13, %v1694_v3  ;;  %v1919_v3 = vadd.f32 %v5139_v29, %v5127_v59  ;;  %v1910_v59 = vadd.f32 %v5129_v6, %v5115_v51  ;;  %v1901_v51 = vadd.f32 %v5117_v7, %v5105_v46  ;;  %v2150_v7 = vpop.permute.xlu2 %2149 }
 0x3cb   : > { %1974 = vmatmul.f32.gmra.mxu1 %v1555_v31  ;;  %v2312_v31 = vadd.f32 %v2195_v33, %v1925_v8 }
 0x3cc   : > { %v5147_v63 = vpop.f32.mrf.mxu3 }
 0x3d0   : > { %v1930_v49 = vpop.f32.mrf.mxu1 }
 0x3d1   : > { %v1931_v5 = vadd.f32 %v1930_v49, %v1697_v47  ;;  %v2170_v49 = vpop.permute.xlu1 %2169 }
 0x3d3   : > { %1977 = vmatmul.f32.gmra.mxu1 %v1557_v14  ;;  %v2314_v62 = vadd.f32 %v2205_v44, %v1931_v5  ;;  %v2310_v14 = vadd.f32 %v2185_v16, %v1919_v3  ;;  %v2341_v44 = vmax.f32 %v2309_v61, 0.0 }
 0x3d5   : > { %v2346_v13 = vmax.f32 %v2314_v62, 0.0  ;;  %v2412_v62 = vld [vmem:[#allocation5 + $0x30] sm:$0xff] }
 0x3d8   : > { %v1933_v36 = vpop.f32.mrf.mxu1 }
 0x3d9   : > { %v1934_v53 = vadd.f32 %v1933_v36, %v1700_v24  ;;  %v1922_v24 = vadd.f32 %v1921_v20, %v5131_v9  ;;  %v1913_v9 = vadd.f32 %v5133_v58, %v5119_v56  ;;  %v2344_v20 = vmax.f32 %v2312_v31, 0.0  ;;  %v5161_v36 = vpop.f32.mrf.mxu3  ;;  %v2160_v58 = vpop.permute.xlu0 %2159  ;;  %v2418_v31 = vld [vmem:[#allocation5 + $0x60] sm:$0xff] }
 0x3db   : > { %1980 = vmatmul.f32.gmra.mxu1 %v1559_v38  ;;  %v2315_v10 = vadd.f32 %v2210_v43, %v1934_v53  ;;  %v1907_v38 = vadd.f32 %v5125_v54, %v5111_v19  ;;  %v2308_v56 = vadd.f32 %v2175_v30, %v1913_v9  ;;  %v1904_v43 = vadd.f32 %v5121_v0, %v5107_v12  ;;  %v2416_v30 = vld [vmem:[#allocation5 + $0x50] sm:$0xff] }
 0x3dc   : > { %v1898_v19 = vadd.f32 %v5113_v21, %v5103_v42  ;;  %v1895_v12 = vadd.f32 %v5109_v18, %v5101_v39  ;;  %v2408_v18 = vld [vmem:[#allocation5 + $0x10] sm:$0xff] }
 0x3dd   : > { %v2347_v47 = vmax.f32 %v2315_v10, 0.0  ;;  %v2340_v6 = vmax.f32 %v2308_v56, 0.0  ;;  %v2305_v33 = vadd.f32 %v2160_v58, %v1904_v43  ;;  %v2410_v10 = vld [vmem:[#allocation5 + $0x20] sm:$0xff] }
 0x3e0   : > { %v1936_v41 = vpop.f32.mrf.mxu1 }
 0x3e1   : > { %v1937_v23 = vadd.f32 %v1936_v41, %v1703_v28  ;;  %v2313_v28 = vadd.f32 %v2200_v11, %v1928_v15  ;;  %v2307_v41 = vadd.f32 %v2170_v49, %v1910_v59  ;;  %v2145_v53 = vpop.permute.xlu0 %2144 }
 0x3e2   : > { %v2302_v42 = vadd.f32 %v2145_v53, %v1895_v12 }
 0x3e3   : > { %1983 = vmatmul.f32.gmra.mxu1 %v1561_v34  ;;  %v2316_v1 = vadd.f32 %v2215_v45, %v1937_v23  ;;  %v2345_v26 = vmax.f32 %v2313_v28, 0.0  ;;  %v2342_v45 = vmax.f32 %v2310_v14, 0.0  ;;  %v2306_v34 = vadd.f32 %v2165_v2, %v1907_v38  ;;  %v2155_v23 = vpop.permute.xlu1 %2154  ;;  %v2295_v38 = vpop.permute.xlu2 %2294 }
 0x3e4   : > { %v2339_v54 = vmax.f32 %v2307_v41, 0.0  ;;  %v2304_v46 = vadd.f32 %v2155_v23, %v1901_v51  ;;  %v2428_v41 = vld [vmem:[#allocation5 + $0xb0] sm:$0xff] }
 0x3e5   : > { %v2348_v52 = vmax.f32 %v2316_v1, 0.0  ;;  %v2338_v0 = vmax.f32 %v2306_v34, 0.0  ;;  %v2406_v1 = vld [vmem:[#allocation5] sm:$0xff] }
 0x3e8   : > { %v1939_v32 = vpop.f32.mrf.mxu1 }
 0x3e9   : > { %v1940_v4 = vadd.f32 %v1939_v32, %v1706_v22  ;;  %v2311_v22 = vadd.f32 %v2190_v57, %v1922_v24  ;;  %v5175_v57 = vpop.f32.mrf.mxu3  ;;  %v2337_v32 = vmax.f32 %v2305_v33, 0.0  ;;  %v2290_v56 = vpop.permute.xlu0 %2289 }
 0x3eb   : > { %1986 = vmatmul.f32.gmra.mxu1 %v1563_v25  ;;  %v2317_v60 = vadd.f32 %v2220_v35, %v1940_v4  ;;  %v2343_v29 = vmax.f32 %v2311_v22, 0.0  ;;  %v2303_v25 = vadd.f32 %v2150_v7, %v1898_v19  ;;  %v2336_v4 = vmax.f32 %v2304_v46, 0.0  ;;  %v2420_v22 = vld [vmem:[#allocation5 + $0x70] sm:$0xff]  ;;  %v2300_v61 = vpop.permute.xlu1 %2299  ;;  %v2280_v51 = vpop.permute.xlu2 %2279 }
 0x3ed   : > { %v2349_v55 = vmax.f32 %v2317_v60, 0.0  ;;  %v2335_v5 = vmax.f32 %v2303_v25, 0.0  ;;  %v2334_v60 = vmax.f32 %v2302_v42, 0.0 }
 0x3ef   : > { %2486 = vmatpush.msrb.mxu0 %v2349_v55 }
 0x3f0   : > { %v5150_v27 = vpop.f32.mrf.mxu1 }
 0x3f1   : > { %2487 = vmatpush.msrb.mxu0 %v2348_v52  ;;  %v5181_v16 = vpop.f32.mrf.mxu3 }
 0x3f3   : > { %2488 = vmatpush.msrb.mxu0 %v2347_v47  ;;  %v2414_v47 = vld [vmem:[#allocation5 + $0x40] sm:$0xff]  ;;  %v2285_v43 = vpop.permute.xlu1 %2284  ;;  %v2265_v42 = vpop.permute.xlu2 %2264 }
 0x3f5   : > { %2489 = vmatpush.msrb.mxu0 %v2346_v13 }
 0x3f7   : > { %2490 = vmatpush.msrb.mxu0 %v2345_v26 }
 0x3f8   : > { %v5159_v35 = vpop.f32.mrf.mxu1 }
 0x3f9   : > { %2491 = vmatpush.msrb.mxu0 %v2344_v20  ;;  %v5185_v15 = vpop.f32.mrf.mxu3  ;;  %v2422_v20 = vld [vmem:[#allocation5 + $0x80] sm:$0xff] }
 0x3fb   : > { %2492 = vmatpush.msrb.mxu0 %v2343_v29  ;;  %v2424_v29 = vld [vmem:[#allocation5 + $0x90] sm:$0xff] }
 0x3fd   : > { %2493 = vmatpush.msrb.mxu0 %v2342_v45  ;;  %v2426_v45 = vld [vmem:[#allocation5 + $0xa0] sm:$0xff] }
 0x3ff   : > { %2494 = vmatpush.msrb.mxu0 %v2341_v44 }
 0x400   : > { %v5171_v11 = vpop.f32.mrf.mxu1 }
 0x401   : > { %2495 = vmatpush.msrb.mxu0 %v2340_v6  ;;  %v5191_v52 = vpop.f32.mrf.mxu3  ;;  %v2275_v6 = vpop.permute.xlu0 %2274 }
 0x403   : > { %2496 = vmatpush.msrb.mxu0 %v2339_v54  ;;  %v2270_v54 = vpop.permute.xlu1 %2269 }
 0x405   : > { %2497 = vmatpush.msrb.mxu0 %v2338_v0 }
 0x407   : > { %2498 = vmatpush.msrb.mxu0 %v2337_v32  ;;  %v2430_v32 = vld [vmem:[#allocation5 + $0xc0] sm:$0xff] }
 0x408   : > { %v5179_v21 = vpop.f32.mrf.mxu1 }
 0x409   : > { %2499 = vmatpush.msrb.mxu0 %v2336_v4  ;;  %v1736_v24 = vpop.f32.mrf.mxu3 }
 0x40b   : > { %2500 = vmatpush.msrb.mxu0 %v2335_v5 }
 0x40d   : > { %2501 = vmatpush.msrb.mxu0 %v2334_v60 }
 0x40e   : > { %2502 = vmatmul.f32.vlgmr.msrb.gmra.mxu0 %v2406_v1 }
 0x410   : > { %v5183_v39 = vpop.f32.mrf.mxu1 }
 0x411   : > { %v1739_v3 = vpop.f32.mrf.mxu3 }
 0x416   : > { %2505 = vmatmul.f32.gmra.mxu0 %v2408_v18  ;;  %v2260_v18 = vpop.permute.xlu0 %2259 }
 0x418   : > { %v5187_v55 = vpop.f32.mrf.mxu1 }
 0x419   : > { %v1742_v17 = vpop.f32.mrf.mxu3 }
 0x41e   : > { %2508 = vmatmul.f32.gmra.mxu0 %v2410_v10 }
 0x420   : > { %v5189_v8 = vpop.f32.mrf.mxu1 }
 0x421   : > { %v1745_v9 = vpop.f32.mrf.mxu3 }
 0x426   : > { %2511 = vmatmul.f32.gmra.mxu0 %v2412_v62 }
 0x428   : > { %v5193_v50 = vpop.f32.mrf.mxu1 }
 0x429   : > { %v1748_v59 = vpop.f32.mrf.mxu3 }
 0x42e   : > { %2514 = vmatmul.f32.gmra.mxu0 %v2414_v47 }
 0x430   : > { %v1966_v28 = vpop.f32.mrf.mxu1 }
 0x431   : > { %v1751_v58 = vpop.f32.mrf.mxu3 }
 0x436   : > { %2517 = vmatmul.f32.gmra.mxu0 %v2416_v30  ;;  %v2255_v30 = vpop.permute.xlu1 %2254 }
 0x438   : > { %v1969_v13 = vpop.f32.mrf.mxu1 }
 0x439   : > { %v1754_v34 = vpop.f32.mrf.mxu3  ;;  %v1970_v10 = vadd.f32 %v1969_v13, %v1736_v24  ;;  %v1961_v24 = vadd.f32 %v5189_v8, %v5181_v16  ;;  %v1952_v16 = vadd.f32 %v5179_v21, %v5147_v63  ;;  %v1943_v63 = vadd.f32 %v5150_v27, %v5141_v37  ;;  %v2438_v37 = vld [vmem:[#allocation5 + $0x100] sm:$0xff] }
 0x43e   : > { %2520 = vmatmul.f32.gmra.mxu0 %v2418_v31  ;;  %v1967_v31 = vadd.f32 %v1966_v28, %v5191_v52  ;;  %v1958_v52 = vadd.f32 %v5187_v55, %v5175_v57  ;;  %v1949_v57 = vadd.f32 %v5171_v11, %v5145_v48 }
 0x440   : > { %v1972_v26 = vpop.f32.mrf.mxu1  ;;  %v2326_v13 = vadd.f32 %v2265_v42, %v1967_v31  ;;  %v2450_v42 = vld [vmem:[#allocation5 + $0x160] sm:$0xff] }
 0x441   : > { %v1973_v5 = vadd.f32 %v1972_v26, %v1739_v3 }
 0x446   : > { %2523 = vmatmul.f32.gmra.mxu0 %v2420_v22  ;;  %v2328_v22 = vadd.f32 %v2275_v6, %v1973_v5 }
 0x448   : > { %v1975_v49 = vpop.f32.mrf.mxu1  ;;  %v2360_v26 = vmax.f32 %v2328_v22, 0.0  ;;  %v2460_v22 = vld [vmem:[#allocation5 + $0x1b0] sm:$0xff] }
 0x449   : > { %v1976_v25 = vadd.f32 %v1975_v49, %v1742_v17  ;;  %v2432_v17 = vld [vmem:[#allocation5 + $0xd0] sm:$0xff]  ;;  %v1964_v49 = vadd.f32 %v5193_v50, %v5185_v15  ;;  %v1955_v15 = vadd.f32 %v5183_v39, %v5161_v36  ;;  %v2324_v50 = vadd.f32 %v2255_v30, %v1961_v24  ;;  %v2458_v30 = vld [vmem:[#allocation5 + $0x1a0] sm:$0xff] }
 0x44a   : > { %v1946_v36 = vadd.f32 %v5159_v35, %v5143_v40  ;;  %v2466_v24 = vld [vmem:[#allocation5 + $0x1e0] sm:$0xff] }
 0x44b   : > { %v2329_v62 = vadd.f32 %v2280_v51, %v1976_v25  ;;  %v2325_v28 = vadd.f32 %v2260_v18, %v1964_v49  ;;  %v2454_v18 = vld [vmem:[#allocation5 + $0x180] sm:$0xff] }
 0x44d   : > { %v2361_v3 = vmax.f32 %v2329_v62, 0.0  ;;  %v2456_v62 = vld [vmem:[#allocation5 + $0x190] sm:$0xff] }
 0x44e   : > { %2526 = vmatmul.f32.gmra.mxu0 %v2422_v20  ;;  %v2327_v20 = vadd.f32 %v2270_v54, %v1970_v10 }
 0x450   : > { %v1978_v14 = vpop.f32.mrf.mxu1 }
 0x451   : > { %v1979_v0 = vadd.f32 %v1978_v14, %v1745_v9  ;;  %v2250_v14 = vpop.permute.xlu2 %2249 }
 0x452   : > { %v2323_v8 = vadd.f32 %v2250_v14, %v1958_v52  ;;  %v2470_v52 = vld [vmem:[#allocation5 + $0x200] sm:$0xff] }
 0x453   : > { %v2330_v60 = vadd.f32 %v2285_v43, %v1979_v0 }
 0x455   : > { %v2362_v9 = vmax.f32 %v2330_v60, 0.0  ;;  %v2452_v60 = vld [vmem:[#allocation5 + $0x170] sm:$0xff] }
 0x456   : > { %2529 = vmatmul.f32.gmra.mxu0 %v2424_v29  ;;  %v2245_v29 = vpop.permute.xlu0 %2244 }
 0x457   : > { %v2322_v55 = vadd.f32 %v2245_v29, %v1955_v15  ;;  %v2472_v29 = vld [vmem:[#allocation5 + $0x210] sm:$0xff]  ;;  %v972_v15 = vld [vmem:[%s5907_s5 + $0x108] sm:$0xff] }
 0x458   : > { %v1981_v2 = vpop.f32.mrf.mxu1 }
 0x459   : > { %v1982_v23 = vadd.f32 %v1981_v2, %v1748_v59  ;;  %v2359_v59 = vmax.f32 %v2327_v20, 0.0  ;;  %v2434_v2 = vld [vmem:[#allocation5 + $0xe0] sm:$0xff]  ;;  %v2235_v43 = vpop.permute.xlu2 %2234  ;;  %v2464_v20 = vld [vmem:[#allocation5 + $0x1d0] sm:$0xff] }
 0x45a   : > { %v2320_v21 = vadd.f32 %v2235_v43, %v1949_v57  ;;  %v2478_v57 = vld [vmem:[#allocation5 + $0x240] sm:$0xff] }
 0x45b   : > { %v2331_v53 = vadd.f32 %v2290_v56, %v1982_v23  ;;  %v2356_v56 = vmax.f32 %v2324_v50, 0.0 }
 0x45c   : > { %v2352_v40 = vmax.f32 %v2320_v21, 0.0  ;;  %v976_v21 = vld [vmem:[%s5907_s5 + $0x128] sm:$0xff] }
 0x45d   : > { %v2363_v47 = vmax.f32 %v2331_v53, 0.0  ;;  %v2448_v53 = vld [vmem:[#allocation5 + $0x150] sm:$0xff] }
 0x45e   : > { %2532 = vmatmul.f32.gmra.mxu0 %v2426_v45  ;;  %v2357_v45 = vmax.f32 %v2325_v28, 0.0  ;;  %v2230_v51 = vpop.permute.xlu0 %2229  ;;  %v971_v28 = vld [vmem:[%s5907_s5 + $0x100] sm:$0xff] }
 0x45f   : > { %v2319_v6 = vadd.f32 %v2230_v51, %v1946_v36  ;;  %1123 = vmatmul.f32.gmra.mxu2 %v971_v28  ;;  %v975_v36 = vld [vmem:[%s5907_s5 + $0x120] sm:$0xff] }
 0x460   : > { %v1984_v44 = vpop.f32.mrf.mxu1 }
 0x461   : > { %v1985_v19 = vadd.f32 %v1984_v44, %v1751_v58  ;;  %v2355_v58 = vmax.f32 %v2323_v8, 0.0  ;;  %v2354_v44 = vmax.f32 %v2322_v55, 0.0  ;;  %v2351_v35 = vmax.f32 %v2319_v6, 0.0  ;;  %v974_v8 = vld [vmem:[%s5907_s5 + $0x118] sm:$0xff]  ;;  %v1569_v6 = vld [vmem:[#allocation2 + $0x228] sm:$0xff] }
 0x463   : > { %v2332_v46 = vadd.f32 %v2295_v38, %v1985_v19  ;;  %v2240_v38 = vpop.permute.xlu1 %2239 }
 0x464   : > { %v2321_v39 = vadd.f32 %v2240_v38, %v1952_v16  ;;  %v2476_v16 = vld [vmem:[#allocation5 + $0x230] sm:$0xff] }
 0x465   : > { %v2364_v1 = vmax.f32 %v2332_v46, 0.0  ;;  %v2444_v46 = vld [vmem:[#allocation5 + $0x130] sm:$0xff] }
 0x466   : > { %2535 = vmatmul.f32.gmra.mxu0 %v2428_v41  ;;  %v2436_v41 = vld [vmem:[#allocation5 + $0xf0] sm:$0xff]  ;;  %v2353_v48 = vmax.f32 %v2321_v39, 0.0 }
 0x467   : > { %1126 = vmatmul.f32.gmra.mxu2 %v972_v15  ;;  %v1566_v39 = vld [vmem:[#allocation2 + $0x210] sm:$0xff]  ;;  %v982_v15 = vld [vmem:[%s5907_s5 + $0x158] sm:$0xff] }
 0x468   : > { %v1987_v33 = vpop.f32.mrf.mxu1 }
 0x469   : > { %v1988_v12 = vadd.f32 %v1987_v33, %v1754_v34  ;;  %v2440_v33 = vld [vmem:[#allocation5 + $0x110] sm:$0xff] }
 0x46b   : > { %v2333_v7 = vadd.f32 %v2300_v61, %v1988_v12  ;;  %v2358_v61 = vmax.f32 %v2326_v13, 0.0  ;;  %v2225_v11 = vpop.permute.xlu1 %2224  ;;  %v2442_v12 = vld [vmem:[#allocation5 + $0x120] sm:$0xff] }
 0x46c   : > { %v2318_v34 = vadd.f32 %v2225_v11, %v1943_v63  ;;  %v1567_v63 = vld [vmem:[#allocation2 + $0x218] sm:$0xff]  ;;  %v1570_v11 = vld [vmem:[#allocation2 + $0x230] sm:$0xff] }
 0x46d   : > { %v2365_v4 = vmax.f32 %v2333_v7, 0.0 }
 0x46e   : > { %2538 = vmatmul.f32.gmra.mxu0 %v2430_v32  ;;  %v2350_v54 = vmax.f32 %v2318_v34, 0.0  ;;  %v2446_v32 = vld [vmem:[#allocation5 + $0x140] sm:$0xff]  ;;  %v2484_v34 = vld [vmem:[#allocation5 + $0x270] sm:$0xff] }
 0x46f   : > { %2623 = vmatpush.msra.mxu0 %v2365_v4 }
 0x471   : > { %2624 = vmatpush.msra.mxu0 %v2364_v1 }
 0x473   : > { %2625 = vmatpush.msra.mxu0 %v2363_v47 }
 0x475   : > { %2626 = vmatpush.msra.mxu0 %v2362_v9 }
 0x476   : > { %2541 = vmatmul.f32.gmra.mxu0 %v2432_v17  ;;  %v2462_v17 = vld [vmem:[#allocation5 + $0x1c0] sm:$0xff] }
 0x477   : > { %2627 = vmatpush.msra.mxu0 %v2361_v3 }
 0x479   : > { %2628 = vmatpush.msra.mxu0 %v2360_v26  ;;  %v2468_v26 = vld [vmem:[#allocation5 + $0x1f0] sm:$0xff] }
 0x47b   : > { %2629 = vmatpush.msra.mxu0 %v2359_v59 }
 0x47d   : > { %2630 = vmatpush.msra.mxu0 %v2358_v61  ;;  %v2474_v61 = vld [vmem:[#allocation5 + $0x220] sm:$0xff] }
 0x47e   : > { %2544 = vmatmul.f32.gmra.mxu0 %v2434_v2  ;;  %v973_v2 = vld [vmem:[%s5907_s5 + $0x110] sm:$0xff] }
 0x47f   : > { %2631 = vmatpush.msra.mxu0 %v2357_v45  ;;  %1129 = vmatmul.f32.gmra.mxu2 %v973_v2  ;;  %v1564_v45 = vld [vmem:[#allocation2 + $0x200] sm:$0xff]  ;;  %v2415_v2 = vld [vmem:[#allocation5 + $0x48] sm:$0xff] }
 0x480   : > { %1756 = vmatmul.f32.gmra.mxu3 %v1564_v45  ;;  %v983_v45 = vld [vmem:[%s5907_s5 + $0x160] sm:$0xff] }
 0x481   : > { %2632 = vmatpush.msra.mxu0 %v2356_v56  ;;  %v1565_v56 = vld [vmem:[#allocation2 + $0x208] sm:$0xff] }
 0x482   : > { %1989 = vmatmul.f32.gmra.mxu1 %v1565_v56  ;;  %v2417_v56 = vld [vmem:[#allocation5 + $0x58] sm:$0xff] }
 0x483   : > { %2633 = vmatpush.msra.mxu0 %v2355_v58  ;;  %v2480_v58 = vld [vmem:[#allocation5 + $0x250] sm:$0xff] }
 0x485   : > { %2634 = vmatpush.msra.mxu0 %v2354_v44  ;;  %v1568_v44 = vld [vmem:[#allocation2 + $0x220] sm:$0xff] }
 0x486   : > { %2547 = vmatmul.f32.gmra.mxu0 %v2436_v41  ;;  %v2482_v41 = vld [vmem:[#allocation5 + $0x260] sm:$0xff] }
 0x487   : > { %2635 = vmatpush.msra.mxu0 %v2353_v48  ;;  %1132 = vmatmul.f32.gmra.mxu2 %v974_v8  ;;  %v977_v48 = vld [vmem:[%s5907_s5 + $0x130] sm:$0xff]  ;;  %v1581_v8 = vld [vmem:[#allocation2 + $0x288] sm:$0xff] }
 0x488   : > { %1759 = vmatmul.f32.gmra.mxu3 %v1566_v39  ;;  %v1583_v39 = vld [vmem:[#allocation2 + $0x298] sm:$0xff] }
 0x489   : > { %2636 = vmatpush.msra.mxu0 %v2352_v40 }
 0x48a   : > { %1992 = vmatmul.f32.gmra.mxu1 %v1567_v63  ;;  %v1584_v63 = vld [vmem:[#allocation2 + $0x2a0] sm:$0xff] }
 0x48b   : > { %v5212_v19 = vpop.f32.mrf.mxu0  ;;  %2637 = vmatpush.msra.mxu0 %v2351_v35  ;;  %v1571_v35 = vld [vmem:[#allocation2 + $0x238] sm:$0xff] }
 0x48c   : > { %5945 = vst [vmem:[#allocation21_spill] sm:$0xff] %v5212_v19 }
 0x48d   : > { %2638 = vmatpush.msra.mxu0 %v2350_v54  ;;  %v978_v54 = vld [vmem:[%s5907_s5 + $0x138] sm:$0xff] }
 0x48e   : > { %2550 = vmatmul.f32.gmra.mxu0 %v2438_v37  ;;  %v1572_v37 = vld [vmem:[#allocation2 + $0x240] sm:$0xff] }
 0x48f   : > { %1135 = vmatmul.f32.gmra.mxu2 %v975_v36 }
 0x490   : > { %1762 = vmatmul.f32.gmra.mxu3 %v1568_v44 }
 0x492   : > { %1995 = vmatmul.f32.gmra.mxu1 %v1569_v6  ;;  %v985_v6 = vld [vmem:[%s5907_s5 + $0x170] sm:$0xff] }
 0x493   : > { %v5214_v27 = vpop.f32.mrf.mxu0 }
 0x494   : > { %5946 = vst [vmem:[#allocation22_spill] sm:$0xff] %v5214_v27 }
 0x496   : > { %2553 = vmatmul.f32.gmra.mxu0 %v2440_v33  ;;  %v2407_v33 = vld [vmem:[#allocation5 + $0x8] sm:$0xff] }
 0x497   : > { %1138 = vmatmul.f32.gmra.mxu2 %v976_v21  ;;  %v2419_v21 = vld [vmem:[#allocation5 + $0x68] sm:$0xff] }
 0x498   : > { %1765 = vmatmul.f32.gmra.mxu3 %v1570_v11  ;;  %v2421_v11 = vld [vmem:[#allocation5 + $0x78] sm:$0xff] }
 0x49a   : > { %1998 = vmatmul.f32.gmra.mxu1 %v1571_v35  ;;  %v1587_v35 = vld [vmem:[#allocation2 + $0x2b8] sm:$0xff] }
 0x49b   : > { %v5216_v23 = vpop.f32.mrf.mxu0 }
 0x49c   : > { %5947 = vst [vmem:[#allocation23_spill] sm:$0xff] %v5216_v23 }
 0x49e   : > { %2556 = vmatmul.f32.gmra.mxu0 %v2442_v12 }
 0x49f   : > { %1141 = vmatmul.f32.gmra.mxu2 %v977_v48  ;;  %v1586_v48 = vld [vmem:[#allocation2 + $0x2b0] sm:$0xff] }
 0x4a0   : > { %1768 = vmatmul.f32.gmra.mxu3 %v1572_v37  ;;  %v1588_v37 = vld [vmem:[#allocation2 + $0x2c0] sm:$0xff] }
 0x4a3   : > { %v5218_v0 = vpop.f32.mrf.mxu0 }
 0x4a4   : > { %5948 = vst [vmem:[#allocation24_spill] sm:$0xff] %v5218_v0  ;;  %v1633_v0 = vld [vmem:[#allocation2 + $0x428] sm:$0xff] }
 0x4a6   : > { %2559 = vmatmul.f32.gmra.mxu0 %v2444_v46  ;;  %v1573_v46 = vld [vmem:[#allocation2 + $0x248] sm:$0xff] }
 0x4a7   : > { %1144 = vmatmul.f32.gmra.mxu2 %v978_v54  ;;  %2001 = vmatmul.f32.gmra.mxu1 %v1573_v46  ;;  %v986_v54 = vld [vmem:[%s5907_s5 + $0x178] sm:$0xff] }
 0x4ab   : > { %v5220_v7 = vpop.f32.mrf.mxu0 }
 0x4ae   : > { %2562 = vmatmul.f32.gmra.mxu0 %v2446_v32  ;;  %v979_v32 = vld [vmem:[%s5907_s5 + $0x140] sm:$0xff] }
 0x4af   : > { %1147 = vmatmul.f32.gmra.mxu2 %v979_v32  ;;  %v1589_v32 = vld [vmem:[#allocation2 + $0x2c8] sm:$0xff] }
 0x4b3   : > { %v5222_v25 = vpop.f32.mrf.mxu0 }
 0x4b6   : > { %2565 = vmatmul.f32.gmra.mxu0 %v2448_v53  ;;  %v1574_v53 = vld [vmem:[#allocation2 + $0x250] sm:$0xff] }
 0x4b7   : > { %1771 = vmatmul.f32.gmra.mxu3 %v1574_v53  ;;  %v987_v53 = vld [vmem:[%s5907_s5 + $0x180] sm:$0xff] }
 0x4bb   : > { %v5224_v4 = vpop.f32.mrf.mxu0 }
 0x4be   : > { %2568 = vmatmul.f32.gmra.mxu0 %v2450_v42  ;;  %v2409_v42 = vld [vmem:[#allocation5 + $0x18] sm:$0xff] }
 0x4c3   : > { %v5226_v5 = vpop.f32.mrf.mxu0 }
 0x4c6   : > { %2571 = vmatmul.f32.gmra.mxu0 %v2452_v60 }
 0x4cb   : > { %v5228_v1 = vpop.f32.mrf.mxu0 }
 0x4ce   : > { %2574 = vmatmul.f32.gmra.mxu0 %v2454_v18  ;;  %v1575_v18 = vld [vmem:[#allocation2 + $0x258] sm:$0xff] }
 0x4cf   : > { %2004 = vmatmul.f32.gmra.mxu1 %v1575_v18 }
 0x4d3   : > { %v5230_v10 = vpop.f32.mrf.mxu0 }
 0x4d6   : > { %2577 = vmatmul.f32.gmra.mxu0 %v2456_v62  ;;  %v980_v62 = vld [vmem:[%s5907_s5 + $0x148] sm:$0xff] }
 0x4d7   : > { %1150 = vmatmul.f32.gmra.mxu2 %v980_v62  ;;  %v2425_v62 = vld [vmem:[#allocation5 + $0x98] sm:$0xff] }
 0x4db   : > { %v5232_v47 = vpop.f32.mrf.mxu0 }
 0x4de   : > { %2580 = vmatmul.f32.gmra.mxu0 %v2458_v30  ;;  %v1576_v30 = vld [vmem:[#allocation2 + $0x260] sm:$0xff] }
 0x4df   : > { %1774 = vmatmul.f32.gmra.mxu3 %v1576_v30 }
 0x4e2   : > { %v1124_v18 = vpop.f32.mrf.mxu2 }
 0x4e3   : > { %v5234_v31 = vpop.f32.mrf.mxu0 }
 0x4e6   : > { %2583 = vmatmul.f32.gmra.mxu0 %v2460_v22  ;;  %v2411_v22 = vld [vmem:[#allocation5 + $0x28] sm:$0xff] }
 0x4eb   : > { %v5236_v9 = vpop.f32.mrf.mxu0 }
 0x4ee   : > { %2586 = vmatmul.f32.gmra.mxu0 %v2462_v17 }
 0x4f3   : > { %v5238_v49 = vpop.f32.mrf.mxu0 }
 0x4f6   : > { %2589 = vmatmul.f32.gmra.mxu0 %v2464_v20  ;;  %v1577_v20 = vld [vmem:[#allocation2 + $0x268] sm:$0xff] }
 0x4f7   : > { %2007 = vmatmul.f32.gmra.mxu1 %v1577_v20  ;;  %v988_v20 = vld [vmem:[%s5907_s5 + $0x188] sm:$0xff] }
 0x4fb   : > { %v5240_v3 = vpop.f32.mrf.mxu0 }
 0x4fe   : > { %2592 = vmatmul.f32.gmra.mxu0 %v2466_v24  ;;  %v981_v24 = vld [vmem:[%s5907_s5 + $0x150] sm:$0xff] }
 0x4ff   : > { %1153 = vmatmul.f32.gmra.mxu2 %v981_v24  ;;  %v1592_v24 = vld [vmem:[#allocation2 + $0x2e0] sm:$0xff] }
 0x503   : > { %v5242_v13 = vpop.f32.mrf.mxu0 }
 0x506   : > { %2595 = vmatmul.f32.gmra.mxu0 %v2468_v26  ;;  %v1578_v26 = vld [vmem:[#allocation2 + $0x270] sm:$0xff] }
 0x507   : > { %1777 = vmatmul.f32.gmra.mxu3 %v1578_v26  ;;  %1156 = vmatmul.f32.gmra.mxu2 %v982_v15  ;;  %v1127_v26 = vpop.f32.mrf.mxu2  ;;  %v1593_v15 = vld [vmem:[#allocation2 + $0x2e8] sm:$0xff] }
 0x50b   : > { %v5244_v14 = vpop.f32.mrf.mxu0 }
 0x50c   : > { %5949 = vst [vmem:[#allocation25_spill] sm:$0xff] %v5244_v14 }
 0x50e   : > { %2598 = vmatmul.f32.gmra.mxu0 %v2470_v52  ;;  %v2413_v52 = vld [vmem:[#allocation5 + $0x38] sm:$0xff] }
 0x50f   : > { %1159 = vmatmul.f32.gmra.mxu2 %v983_v45  ;;  %v2429_v45 = vld [vmem:[#allocation5 + $0xb8] sm:$0xff] }
 0x513   : > { %v5249_v59 = vpop.f32.mrf.mxu0 }
 0x514   : > { %5950 = vst [vmem:[#allocation26_spill] sm:$0xff] %v5249_v59  ;;  %v2453_v59 = vld [vmem:[#allocation5 + $0x178] sm:$0xff] }
 0x516   : > { %2601 = vmatmul.f32.gmra.mxu0 %v2472_v29  ;;  %v1579_v29 = vld [vmem:[#allocation2 + $0x278] sm:$0xff] }
 0x517   : > { %2010 = vmatmul.f32.gmra.mxu1 %v1579_v29 }
 0x51b   : > { %v5254_v50 = vpop.f32.mrf.mxu0 }
 0x51c   : > { %5951 = vst [vmem:[#allocation27_spill] sm:$0xff] %v5254_v50  ;;  %v1619_v50 = vld [vmem:[#allocation2 + $0x3b8] sm:$0xff] }
 0x51e   : > { %2604 = vmatmul.f32.gmra.mxu0 %v2474_v61  ;;  %v1580_v61 = vld [vmem:[#allocation2 + $0x280] sm:$0xff] }
 0x51f   : > { %1780 = vmatmul.f32.gmra.mxu3 %v1580_v61  ;;  %2013 = vmatmul.f32.gmra.mxu1 %v1581_v8  ;;  %v989_v61 = vld [vmem:[%s5907_s5 + $0x190] sm:$0xff]  ;;  %v1130_v8 = vpop.f32.mrf.mxu2 }
 0x523   : > { %v5259_v38 = vpop.f32.mrf.mxu0 }
 0x524   : > { %5952 = vst [vmem:[#allocation28_spill] sm:$0xff] %v5259_v38  ;;  %v5442_v38 = vpop.permute.xlu2 %2917 }
 0x526   : > { %2607 = vmatmul.f32.gmra.mxu0 %v2476_v16 }
 0x527   : > { %2016 = vmatmul.f32.gmra.mxu1 %v1583_v39  ;;  %v990_v39 = vld [vmem:[%s5907_s5 + $0x198] sm:$0xff] }
 0x52b   : > { %v5264_v55 = vpop.f32.mrf.mxu0 }
 0x52c   : > { %5953 = vst [vmem:[#allocation29_spill] sm:$0xff] %v5264_v55 }
 0x52e   : > { %2610 = vmatmul.f32.gmra.mxu0 %v2478_v57  ;;  %v1582_v57 = vld [vmem:[#allocation2 + $0x290] sm:$0xff] }
 0x52f   : > { %1783 = vmatmul.f32.gmra.mxu3 %v1582_v57 }
 0x533   : > { %v5269_v43 = vpop.f32.mrf.mxu0 }
 0x534   : > { %5954 = vst [vmem:[#allocation30_spill] sm:$0xff] %v5269_v43 }
 0x536   : > { %2613 = vmatmul.f32.gmra.mxu0 %v2480_v58  ;;  %v984_v58 = vld [vmem:[%s5907_s5 + $0x168] sm:$0xff] }
 0x537   : > { %1162 = vmatmul.f32.gmra.mxu2 %v984_v58  ;;  %1786 = vmatmul.f32.gmra.mxu3 %v1584_v63  ;;  %v1596_v58 = vld [vmem:[#allocation2 + $0x300] sm:$0xff]  ;;  %v1133_v63 = vpop.f32.mrf.mxu2 }
 0x53b   : > { %v5274_v51 = vpop.f32.mrf.mxu0 }
 0x53c   : > { %5955 = vst [vmem:[#allocation31_spill] sm:$0xff] %v5274_v51  ;;  %v2455_v51 = vld [vmem:[#allocation5 + $0x188] sm:$0xff] }
 0x53e   : > { %2616 = vmatmul.f32.gmra.mxu0 %v2482_v41  ;;  %v1585_v41 = vld [vmem:[#allocation2 + $0x2a8] sm:$0xff] }
 0x53f   : > { %2019 = vmatmul.f32.gmra.mxu1 %v1585_v41  ;;  %1165 = vmatmul.f32.gmra.mxu2 %v985_v6  ;;  %v1990_v41 = vpop.f32.mrf.mxu1 }
 0x540   : > { %1789 = vmatmul.f32.gmra.mxu3 %v1586_v48 }
 0x543   : > { %v5279_v40 = vpop.f32.mrf.mxu0 }
 0x544   : > { %5956 = vst [vmem:[#allocation32_spill] sm:$0xff] %v5279_v40  ;;  %v1003_v40 = vld [vmem:[%s5907_s5 + $0x200] sm:$0xff] }
 0x546   : > { %2619 = vmatmul.f32.gmra.mxu0 %v2484_v34 }
 0x547   : > { %2022 = vmatmul.f32.gmra.mxu1 %v1587_v35  ;;  %1168 = vmatmul.f32.gmra.mxu2 %v986_v54  ;;  %v1597_v35 = vld [vmem:[#allocation2 + $0x308] sm:$0xff] }
 0x548   : > { %1792 = vmatmul.f32.gmra.mxu3 %v1588_v37  ;;  %v991_v37 = vld [vmem:[%s5907_s5 + $0x1a0] sm:$0xff] }
 0x54b   : > { %v5284_v12 = vpop.f32.mrf.mxu0 }
 0x54c   : > { %5957 = vst [vmem:[#allocation33_spill] sm:$0xff] %v5284_v12 }
 0x54e   : > { %2639 = vmatmul.f32.vlgmr.msra.gmra.mxu0 %v2407_v33  ;;  %v2423_v33 = vld [vmem:[#allocation5 + $0x88] sm:$0xff] }
 0x54f   : > { %2025 = vmatmul.f32.gmra.mxu1 %v1589_v32  ;;  %1171 = vmatmul.f32.gmra.mxu2 %v987_v53  ;;  %v1136_v32 = vpop.f32.mrf.mxu2 }
 0x553   : > { %v5289_v60 = vpop.f32.mrf.mxu0 }
 0x554   : > { %5958 = vst [vmem:[#allocation34_spill] sm:$0xff] %v5289_v60 }
 0x556   : > { %2642 = vmatmul.f32.gmra.mxu0 %v2409_v42  ;;  %v1590_v42 = vld [vmem:[#allocation2 + $0x2d0] sm:$0xff] }
 0x557   : > { %1795 = vmatmul.f32.gmra.mxu3 %v1590_v42  ;;  %1174 = vmatmul.f32.gmra.mxu2 %v988_v20  ;;  %v1993_v42 = vpop.f32.mrf.mxu1  ;;  %v2433_v20 = vld [vmem:[#allocation5 + $0xd8] sm:$0xff] }
 0x55b   : > { %v5294_v17 = vpop.f32.mrf.mxu0 }
 0x55c   : > { %5959 = vst [vmem:[#allocation35_spill] sm:$0xff] %v5294_v17 }
 0x55e   : > { %2645 = vmatmul.f32.gmra.mxu0 %v2411_v22  ;;  %v1591_v22 = vld [vmem:[#allocation2 + $0x2d8] sm:$0xff] }
 0x55f   : > { %2028 = vmatmul.f32.gmra.mxu1 %v1591_v22  ;;  %1798 = vmatmul.f32.gmra.mxu3 %v1592_v24  ;;  %v1599_v24 = vld [vmem:[#allocation2 + $0x318] sm:$0xff] }
 0x560   : > { %1177 = vmatmul.f32.gmra.mxu2 %v989_v61  ;;  %v1139_v61 = vpop.f32.mrf.mxu2 }
 0x563   : > { %v5299_v28 = vpop.f32.mrf.mxu0 }
 0x564   : > { %5960 = vst [vmem:[#allocation36_spill] sm:$0xff] %v5299_v28  ;;  %v1623_v28 = vld [vmem:[#allocation2 + $0x3d8] sm:$0xff] }
 0x566   : > { %2648 = vmatmul.f32.gmra.mxu0 %v2413_v52  ;;  %v2427_v52 = vld [vmem:[#allocation5 + $0xa8] sm:$0xff] }
 0x567   : > { %2031 = vmatmul.f32.gmra.mxu1 %v1593_v15  ;;  %v1600_v15 = vld [vmem:[#allocation2 + $0x320] sm:$0xff] }
 0x568   : > { %1180 = vmatmul.f32.gmra.mxu2 %v990_v39 }
 0x56b   : > { %v5304_v16 = vpop.f32.mrf.mxu0 }
 0x56c   : > { %5961 = vst [vmem:[#allocation37_spill] sm:$0xff] %v5304_v16 }
 0x56e   : > { %2651 = vmatmul.f32.gmra.mxu0 %v2415_v2  ;;  %v1594_v2 = vld [vmem:[#allocation2 + $0x2f0] sm:$0xff] }
 0x56f   : > { %1801 = vmatmul.f32.gmra.mxu3 %v1594_v2 }
 0x570   : > { %1183 = vmatmul.f32.gmra.mxu2 %v991_v37 }
 0x573   : > { %v5309_v36 = vpop.f32.mrf.mxu0 }
 0x574   : > { %5962 = vst [vmem:[#allocation38_spill] sm:$0xff] %v5309_v36 }
 0x576   : > { %2654 = vmatmul.f32.gmra.mxu0 %v2417_v56  ;;  %v1595_v56 = vld [vmem:[#allocation2 + $0x2f8] sm:$0xff] }
 0x577   : > { %2034 = vmatmul.f32.gmra.mxu1 %v1595_v56  ;;  %1804 = vmatmul.f32.gmra.mxu3 %v1596_v58  ;;  %v2435_v58 = vld [vmem:[#allocation5 + $0xe8] sm:$0xff] }
 0x57b   : > { %v5314_v44 = vpop.f32.mrf.mxu0 }
 0x57c   : > { %5963 = vst [vmem:[#allocation39_spill] sm:$0xff] %v5314_v44 }
 0x57e   : > { %2657 = vmatmul.f32.gmra.mxu0 %v2419_v21  ;;  %v1757_v21 = vpop.f32.mrf.mxu3 }
 0x57f   : > { %v1991_v6 = vadd.f32 %v1990_v41, %v1757_v21  ;;  %2037 = vmatmul.f32.gmra.mxu1 %v1597_v35  ;;  %v1601_v21 = vld [vmem:[#allocation2 + $0x328] sm:$0xff] }
 0x581   : > { %v5346_v54 = vadd.f32 %v1991_v6, %v1124_v18  ;;  %v992_v18 = vld [vmem:[%s5907_s5 + $0x1a8] sm:$0xff]  ;;  %v1602_v6 = vld [vmem:[#allocation2 + $0x330] sm:$0xff] }
 0x582   : > { %1186 = vmatmul.f32.gmra.mxu2 %v992_v18 }
 0x583   : > { %v5319_v34 = vpop.f32.mrf.mxu0  ;;  %5970 = vst [vmem:[#allocation46_spill] sm:$0xff] %v5346_v54  ;;  %v1625_v54 = vld [vmem:[#allocation2 + $0x3e8] sm:$0xff] }
 0x584   : > { %5964 = vst [vmem:[#allocation40_spill] sm:$0xff] %v5319_v34 }
 0x586   : > { %2660 = vmatmul.f32.gmra.mxu0 %v2421_v11  ;;  %v2431_v11 = vld [vmem:[#allocation5 + $0xc8] sm:$0xff]  ;;  %v1760_v53 = vpop.f32.mrf.mxu3 }
 0x587   : > { %2040 = vmatmul.f32.gmra.mxu1 %v1599_v24  ;;  %v1604_v24 = vld [vmem:[#allocation2 + $0x340] sm:$0xff] }
 0x58b   : > { %v5324_v46 = vpop.f32.mrf.mxu0 }
 0x58c   : > { %5965 = vst [vmem:[#allocation41_spill] sm:$0xff] %v5324_v46  ;;  %v1621_v46 = vld [vmem:[#allocation2 + $0x3c8] sm:$0xff] }
 0x58e   : > { %2663 = vmatmul.f32.gmra.mxu0 %v2423_v33  ;;  %v1598_v33 = vld [vmem:[#allocation2 + $0x310] sm:$0xff]  ;;  %v1763_v2 = vpop.f32.mrf.mxu3 }
 0x58f   : > { %1807 = vmatmul.f32.gmra.mxu3 %v1598_v33  ;;  %2043 = vmatmul.f32.gmra.mxu1 %v1601_v21  ;;  %v1605_v21 = vld [vmem:[#allocation2 + $0x348] sm:$0xff] }
 0x593   : > { %v5329_v30 = vpop.f32.mrf.mxu0 }
 0x594   : > { %5966 = vst [vmem:[#allocation42_spill] sm:$0xff] %v5329_v30  ;;  %v2445_v30 = vld [vmem:[#allocation5 + $0x138] sm:$0xff] }
 0x596   : > { %2666 = vmatmul.f32.gmra.mxu0 %v2425_v62  ;;  %v1994_v62 = vadd.f32 %v1993_v42, %v1760_v53  ;;  %v1766_v35 = vpop.f32.mrf.mxu3  ;;  %v2437_v42 = vld [vmem:[#allocation5 + $0xf8] sm:$0xff] }
 0x597   : > { %1810 = vmatmul.f32.gmra.mxu3 %v1600_v15 }
 0x59b   : > { %v5334_v29 = vpop.f32.mrf.mxu0 }
 0x59c   : > { %5967 = vst [vmem:[#allocation43_spill] sm:$0xff] %v5334_v29  ;;  %v1611_v29 = vld [vmem:[#allocation2 + $0x378] sm:$0xff] }
 0x59e   : > { %2669 = vmatmul.f32.gmra.mxu0 %v2427_v52  ;;  %v5353_v52 = vadd.f32 %v1994_v62, %v1127_v26  ;;  %v993_v26 = vld [vmem:[%s5907_s5 + $0x1b0] sm:$0xff]  ;;  %v1603_v62 = vld [vmem:[#allocation2 + $0x338] sm:$0xff]  ;;  %v1769_v15 = vpop.f32.mrf.mxu3 }
 0x59f   : > { %1189 = vmatmul.f32.gmra.mxu2 %v993_v26  ;;  %1813 = vmatmul.f32.gmra.mxu3 %v1602_v6  ;;  %v1606_v6 = vld [vmem:[#allocation2 + $0x350] sm:$0xff] }
 0x5a0   : > { %5972 = vst [vmem:[#allocation48_spill] sm:$0xff] %v5353_v52  ;;  %2046 = vmatmul.f32.gmra.mxu1 %v1603_v62 }
 0x5a3   : > { %v5339_v57 = vpop.f32.mrf.mxu0 }
 0x5a4   : > { %5968 = vst [vmem:[#allocation44_spill] sm:$0xff] %v5339_v57  ;;  %v1613_v57 = vld [vmem:[#allocation2 + $0x388] sm:$0xff] }
 0x5a6   : > { %2672 = vmatmul.f32.gmra.mxu0 %v2429_v45  ;;  %v1996_v45 = vpop.f32.mrf.mxu1 }
 0x5a7   : > { %v1997_v56 = vadd.f32 %v1996_v45, %v1763_v2  ;;  %1816 = vmatmul.f32.gmra.mxu3 %v1604_v24  ;;  %v1607_v24 = vld [vmem:[#allocation2 + $0x358] sm:$0xff] }
 0x5a8   : > { %2049 = vmatmul.f32.gmra.mxu1 %v1605_v21 }
 0x5a9   : > { %v5360_v41 = vadd.f32 %v1997_v56, %v1130_v8  ;;  %v994_v8 = vld [vmem:[%s5907_s5 + $0x1b8] sm:$0xff] }
 0x5aa   : > { %1192 = vmatmul.f32.gmra.mxu2 %v994_v8  ;;  %v2441_v8 = vld [vmem:[#allocation5 + $0x118] sm:$0xff] }
 0x5ab   : > { %v5344_v48 = vpop.f32.mrf.mxu0  ;;  %5974 = vst [vmem:[#allocation50_spill] sm:$0xff] %v5360_v41  ;;  %v2461_v41 = vld [vmem:[#allocation5 + $0x1b8] sm:$0xff] }
 0x5ac   : > { %5969 = vst [vmem:[#allocation45_spill] sm:$0xff] %v5344_v48  ;;  %v1615_v48 = vld [vmem:[#allocation2 + $0x398] sm:$0xff] }
 0x5ae   : > { %2675 = vmatmul.f32.gmra.mxu0 %v2431_v11  ;;  %v1142_v11 = vpop.f32.mrf.mxu2  ;;  %v1999_v37 = vpop.f32.mrf.mxu1 }
 0x5af   : > { %v2000_v33 = vadd.f32 %v1999_v37, %v1766_v35  ;;  %1819 = vmatmul.f32.gmra.mxu3 %v1606_v6  ;;  %v1772_v37 = vpop.f32.mrf.mxu3 }
 0x5b0   : > { %2052 = vmatmul.f32.gmra.mxu1 %v1607_v24  ;;  %v1610_v24 = vld [vmem:[#allocation2 + $0x370] sm:$0xff] }
 0x5b3   : > { %v5351_v22 = vpop.f32.mrf.mxu0 }
 0x5b4   : > { %5971 = vst [vmem:[#allocation47_spill] sm:$0xff] %v5351_v22  ;;  %v1617_v22 = vld [vmem:[#allocation2 + $0x3a8] sm:$0xff] }
 0x5b6   : > { %2678 = vmatmul.f32.gmra.mxu0 %v2433_v20  ;;  %v5367_v20 = vadd.f32 %v2000_v33, %v1133_v63  ;;  %v1145_v18 = vpop.f32.mrf.mxu2  ;;  %v2002_v2 = vpop.f32.mrf.mxu1  ;;  %v995_v63 = vld [vmem:[%s5907_s5 + $0x1c0] sm:$0xff] }
 0x5b7   : > { %v2003_v45 = vadd.f32 %v2002_v2, %v1769_v15  ;;  %1195 = vmatmul.f32.gmra.mxu2 %v995_v63  ;;  %v1608_v2 = vld [vmem:[#allocation2 + $0x360] sm:$0xff] }
 0x5b8   : > { %5976 = vst [vmem:[#allocation52_spill] sm:$0xff] %v5367_v20  ;;  %1822 = vmatmul.f32.gmra.mxu3 %v1608_v2 }
 0x5b9   : > { %v5374_v26 = vadd.f32 %v2003_v45, %v1136_v32  ;;  %v996_v32 = vld [vmem:[%s5907_s5 + $0x1c8] sm:$0xff] }
 0x5bb   : > { %v5358_v39 = vpop.f32.mrf.mxu0  ;;  %5978 = vst [vmem:[#allocation54_spill] sm:$0xff] %v5374_v26  ;;  %v2463_v26 = vld [vmem:[#allocation5 + $0x1c8] sm:$0xff] }
 0x5bc   : > { %5973 = vst [vmem:[#allocation49_spill] sm:$0xff] %v5358_v39 }
 0x5be   : > { %2681 = vmatmul.f32.gmra.mxu0 %v2435_v58  ;;  %v2439_v58 = vld [vmem:[#allocation5 + $0x108] sm:$0xff]  ;;  %v1148_v35 = vpop.f32.mrf.mxu2  ;;  %v2005_v33 = vpop.f32.mrf.mxu1 }
 0x5bf   : > { %1198 = vmatmul.f32.gmra.mxu2 %v996_v32 }
 0x5c0   : > { %1825 = vmatmul.f32.gmra.mxu3 %v1610_v24 }
 0x5c3   : > { %v5365_v53 = vpop.f32.mrf.mxu0 }
 0x5c4   : > { %5975 = vst [vmem:[#allocation51_spill] sm:$0xff] %v5365_v53  ;;  %v2447_v53 = vld [vmem:[#allocation5 + $0x148] sm:$0xff] }
 0x5c6   : > { %2684 = vmatmul.f32.gmra.mxu0 %v2437_v42  ;;  %v2006_v42 = vadd.f32 %v2005_v33, %v1772_v37  ;;  %v5386_v45 = vpop.f32.mrf.mxu2  ;;  %v2008_v21 = vpop.f32.mrf.mxu1  ;;  %v2443_v37 = vld [vmem:[#allocation5 + $0x128] sm:$0xff] }
 0x5c7   : > { %v1609_v33 = vld [vmem:[#allocation2 + $0x368] sm:$0xff] }
 0x5c8   : > { %v5381_v15 = vadd.f32 %v2006_v42, %v1139_v61  ;;  %2055 = vmatmul.f32.gmra.mxu1 %v1609_v33  ;;  %v997_v42 = vld [vmem:[%s5907_s5 + $0x1d0] sm:$0xff]  ;;  %v1612_v33 = vld [vmem:[#allocation2 + $0x380] sm:$0xff] }
 0x5c9   : > { %1201 = vmatmul.f32.gmra.mxu2 %v997_v42  ;;  %1828 = vmatmul.f32.gmra.mxu3 %v1612_v33 }
 0x5ca   : > { %5980 = vst [vmem:[#allocation56_spill] sm:$0xff] %v5381_v15 }
 0x5cb   : > { %v5372_v56 = vpop.f32.mrf.mxu0 }
 0x5cc   : > { %5977 = vst [vmem:[#allocation53_spill] sm:$0xff] %v5372_v56  ;;  %v1627_v56 = vld [vmem:[#allocation2 + $0x3f8] sm:$0xff] }
 0x5ce   : > { %2687 = vmatmul.f32.gmra.mxu0 %v2439_v58  ;;  %v1775_v58 = vpop.f32.mrf.mxu3  ;;  %v2011_v2 = vpop.f32.mrf.mxu1 }
 0x5cf   : > { %v2009_v63 = vadd.f32 %v2008_v21, %v1775_v58 }
 0x5d0   : > { %2058 = vmatmul.f32.gmra.mxu1 %v1611_v29  ;;  %v999_v29 = vld [vmem:[%s5907_s5 + $0x1e0] sm:$0xff] }
 0x5d1   : > { %v5390_v61 = vadd.f32 %v2009_v63, %v1142_v11  ;;  %v998_v63 = vld [vmem:[%s5907_s5 + $0x1d8] sm:$0xff] }
 0x5d2   : > { %1204 = vmatmul.f32.gmra.mxu2 %v998_v63 }
 0x5d3   : > { %v5379_v62 = vpop.f32.mrf.mxu0 }
 0x5d4   : > { %5979 = vst [vmem:[#allocation55_spill] sm:$0xff] %v5379_v62 }
 0x5d6   : > { %2690 = vmatmul.f32.gmra.mxu0 %v2441_v8  ;;  %v5395_v8 = vpop.f32.mrf.mxu2  ;;  %v1778_v32 = vpop.f32.mrf.mxu3 }
 0x5d7   : > { %v2012_v58 = vadd.f32 %v2011_v2, %v1778_v32  ;;  %v2014_v24 = vpop.f32.mrf.mxu1 }
 0x5d8   : > { %2061 = vmatmul.f32.gmra.mxu1 %v1613_v57  ;;  %v1000_v57 = vld [vmem:[%s5907_s5 + $0x1e8] sm:$0xff] }
 0x5d9   : > { %v5399_v11 = vadd.f32 %v2012_v58, %v1145_v18  ;;  %v1614_v58 = vld [vmem:[#allocation2 + $0x390] sm:$0xff] }
 0x5da   : > { %1207 = vmatmul.f32.gmra.mxu2 %v999_v29  ;;  %1831 = vmatmul.f32.gmra.mxu3 %v1614_v58  ;;  %v2451_v58 = vld [vmem:[#allocation5 + $0x168] sm:$0xff] }
 0x5db   : > { %v5388_v6 = vpop.f32.mrf.mxu0 }
 0x5dc   : > { %5981 = vst [vmem:[#allocation57_spill] sm:$0xff] %v5388_v6  ;;  %v1629_v6 = vld [vmem:[#allocation2 + $0x408] sm:$0xff] }
 0x5de   : > { %2693 = vmatmul.f32.gmra.mxu0 %v2443_v37  ;;  %v5404_v37 = vpop.f32.mrf.mxu2  ;;  %v1781_v42 = vpop.f32.mrf.mxu3 }
 0x5df   : > { %v2015_v32 = vadd.f32 %v2014_v24, %v1781_v42  ;;  %v5413_v63 = vpop.f32.mrf.mxu1  ;;  %v2449_v24 = vld [vmem:[#allocation5 + $0x158] sm:$0xff] }
 0x5e0   : > { %2064 = vmatmul.f32.gmra.mxu1 %v1615_v48  ;;  %v1001_v48 = vld [vmem:[%s5907_s5 + $0x1f0] sm:$0xff] }
 0x5e1   : > { %v2374_v18 = vadd.f32 %v2015_v32, %v1148_v35  ;;  %v1616_v35 = vld [vmem:[#allocation2 + $0x3a0] sm:$0xff] }
 0x5e2   : > { %1210 = vmatmul.f32.gmra.mxu2 %v1000_v57  ;;  %1834 = vmatmul.f32.gmra.mxu3 %v1616_v35  ;;  %v1618_v57 = vld [vmem:[#allocation2 + $0x3b0] sm:$0xff] }
 0x5e3   : > { %v5397_v21 = vpop.f32.mrf.mxu0 }
 0x5e4   : > { %5982 = vst [vmem:[#allocation58_spill] sm:$0xff] %v5397_v21  ;;  %v2467_v21 = vld [vmem:[#allocation5 + $0x1e8] sm:$0xff] }
 0x5e6   : > { %2696 = vmatmul.f32.gmra.mxu0 %v2445_v30  ;;  %v5411_v30 = vpop.f32.mrf.mxu3  ;;  %v5415_v33 = vpop.f32.mrf.mxu2 }
 0x5e7   : > { %v5424_v32 = vpop.f32.mrf.mxu1 }
 0x5e8   : > { %2067 = vmatmul.f32.gmra.mxu1 %v1617_v22  ;;  %v1002_v22 = vld [vmem:[%s5907_s5 + $0x1f8] sm:$0xff] }
 0x5ea   : > { %1213 = vmatmul.f32.gmra.mxu2 %v1001_v48  ;;  %1837 = vmatmul.f32.gmra.mxu3 %v1618_v57  ;;  %v1620_v48 = vld [vmem:[#allocation2 + $0x3c0] sm:$0xff] }
 0x5eb   : > { %v5406_v2 = vpop.f32.mrf.mxu0 }
 0x5ee   : > { %2699 = vmatmul.f32.gmra.mxu0 %v2447_v53  ;;  %v5422_v53 = vpop.f32.mrf.mxu3  ;;  %v5428_v39 = vpop.f32.mrf.mxu2 }
 0x5ef   : > { %v5435_v35 = vpop.f32.mrf.mxu1 }
 0x5f0   : > { %2070 = vmatmul.f32.gmra.mxu1 %v1619_v50 }
 0x5f2   : > { %1216 = vmatmul.f32.gmra.mxu2 %v1002_v22  ;;  %1840 = vmatmul.f32.gmra.mxu3 %v1620_v48  ;;  %v1622_v22 = vld [vmem:[#allocation2 + $0x3d0] sm:$0xff]  ;;  %v5458_v48 = vpop.permute.xlu2 %2902 }
 0x5f3   : > { %v5417_v42 = vpop.f32.mrf.mxu0 }
 0x5f6   : > { %2702 = vmatmul.f32.gmra.mxu0 %v2449_v24  ;;  %v5433_v24 = vpop.f32.mrf.mxu3 }
 0x5f7   : > { %v5448_v55 = vpop.f32.mrf.mxu1 }
 0x5f8   : > { %2073 = vmatmul.f32.gmra.mxu1 %v1621_v46  ;;  %v2457_v46 = vld [vmem:[#allocation5 + $0x198] sm:$0xff] }
 0x5fa   : > { %1219 = vmatmul.f32.gmra.mxu2 %v1003_v40  ;;  %1843 = vmatmul.f32.gmra.mxu3 %v1622_v22  ;;  %v1004_v40 = vld [vmem:[%s5907_s5 + $0x208] sm:$0xff]  ;;  %v5475_v36 = vpop.permute.xlu2 %2992 }
 0x5fb   : > { %v5426_v29 = vpop.f32.mrf.mxu0  ;;  %5984 = vst [vmem:[#allocation60_spill] sm:$0xff] %v5475_v36 }
 0x5fe   : > { %2705 = vmatmul.f32.gmra.mxu0 %v2451_v58  ;;  %v5444_v58 = vpop.f32.mrf.mxu2  ;;  %v5446_v57 = vpop.f32.mrf.mxu3 }
 0x600   : > { %2076 = vmatmul.f32.gmra.mxu1 %v1623_v28  ;;  %v2459_v28 = vld [vmem:[#allocation5 + $0x1a8] sm:$0xff] }
 0x602   : > { %1222 = vmatmul.f32.gmra.mxu2 %v1004_v40  ;;  %v1005_v40 = vld [vmem:[%s5907_s5 + $0x210] sm:$0xff]  ;;  %v5490_v19 = vpop.permute.xlu2 %2887 }
 0x603   : > { %v5437_v14 = vpop.f32.mrf.mxu0 }
 0x606   : > { %2708 = vmatmul.f32.gmra.mxu0 %v2453_v59  ;;  %v5454_v59 = vpop.permute.xlu0 %2912  ;;  %v5460_v17 = vpop.f32.mrf.mxu2 }
 0x607   : > { %v5462_v34 = vpop.f32.mrf.mxu3 }
 0x608   : > { %2079 = vmatmul.f32.gmra.mxu1 %v1625_v54 }
 0x60a   : > { %1225 = vmatmul.f32.gmra.mxu2 %v1005_v40  ;;  %v1628_v40 = vld [vmem:[#allocation2 + $0x400] sm:$0xff] }
 0x60b   : > { %v2664_v43 = vpop.f32.mrf.mxu0 }
 0x60c   : > { %v2665_v50 = vadd.f32 %v2664_v43, %v5228_v1  ;;  %v5464_v1 = vpop.f32.mrf.mxu1 }
 0x60e   : > { %v5456_v60 = vadd.f32 %v2665_v50, %v2374_v18  ;;  %2711 = vmatmul.f32.gmra.mxu0 %v2455_v51  ;;  %v1624_v51 = vld [vmem:[#allocation2 + $0x3e0] sm:$0xff]  ;;  %v5471_v18 = vpop.permute.xlu1 %2907  ;;  %v5473_v50 = vpop.permute.xlu0 %2997 }
 0x60f   : > { %1846 = vmatmul.f32.gmra.mxu3 %v1624_v51  ;;  %5983 = vst [vmem:[#allocation59_spill] sm:$0xff] %v5473_v50  ;;  %v1799_v22 = vpop.f32.mrf.mxu3  ;;  %v5477_v44 = vpop.f32.mrf.mxu2 }
 0x610   : > { %5985 = vst [vmem:[#allocation61_spill] sm:$0xff] %v5477_v44  ;;  %2082 = vmatmul.f32.gmra.mxu1 %v1627_v56  ;;  %v1007_v56 = vld [vmem:[%s5907_s5 + $0x220] sm:$0xff] }
 0x613   : > { %v5466_v43 = vpop.f32.mrf.mxu0 }
 0x614   : > { %v2032_v16 = vpop.f32.mrf.mxu1 }
 0x615   : > { %v2033_v15 = vadd.f32 %v2032_v16, %v1799_v22 }
 0x616   : > { %2714 = vmatmul.f32.gmra.mxu0 %v2457_v46  ;;  %v1626_v46 = vld [vmem:[#allocation2 + $0x3f0] sm:$0xff]  ;;  %v5484_v51 = vpop.permute.xlu1 %2897  ;;  %v5486_v36 = vpop.permute.xlu0 %2892 }
 0x617   : > { %1849 = vmatmul.f32.gmra.mxu3 %v1626_v46  ;;  %v1802_v50 = vpop.f32.mrf.mxu3  ;;  %v5492_v54 = vpop.f32.mrf.mxu2  ;;  %v2380_v16 = vadd.f32 %v2033_v15, %v5444_v58 }
 0x618   : > { %5986 = vst [vmem:[#allocation62_spill] sm:$0xff] %v5492_v54  ;;  %2085 = vmatmul.f32.gmra.mxu1 %v1629_v6 }
 0x61b   : > { %v5479_v12 = vpop.f32.mrf.mxu0 }
 0x61c   : > { %v2035_v52 = vpop.f32.mrf.mxu1 }
 0x61e   : > { %2717 = vmatmul.f32.gmra.mxu0 %v2459_v28  ;;  %v1006_v28 = vld [vmem:[%s5907_s5 + $0x218] sm:$0xff]  ;;  %v5501_v62 = vpop.permute.xlu1 %2987  ;;  %v5503_v23 = vpop.permute.xlu0 %2982 }
 0x61f   : > { %1228 = vmatmul.f32.gmra.mxu2 %v1006_v28  ;;  %1852 = vmatmul.f32.gmra.mxu3 %v1628_v40  ;;  %v5497_v46 = vpop.f32.mrf.mxu3  ;;  %5989 = vst [vmem:[#allocation65_spill] sm:$0xff] %v5501_v62  ;;  %v1630_v28 = vld [vmem:[#allocation2 + $0x410] sm:$0xff]  ;;  %v5510_v40 = vpop.f32.mrf.mxu2  ;;  %v2465_v62 = vld [vmem:[#allocation5 + $0x1d8] sm:$0xff] }
 0x620   : > { %5987 = vst [vmem:[#allocation63_spill] sm:$0xff] %v5497_v46 }
 0x621   : > { %5990 = vst [vmem:[#allocation66_spill] sm:$0xff] %v5503_v23  ;;  %v1631_v23 = vld [vmem:[#allocation2 + $0x418] sm:$0xff] }
 0x622   : > { %5992 = vst [vmem:[#allocation68_spill] sm:$0xff] %v5510_v40  ;;  %2088 = vmatmul.f32.gmra.mxu1 %v1631_v23 }
 0x623   : > { %v5488_v44 = vpop.f32.mrf.mxu0 }
 0x624   : > { %v5499_v20 = vpop.f32.mrf.mxu1 }
 0x625   : > { %5988 = vst [vmem:[#allocation64_spill] sm:$0xff] %v5499_v20 }
 0x626   : > { %2720 = vmatmul.f32.gmra.mxu0 %v2461_v41  ;;  %v5508_v41 = vpop.permute.xlu2 %2977  ;;  %v5516_v6 = vpop.permute.xlu1 %2882 }
 0x627   : > { %1231 = vmatmul.f32.gmra.mxu2 %v1007_v56  ;;  %5991 = vst [vmem:[#allocation67_spill] sm:$0xff] %v5508_v41  ;;  %1855 = vmatmul.f32.gmra.mxu3 %v1630_v28  ;;  %v5512_v54 = vpop.f32.mrf.mxu3  ;;  %v1008_v56 = vld [vmem:[%s5907_s5 + $0x228] sm:$0xff]  ;;  %v1632_v41 = vld [vmem:[#allocation2 + $0x420] sm:$0xff]  ;;  %v5525_v40 = vpop.f32.mrf.mxu2 }
 0x628   : > { %5993 = vst [vmem:[#allocation69_spill] sm:$0xff] %v5512_v54 }
 0x629   : > { %5995 = vst [vmem:[#allocation71_spill] sm:$0xff] %v5525_v40  ;;  %v1634_v40 = vld [vmem:[#allocation2 + $0x430] sm:$0xff] }
 0x62a   : > { %2091 = vmatmul.f32.gmra.mxu1 %v1633_v0  ;;  %v2024_v0 = vadd.f32 %v5435_v35, %v5433_v24 }
 0x62b   : > { %v2676_v27 = vpop.f32.mrf.mxu0 }
 0x62c   : > { %v5514_v20 = vpop.f32.mrf.mxu1 }
 0x62d   : > { %5994 = vst [vmem:[#allocation70_spill] sm:$0xff] %v5514_v20 }
 0x62e   : > { %2723 = vmatmul.f32.gmra.mxu0 %v2463_v26  ;;  %v5521_v26 = vpop.permute.xlu0 %2877  ;;  %v5523_v28 = vpop.permute.xlu2 %2872 }
 0x62f   : > { %1234 = vmatmul.f32.gmra.mxu2 %v1008_v56  ;;  %1858 = vmatmul.f32.gmra.mxu3 %v1632_v41  ;;  %v5527_v20 = vpop.f32.mrf.mxu3  ;;  %v2030_v56 = vadd.f32 %v5464_v1, %v5462_v34  ;;  %v2027_v41 = vadd.f32 %v5448_v55, %v5446_v57  ;;  %v2021_v57 = vadd.f32 %v5424_v32, %v5422_v53  ;;  %v5559_v35 = vpop.f32.mrf.mxu2  ;;  %v2469_v53 = vld [vmem:[#allocation5 + $0x1f8] sm:$0xff] }
 0x630   : > { %5996 = vst [vmem:[#allocation72_spill] sm:$0xff] %v5527_v20  ;;  %v5538_v20 = vpop.permute.xlu1 %2972  ;;  %v1635_v32 = vld [vmem:[#allocation2 + $0x438] sm:$0xff] }
 0x631   : > { %v2379_v1 = vadd.f32 %v2030_v56, %v5428_v39 }
 0x632   : > { %2094 = vmatmul.f32.gmra.mxu1 %v1635_v32 }
 0x633   : > { %v2679_v46 = vpop.f32.mrf.mxu0 }
 0x634   : > { %v5529_v54 = vpop.f32.mrf.mxu1  ;;  %v2680_v55 = vadd.f32 %v2679_v46, %v5238_v49  ;;  %v2018_v49 = vadd.f32 %v5413_v63, %v5411_v30  ;;  %v2674_v46 = vadd.f32 %v5488_v44, %v5234_v31  ;;  %v1636_v30 = vld [vmem:[#allocation2 + $0x440] sm:$0xff]  ;;  %v2668_v44 = vadd.f32 %v5466_v43, %v5230_v10  ;;  %v2471_v43 = vld [vmem:[#allocation5 + $0x208] sm:$0xff] }
 0x635   : > { %5997 = vst [vmem:[#allocation73_spill] sm:$0xff] %v5529_v54  ;;  %v2036_v54 = vadd.f32 %v2035_v52, %v1802_v50  ;;  %v2378_v52 = vadd.f32 %v2027_v41, %v5415_v33  ;;  %v2377_v50 = vadd.f32 %v2024_v0, %v5404_v37  ;;  %v2662_v0 = vadd.f32 %v5437_v14, %v5226_v5 }
 0x636   : > { %2726 = vmatmul.f32.gmra.mxu0 %v2465_v62  ;;  %v1009_v62 = vld [vmem:[%s5907_s5 + $0x230] sm:$0xff]  ;;  %v5542_v34 = vpop.permute.xlu0 %2967  ;;  %v2375_v31 = vadd.f32 %v2018_v49, %v5386_v45  ;;  %v2656_v49 = vadd.f32 %v5417_v42, %v5222_v25  ;;  %v3048_v25 = vadd.f32 %v5516_v6, %v5456_v60 }
 0x637   : > { %1237 = vmatmul.f32.gmra.mxu2 %v1009_v62  ;;  %1861 = vmatmul.f32.gmra.mxu3 %v1634_v40  ;;  %v5550_v62 = vpop.f32.mrf.mxu3  ;;  %v2381_v24 = vadd.f32 %v2036_v54, %v5460_v17  ;;  %v2773_v40 = vadd.f32 %v2680_v55, %v2379_v1  ;;  %v2671_v17 = vadd.f32 %v5479_v12, %v5232_v47  ;;  %v6006_v6 = vld [vmem:[#allocation23_spill] sm:$0xff] }
 0x63b   : > { %v2682_v23 = vpop.f32.mrf.mxu0 }
 0x63c   : > { %v2683_v22 = vadd.f32 %v2682_v23, %v5240_v3  ;;  %v5552_v15 = vpop.f32.mrf.mxu1  ;;  %v5554_v3 = vpop.permute.xlu2 %2962  ;;  %v2771_v23 = vadd.f32 %v2674_v46, %v2377_v50 }
 0x63d   : > { %5998 = vst [vmem:[#allocation74_spill] sm:$0xff] %v5554_v3 }
 0x63e   : > { %2729 = vmatmul.f32.gmra.mxu0 %v2467_v21  ;;  %v2677_v21 = vadd.f32 %v2676_v27, %v5236_v9  ;;  %v2774_v58 = vadd.f32 %v2683_v22, %v2380_v16  ;;  %v1010_v27 = vld [vmem:[%s5907_s5 + $0x238] sm:$0xff]  ;;  %v2376_v9 = vadd.f32 %v2021_v57, %v5395_v8  ;;  %v3053_v8 = vadd.f32 %v5471_v18, %v2773_v40  ;;  %v5586_v45 = vpop.permute.xlu0 %2862  ;;  %v1637_v18 = vld [vmem:[#allocation2 + $0x448] sm:$0xff] }
 0x63f   : > { %1240 = vmatmul.f32.gmra.mxu2 %v1010_v27  ;;  %1864 = vmatmul.f32.gmra.mxu3 %v1636_v30  ;;  %v5581_v12 = vpop.f32.mrf.mxu3  ;;  %v3051_v55 = vadd.f32 %v5484_v51, %v2771_v23  ;;  %v2767_v51 = vadd.f32 %v2662_v0, %v5399_v11  ;;  %v6002_v40 = vld [vmem:[#allocation58_spill] sm:$0xff] }
 0x640   : > { %v2772_v63 = vadd.f32 %v2677_v21, %v2378_v52  ;;  %v3054_v37 = vadd.f32 %v5454_v59, %v2774_v58  ;;  %v2770_v59 = vadd.f32 %v2671_v17, %v2376_v9  ;;  %v3093_v52 = vmul.f32 0.01, %v3053_v8  ;;  %v5595_v21 = vpop.f32.mrf.mxu2  ;;  %2097 = vmatmul.f32.gmra.mxu1 %v1637_v18  ;;  %v6004_v9 = vld [vmem:[#allocation56_spill] sm:$0xff]  ;;  %v6009_v23 = vld [vmem:[#allocation54_spill] sm:$0xff] }
 0x641   : > { %v2659_v58 = vadd.f32 %v5426_v29, %v5224_v4  ;;  %v3091_v32 = vmul.f32 0.01, %v3051_v55  ;;  %v2653_v4 = vadd.f32 %v5406_v2, %v5220_v7  ;;  %v2473_v7 = vld [vmem:[#allocation5 + $0x218] sm:$0xff]  ;;  %v2765_v17 = vadd.f32 %v2656_v49, %v6004_v9 }
 0x642   : > { %v3052_v41 = vadd.f32 %v5458_v48, %v2772_v63  ;;  %v3094_v22 = vmul.f32 0.01, %v3054_v37  ;;  %v1638_v48 = vld [vmem:[#allocation2 + $0x450] sm:$0xff]  ;;  %v3050_v5 = vadd.f32 %v5486_v36, %v2770_v59  ;;  %v1639_v2 = vld [vmem:[#allocation2 + $0x458] sm:$0xff]  ;;  %v3047_v30 = vadd.f32 %v5521_v26, %v2767_v51 }
 0x643   : > { %v2685_v39 = vpop.f32.mrf.mxu0  ;;  %v2766_v50 = vadd.f32 %v2659_v58, %v5390_v61  ;;  %v3131_v61 = vmax.f32 %v3051_v55, %v3091_v32  ;;  %v3088_v26 = vmul.f32 0.01, %v3048_v25 }
 0x644   : > { %v2686_v33 = vadd.f32 %v2685_v39, %v5242_v13  ;;  %v5575_v13 = vpop.permute.xlu1 %2867  ;;  %v5583_v56 = vpop.f32.mrf.mxu1  ;;  %v3134_v14 = vmax.f32 %v3054_v37, %v3094_v22  ;;  %v3090_v11 = vmul.f32 0.01, %v3050_v5  ;;  %v6007_v37 = vld [vmem:[#allocation57_spill] sm:$0xff]  ;;  %v6011_v22 = vld [vmem:[#allocation55_spill] sm:$0xff] }
 0x645   : > { %v5592_v1 = vpop.permute.xlu2 %2857  ;;  %v3128_v51 = vmax.f32 %v3048_v25, %v3088_v26  ;;  %v1643_v26 = vld [vmem:[#allocation2 + $0x478] sm:$0xff] }
 0x646   : > { %v2775_v54 = vadd.f32 %v2686_v33, %v2381_v24  ;;  %2732 = vmatmul.f32.gmra.mxu0 %v2469_v53  ;;  %v3092_v24 = vmul.f32 0.01, %v3052_v41  ;;  %v3133_v53 = vmax.f32 %v3053_v8, %v3093_v52  ;;  %v5621_v60 = vpop.permute.xlu0 %2952  ;;  %v2764_v8 = vadd.f32 %v2653_v4, %v6009_v23  ;;  %v6013_v52 = vld [vmem:[#allocation21_spill] sm:$0xff]  ;;  %v1641_v4 = vld [vmem:[#allocation2 + $0x468] sm:$0xff] }
 0x647   : > { %1867 = vmatmul.f32.gmra.mxu3 %v1638_v48  ;;  %v5606_v29 = vpop.f32.mrf.mxu3  ;;  %6005 = vst [vmem:[#allocation58_spill] sm:$0xff] %v5621_v60  ;;  %v3130_v59 = vmax.f32 %v3050_v5, %v3090_v11  ;;  %v6014_v48 = vld [vmem:[#allocation53_spill] sm:$0xff] }
 0x648   : > { %v3055_v47 = vadd.f32 %v5442_v38, %v2775_v54  ;;  %v2769_v38 = vadd.f32 %v2668_v44, %v2375_v31  ;;  %v3132_v42 = vmax.f32 %v3052_v41, %v3092_v24  ;;  %2100 = vmatmul.f32.gmra.mxu1 %v1639_v2  ;;  %v2647_v54 = vadd.f32 %v6007_v37, %v6006_v6  ;;  %v1640_v31 = vld [vmem:[#allocation2 + $0x460] sm:$0xff]  ;;  %v5629_v41 = vpop.f32.mrf.mxu2 }
 0x649   : > { %v3044_v49 = vadd.f32 %v5586_v45, %v2764_v8 }
 0x64a   : > { %v3095_v16 = vmul.f32 0.01, %v3055_v47  ;;  %v3049_v39 = vadd.f32 %v5490_v19, %v2769_v38  ;;  %v6001_v19 = vld [vmem:[#allocation24_spill] sm:$0xff]  ;;  %v3045_v38 = vadd.f32 %v5575_v13, %v2765_v17  ;;  %v2475_v13 = vld [vmem:[#allocation5 + $0x228] sm:$0xff] }
 0x64b   : > { %v5590_v10 = vpop.f32.mrf.mxu0  ;;  %v2650_v33 = vadd.f32 %v6002_v40, %v6001_v19  ;;  %v3084_v9 = vmul.f32 0.01, %v3044_v49 }
 0x64c   : > { %5999 = vst [vmem:[#allocation75_spill] sm:$0xff] %v5590_v10  ;;  %v3135_v57 = vmax.f32 %v3055_v47, %v3095_v16  ;;  %v5608_v36 = vpop.f32.mrf.mxu1  ;;  %v5613_v46 = vpop.permute.xlu1 %2957  ;;  %v3089_v63 = vmul.f32 0.01, %v3049_v39  ;;  %v3046_v47 = vadd.f32 %v5523_v28, %v2766_v50  ;;  %v6010_v16 = vld [vmem:[#allocation22_spill] sm:$0xff]  ;;  %v2641_v28 = vadd.f32 %v6014_v48, %v6013_v52  ;;  %v3160_v52 = vld [vmem:[#allocation7] sm:$0xff] }
 0x64d   : > { %6000 = vst [vmem:[#allocation76_spill] sm:$0xff] %v5613_v46  ;;  %v5625_v44 = vpop.permute.xlu2 %2947  ;;  %v2644_v0 = vadd.f32 %v6011_v22, %v6010_v16  ;;  %v3085_v19 = vmul.f32 0.01, %v3045_v38  ;;  %v3124_v23 = vmax.f32 %v3044_v49, %v3084_v9 }
 0x64e   : > { %2735 = vmatmul.f32.gmra.mxu0 %v2471_v43  ;;  %3401 = vmatpush.msra.mxu2 %v3135_v57  ;;  %6008 = vst [vmem:[#allocation56_spill] sm:$0xff] %v5625_v44  ;;  %v6012_v43 = vld [vmem:[#allocation52_spill] sm:$0xff]  ;;  %v3129_v55 = vmax.f32 %v3049_v39, %v3089_v63  ;;  %v3087_v57 = vmul.f32 0.01, %v3047_v30  ;;  %v2848_v17 = vpop.permute.xlu0 %2847 }
 0x64f   : > { %1870 = vmatmul.f32.gmra.mxu3 %v1640_v31  ;;  %v2763_v18 = vadd.f32 %v2650_v33, %v6012_v43  ;;  %v5637_v58 = vpop.f32.mrf.mxu3  ;;  %v6017_v39 = vld [vmem:[#allocation48_spill] sm:$0xff]  ;;  %v1642_v33 = vld [vmem:[#allocation2 + $0x470] sm:$0xff]  ;;  %v3125_v6 = vmax.f32 %v3045_v38, %v3085_v19  ;;  %v2483_v19 = vld [vmem:[#allocation5 + $0x268] sm:$0xff] }
 0x650   : > { %3402 = vmatpush.msra.mxu2 %v3134_v14  ;;  %v6015_v14 = vld [vmem:[#allocation50_spill] sm:$0xff]  ;;  %v2761_v50 = vadd.f32 %v2644_v0, %v6017_v39  ;;  %v3127_v11 = vmax.f32 %v3047_v30, %v3087_v57  ;;  %2103 = vmatmul.f32.gmra.mxu1 %v1641_v4  ;;  %v5648_v37 = vpop.f32.mrf.mxu2 }
 0x651   : > { %v2762_v24 = vadd.f32 %v2647_v54, %v6015_v14 }
 0x652   : > { %3403 = vmatpush.msra.mxu2 %v3133_v53  ;;  %v3086_v53 = vmul.f32 0.01, %v3046_v47  ;;  %v3041_v63 = vadd.f32 %v2848_v17, %v2761_v50 }
 0x653   : > { %v5617_v27 = vpop.f32.mrf.mxu0 }
 0x654   : > { %6003 = vst [vmem:[#allocation24_spill] sm:$0xff] %v5617_v27  ;;  %3404 = vmatpush.msra.mxu2 %v3132_v42  ;;  %v5639_v5 = vpop.f32.mrf.mxu1  ;;  %v3043_v42 = vadd.f32 %v5592_v1, %v2763_v18  ;;  %v2853_v40 = vpop.permute.xlu1 %2852  ;;  %v3126_v25 = vmax.f32 %v3046_v47, %v3086_v53  ;;  %v2477_v47 = vld [vmem:[#allocation5 + $0x238] sm:$0xff]  ;;  %v3081_v22 = vmul.f32 0.01, %v3041_v63  ;;  %v6023_v27 = vld [vmem:[#allocation39_spill] sm:$0xff] }
 0x655   : > { %v3042_v45 = vadd.f32 %v2853_v40, %v2762_v24 }
 0x656   : > { %2738 = vmatmul.f32.gmra.mxu0 %v2473_v7  ;;  %3405 = vmatpush.msra.mxu2 %v3131_v61  ;;  %v6018_v7 = vld [vmem:[#allocation46_spill] sm:$0xff]  ;;  %v2843_v61 = vpop.permute.xlu2 %2842  ;;  %v3083_v1 = vmul.f32 0.01, %v3043_v42  ;;  %v3121_v18 = vmax.f32 %v3041_v63, %v3081_v22  ;;  %v3172_v63 = vld [vmem:[#allocation7 + $0x60] sm:$0xff] }
 0x657   : > { %v2760_v2 = vadd.f32 %v2641_v28, %v6018_v7  ;;  %1873 = vmatmul.f32.gmra.mxu3 %v1642_v33  ;;  %v5650_v30 = vpop.f32.mrf.mxu3  ;;  %v3082_v8 = vmul.f32 0.01, %v3042_v45  ;;  %v2479_v28 = vld [vmem:[#allocation5 + $0x248] sm:$0xff] }
 0x658   : > { %3406 = vmatpush.msra.mxu2 %v3130_v59  ;;  %v3123_v16 = vmax.f32 %v3043_v42, %v3083_v1  ;;  %2106 = vmatmul.f32.gmra.mxu1 %v1643_v26  ;;  %v1196_v14 = vpop.f32.mrf.mxu2  ;;  %v3166_v42 = vld [vmem:[#allocation7 + $0x30] sm:$0xff]  ;;  %v3169_v33 = vld [vmem:[#allocation7 + $0x48] sm:$0xff]  ;;  %v6021_v1 = vld [vmem:[#allocation33_spill] sm:$0xff] }
 0x659   : > { %v3040_v31 = vadd.f32 %v2843_v61, %v2760_v2  ;;  %v3122_v0 = vmax.f32 %v3042_v45, %v3082_v8  ;;  %v2485_v45 = vld [vmem:[#allocation5 + $0x278] sm:$0xff] }
 0x65a   : > { %3407 = vmatpush.msra.mxu2 %v3129_v55  ;;  %v3175_v26 = vld [vmem:[#allocation7 + $0x78] sm:$0xff] }
 0x65b   : > { %v5643_v32 = vpop.f32.mrf.mxu0  ;;  %v3080_v43 = vmul.f32 0.01, %v3040_v31 }
 0x65c   : > { %6016 = vst [vmem:[#allocation23_spill] sm:$0xff] %v5643_v32  ;;  %3408 = vmatpush.msra.mxu2 %v3128_v51  ;;  %v5652_v54 = vpop.f32.mrf.mxu1  ;;  %v3163_v51 = vld [vmem:[#allocation7 + $0x18] sm:$0xff] }
 0x65d   : > { %v3120_v57 = vmax.f32 %v3040_v31, %v3080_v43 }
 0x65e   : > { %2741 = vmatmul.f32.gmra.mxu0 %v2475_v13  ;;  %3409 = vmatpush.msra.mxu2 %v3127_v11  ;;  %v2481_v13 = vld [vmem:[#allocation5 + $0x258] sm:$0xff] }
 0x65f   : > { %v1829_v38 = vpop.f32.mrf.mxu3 }
 0x660   : > { %3410 = vmatpush.msra.mxu2 %v3126_v25  ;;  %v5664_v4 = vpop.f32.mrf.mxu2 }
 0x662   : > { %3411 = vmatpush.msra.mxu2 %v3125_v6 }
 0x663   : > { %v5654_v59 = vpop.f32.mrf.mxu0 }
 0x664   : > { %6019 = vst [vmem:[#allocation57_spill] sm:$0xff] %v5654_v59  ;;  %3412 = vmatpush.msra.mxu2 %v3124_v23  ;;  %v2062_v55 = vpop.f32.mrf.mxu1 }
 0x665   : > { %v2063_v9 = vadd.f32 %v2062_v55, %v1829_v38 }
 0x666   : > { %2744 = vmatmul.f32.gmra.mxu0 %v2477_v47  ;;  %3413 = vmatpush.msra.mxu2 %v3123_v16 }
 0x667   : > { %v5658_v24 = vpop.f32.mrf.mxu3  ;;  %v2390_v61 = vadd.f32 %v2063_v9, %v1196_v14  ;;  %v3187_v9 = vld [vmem:[#allocation7 + $0xd8] sm:$0xff] }
 0x668   : > { %3414 = vmatpush.msra.mxu2 %v3122_v0  ;;  %v5672_v40 = vpop.f32.mrf.mxu2 }
 0x66a   : > { %3415 = vmatpush.msra.mxu2 %v3121_v18  ;;  %v3178_v18 = vld [vmem:[#allocation7 + $0x90] sm:$0xff] }
 0x66b   : > { %v5656_v48 = vpop.f32.mrf.mxu0 }
 0x66c   : > { %6020 = vst [vmem:[#allocation54_spill] sm:$0xff] %v5656_v48  ;;  %3416 = vmatpush.msra.mxu2 %v3120_v57  ;;  %v5660_v49 = vpop.f32.mrf.mxu1  ;;  %v6025_v48 = vld [vmem:[#allocation37_spill] sm:$0xff] }
 0x66d   : > { %3417 = vmatmul.f32.vlgmr.msra.gmra.mxu2 %v3160_v52 }
 0x66e   : > { %2747 = vmatmul.f32.gmra.mxu0 %v2479_v28  ;;  %v3181_v28 = vld [vmem:[#allocation7 + $0xa8] sm:$0xff] }
 0x66f   : > { %v5666_v39 = vpop.f32.mrf.mxu3 }
 0x670   : > { %v1205_v17 = vpop.f32.mrf.mxu2 }
 0x673   : > { %v5662_v53 = vpop.f32.mrf.mxu0 }
 0x674   : > { %v5668_v50 = vpop.f32.mrf.mxu1 }
 0x675   : > { %3420 = vmatmul.f32.gmra.mxu2 %v3163_v51 }
 0x676   : > { %2750 = vmatmul.f32.gmra.mxu0 %v2481_v13  ;;  %v3184_v13 = vld [vmem:[#allocation7 + $0xc0] sm:$0xff] }
 0x677   : > { %v1838_v25 = vpop.f32.mrf.mxu3 }
 0x678   : > { %v1208_v16 = vpop.f32.mrf.mxu2 }
 0x67b   : > { %v5670_v11 = vpop.f32.mrf.mxu0 }
 0x67c   : > { %v2071_v7 = vpop.f32.mrf.mxu1 }
 0x67d   : > { %3423 = vmatmul.f32.gmra.mxu2 %v3166_v42  ;;  %v2072_v59 = vadd.f32 %v2071_v7, %v1838_v25 }
 0x67e   : > { %2753 = vmatmul.f32.gmra.mxu0 %v2483_v19 }
 0x67f   : > { %v1841_v8 = vpop.f32.mrf.mxu3 }
 0x680   : > { %v1211_v38 = vpop.f32.mrf.mxu2 }
 0x683   : > { %v5674_v2 = vpop.f32.mrf.mxu0 }
 0x684   : > { %v2074_v23 = vpop.f32.mrf.mxu1 }
 0x685   : > { %3426 = vmatmul.f32.gmra.mxu2 %v3169_v33  ;;  %v2075_v44 = vadd.f32 %v2074_v23, %v1841_v8  ;;  %v3193_v8 = vld [vmem:[#allocation7 + $0x108] sm:$0xff] }
 0x686   : > { %2756 = vmatmul.f32.gmra.mxu0 %v2485_v45 }
 0x687   : > { %v1844_v43 = vpop.f32.mrf.mxu3 }
 0x688   : > { %v1214_v51 = vpop.f32.mrf.mxu2 }
 0x68b   : > { %v2712_v6 = vpop.f32.mrf.mxu0 }
 0x68c   : > { %v2713_v31 = vadd.f32 %v2712_v6, %v6021_v1  ;;  %v2077_v0 = vpop.f32.mrf.mxu1 }
 0x68d   : > { %3429 = vmatmul.f32.gmra.mxu2 %v3172_v63  ;;  %v2078_v10 = vadd.f32 %v2077_v0, %v1844_v43 }
 0x68e   : > { %v5677_v47 = vadd.f32 %v2713_v31, %v2390_v61  ;;  %v3190_v31 = vld [vmem:[#allocation7 + $0xf0] sm:$0xff] }
 0x68f   : > { %v2395_v3 = vadd.f32 %v2078_v10, %v1211_v38  ;;  %v6027_v10 = vld [vmem:[#allocation40_spill] sm:$0xff]  ;;  %v6028_v38 = vld [vmem:[#allocation35_spill] sm:$0xff] }
 0x690   : > { %6022 = vst [vmem:[#allocation22_spill] sm:$0xff] %v5677_v47  ;;  %v1217_v45 = vpop.f32.mrf.mxu2  ;;  %v6024_v47 = vld [vmem:[#allocation38_spill] sm:$0xff] }
 0x692   : > { %v1847_v52 = vpop.f32.mrf.mxu3 }
 0x693   : > { %v2715_v22 = vpop.f32.mrf.mxu0 }
 0x694   : > { %v2080_v55 = vpop.f32.mrf.mxu1 }
 0x695   : > { %3432 = vmatmul.f32.gmra.mxu2 %v3175_v26  ;;  %v2081_v1 = vadd.f32 %v2080_v55, %v1847_v52  ;;  %v2069_v55 = vadd.f32 %v5668_v50, %v5666_v39  ;;  %v2394_v52 = vadd.f32 %v2075_v44, %v1208_v16 }
 0x698   : > { %v1220_v26 = vpop.f32.mrf.mxu2 }
 0x69a   : > { %v1850_v33 = vpop.f32.mrf.mxu3 }
 0x69b   : > { %v2718_v57 = vpop.f32.mrf.mxu0 }
 0x69c   : > { %v2083_v42 = vpop.f32.mrf.mxu1  ;;  %v2719_v39 = vadd.f32 %v2718_v57, %v6028_v38  ;;  %v6039_v38 = vld [vmem:[#allocation72_spill] sm:$0xff] }
 0x69d   : > { %3435 = vmatmul.f32.gmra.mxu2 %v3178_v18  ;;  %v2084_v32 = vadd.f32 %v2083_v42, %v1850_v33  ;;  %v2393_v42 = vadd.f32 %v2072_v59, %v1205_v17  ;;  %v6026_v33 = vld [vmem:[#allocation36_spill] sm:$0xff]  ;;  %v2060_v59 = vadd.f32 %v5652_v54, %v5650_v30 }
 0x69f   : > { %v2397_v23 = vadd.f32 %v2084_v32, %v1217_v45  ;;  %v6029_v32 = vld [vmem:[#allocation60_spill] sm:$0xff] }
 0x6a0   : > { %v5694_v44 = vpop.f32.mrf.mxu2 }
 0x6a2   : > { %v1853_v6 = vpop.f32.mrf.mxu3 }
 0x6a3   : > { %v2721_v14 = vpop.f32.mrf.mxu0 }
 0x6a4   : > { %v2086_v63 = vpop.f32.mrf.mxu1 }
 0x6a5   : > { %3438 = vmatmul.f32.gmra.mxu2 %v3181_v28  ;;  %v2396_v28 = vadd.f32 %v2081_v1, %v1214_v51  ;;  %v2722_v1 = vadd.f32 %v2721_v14, %v6026_v33  ;;  %v2087_v16 = vadd.f32 %v2086_v63, %v1853_v6  ;;  %v6031_v14 = vld [vmem:[#allocation65_spill] sm:$0xff]  ;;  %v6033_v63 = vld [vmem:[#allocation66_spill] sm:$0xff]  ;;  %v6037_v33 = vld [vmem:[#allocation31_spill] sm:$0xff] }
 0x6a7   : > { %v2787_v17 = vadd.f32 %v2722_v1, %v2393_v42  ;;  %v2398_v54 = vadd.f32 %v2087_v16, %v1220_v26  ;;  %v2051_v26 = vadd.f32 %v5583_v56, %v5581_v12  ;;  %v6043_v16 = vld [vmem:[#allocation22_spill] sm:$0xff] }
 0x6a8   : > { %v5730_v56 = vpop.f32.mrf.mxu2 }
 0x6ab   : > { %v2724_v19 = vpop.f32.mrf.mxu0 }
 0x6ac   : > { %v5680_v46 = vpop.f32.mrf.mxu1  ;;  %v2725_v0 = vadd.f32 %v2724_v19, %v6025_v48  ;;  %v6032_v19 = vld [vmem:[#allocation59_spill] sm:$0xff] }
 0x6ad   : > { %3441 = vmatmul.f32.gmra.mxu2 %v3184_v13  ;;  %v5682_v13 = vpop.f32.mrf.mxu3 }
 0x6b3   : > { %v2727_v61 = vpop.f32.mrf.mxu0 }
 0x6b4   : > { %v5703_v45 = vpop.f32.mrf.mxu1 }
 0x6b5   : > { %3444 = vmatmul.f32.gmra.mxu2 %v3187_v9  ;;  %v2728_v9 = vadd.f32 %v2727_v61, %v6024_v47  ;;  %v2392_v47 = vadd.f32 %v2069_v55, %v5672_v40  ;;  %v2057_v61 = vadd.f32 %v5639_v5, %v5637_v58  ;;  %v6034_v55 = vld [vmem:[#allocation32_spill] sm:$0xff]  ;;  %v6035_v58 = vld [vmem:[#allocation67_spill] sm:$0xff] }
 0x6b6   : > { %v3067_v5 = vadd.f32 %v6035_v58, %v2787_v17  ;;  %v6045_v17 = vld [vmem:[#allocation69_spill] sm:$0xff]  ;;  %v6054_v58 = vld [vmem:[#allocation27_spill] sm:$0xff] }
 0x6b7   : > { %v2789_v7 = vadd.f32 %v2728_v9, %v2395_v3  ;;  %v6030_v3 = vld [vmem:[#allocation34_spill] sm:$0xff]  ;;  %v2389_v9 = vadd.f32 %v2060_v59, %v5648_v37  ;;  %v2388_v42 = vadd.f32 %v2057_v61, %v5629_v41  ;;  %v6049_v61 = vld [vmem:[#allocation57_spill] sm:$0xff] }
 0x6b9   : > { %v3069_v40 = vadd.f32 %v6031_v14, %v2789_v7  ;;  %v2048_v7 = vadd.f32 %v5552_v15, %v5550_v62  ;;  %v6042_v62 = vld [vmem:[#allocation54_spill] sm:$0xff] }
 0x6ba   : > { %v6046_v14 = vld [vmem:[#allocation70_spill] sm:$0xff] }
 0x6bb   : > { %v2730_v18 = vpop.f32.mrf.mxu0 }
 0x6bc   : > { %v2731_v60 = vadd.f32 %v2730_v18, %v6023_v27  ;;  %v2066_v27 = vadd.f32 %v5660_v49, %v5658_v24  ;;  %v2716_v49 = vadd.f32 %v2715_v22, %v6030_v3  ;;  %v5707_v18 = vpop.f32.mrf.mxu3  ;;  %v2054_v22 = vadd.f32 %v5608_v36, %v5606_v29  ;;  %v3199_v3 = vld [vmem:[#allocation7 + $0x138] sm:$0xff] }
 0x6bd   : > { %3447 = vmatmul.f32.gmra.mxu2 %v3190_v31  ;;  %v2786_v31 = vadd.f32 %v2719_v39, %v2392_v47  ;;  %v2707_v29 = vadd.f32 %v5670_v11, %v6037_v33  ;;  %v3107_v47 = vmul.f32 0.01, %v3067_v5  ;;  %v6040_v39 = vld [vmem:[#allocation73_spill] sm:$0xff] }
 0x6be   : > { %v2790_v43 = vadd.f32 %v2731_v60, %v2396_v28  ;;  %v2788_v60 = vadd.f32 %v2725_v0, %v2394_v52  ;;  %v2391_v24 = vadd.f32 %v2066_v27, %v5664_v4  ;;  %v3196_v4 = vld [vmem:[#allocation7 + $0x120] sm:$0xff]  ;;  %v2710_v52 = vadd.f32 %v5674_v2, %v6034_v55  ;;  %v6052_v55 = vld [vmem:[#allocation64_spill] sm:$0xff] }
 0x6bf   : > { %v3066_v36 = vadd.f32 %v5538_v20, %v2786_v31 }
 0x6c0   : > { %v3070_v48 = vadd.f32 %v6029_v32, %v2790_v43  ;;  %v3068_v6 = vadd.f32 %v6033_v63, %v2788_v60  ;;  %v2785_v0 = vadd.f32 %v2716_v49, %v2391_v24  ;;  %v2783_v41 = vadd.f32 %v2710_v52, %v2389_v9  ;;  %v5740_v49 = vpop.f32.mrf.mxu1  ;;  %v6051_v9 = vld [vmem:[#allocation63_spill] sm:$0xff] }
 0x6c1   : > { %v2045_v60 = vadd.f32 %v6040_v39, %v6039_v38  ;;  %v2386_v32 = vadd.f32 %v2051_v26, %v5559_v35  ;;  %v6048_v35 = vld [vmem:[#allocation28_spill] sm:$0xff]  ;;  %v2039_v52 = vadd.f32 %v6052_v55, %v6051_v9  ;;  %v6061_v38 = vld [vmem:[#allocation61_spill] sm:$0xff] }
 0x6c2   : > { %v3110_v28 = vmul.f32 0.01, %v3070_v48  ;;  %v3108_v1 = vmul.f32 0.01, %v3068_v6  ;;  %v3065_v11 = vadd.f32 %v5542_v34, %v2785_v0  ;;  %v3106_v34 = vmul.f32 0.01, %v3066_v36 }
 0x6c3   : > { %v2733_v51 = vpop.f32.mrf.mxu0  ;;  %v2698_v31 = vadd.f32 %v6049_v61, %v6048_v35  ;;  %v6053_v0 = vld [vmem:[#allocation68_spill] sm:$0xff]  ;;  %v2382_v39 = vadd.f32 %v2039_v52, %v6061_v38  ;;  %v3214_v38 = vld [vmem:[#allocation7 + $0x1b0] sm:$0xff] }
 0x6c4   : > { %v2734_v25 = vadd.f32 %v2733_v51, %v6027_v10  ;;  %v3109_v51 = vmul.f32 0.01, %v3069_v40  ;;  %v3150_v2 = vmax.f32 %v3070_v48, %v3110_v28  ;;  %v2387_v10 = vadd.f32 %v2054_v22, %v5595_v21  ;;  %v6041_v48 = vld [vmem:[#allocation29_spill] sm:$0xff]  ;;  %v2943_v21 = vpop.permute.xlu1 %2942 }
 0x6c5   : > { %3450 = vmatmul.f32.gmra.mxu2 %v3193_v8  ;;  %v6036_v8 = vld [vmem:[#allocation41_spill] sm:$0xff]  ;;  %v2701_v15 = vadd.f32 %v6042_v62, %v6041_v48  ;;  %v3148_v24 = vmax.f32 %v3068_v6, %v3108_v1  ;;  %v3147_v6 = vmax.f32 %v3067_v5, %v3107_v47  ;;  %v3105_v22 = vmul.f32 0.01, %v3065_v11  ;;  %v6058_v5 = vld [vmem:[#allocation26_spill] sm:$0xff]  ;;  %v5765_v62 = vpop.f32.mrf.mxu2 }
 0x6c6   : > { %v2791_v50 = vadd.f32 %v2734_v25, %v2397_v23  ;;  %v6038_v25 = vld [vmem:[#allocation30_spill] sm:$0xff]  ;;  %v3149_v20 = vmax.f32 %v3069_v40, %v3109_v51  ;;  %v2042_v40 = vadd.f32 %v6046_v14, %v6045_v17 }
 0x6c7   : > { %v2704_v12 = vadd.f32 %v5662_v53, %v6038_v25  ;;  %v6044_v53 = vld [vmem:[#allocation74_spill] sm:$0xff] }
 0x6c8   : > { %v3071_v57 = vadd.f32 %v6032_v19, %v2791_v50  ;;  %v2782_v50 = vadd.f32 %v2707_v29, %v2388_v42  ;;  %v3064_v59 = vadd.f32 %v6044_v53, %v6043_v16  ;;  %v6047_v19 = vld [vmem:[#allocation71_spill] sm:$0xff]  ;;  %v6056_v51 = vld [vmem:[#allocation58_spill] sm:$0xff]  ;;  %v3146_v42 = vmax.f32 %v3066_v36, %v3106_v34  ;;  %v2938_v29 = vpop.permute.xlu0 %2937  ;;  %v2098_v14 = vpop.f32.mrf.mxu1 }
 0x6c9   : > { %v3202_v16 = vld [vmem:[#allocation7 + $0x150] sm:$0xff] }
 0x6ca   : > { %v3111_v30 = vmul.f32 0.01, %v3071_v57  ;;  %v3062_v26 = vadd.f32 %v6056_v51, %v2782_v50  ;;  %v3104_v33 = vmul.f32 0.01, %v3064_v59 }
 0x6cb   : > { %v2736_v43 = vpop.f32.mrf.mxu0 }
 0x6cc   : > { %v3151_v23 = vmax.f32 %v3071_v57, %v3111_v30  ;;  %v2737_v27 = vadd.f32 %v2736_v43, %v6036_v8  ;;  %v2385_v57 = vadd.f32 %v2048_v7, %v6047_v19  ;;  %v5749_v30 = vpop.f32.mrf.mxu3  ;;  %v2384_v43 = vadd.f32 %v2045_v60, %v6053_v0  ;;  %v6059_v7 = vld [vmem:[#allocation24_spill] sm:$0xff]  ;;  %v6062_v60 = vld [vmem:[#allocation25_spill] sm:$0xff] }
 0x6cd   : > { %3453 = vmatmul.f32.gmra.mxu2 %v3196_v4  ;;  %v6050_v4 = vld [vmem:[#allocation76_spill] sm:$0xff]  ;;  %v3144_v50 = vmax.f32 %v3064_v59, %v3104_v33  ;;  %v3102_v53 = vmul.f32 0.01, %v3062_v26  ;;  %v1232_v52 = vpop.f32.mrf.mxu2  ;;  %v3208_v33 = vld [vmem:[#allocation7 + $0x180] sm:$0xff] }
 0x6ce   : > { %v5723_v37 = vadd.f32 %v2737_v27, %v2398_v54  ;;  %3478 = vmatpush.msra.mxu3 %v3151_v23  ;;  %v2781_v54 = vadd.f32 %v2704_v12, %v2387_v10  ;;  %v3063_v28 = vadd.f32 %v6050_v4, %v2783_v41  ;;  %v6055_v23 = vld [vmem:[#allocation23_spill] sm:$0xff]  ;;  %v2780_v27 = vadd.f32 %v2701_v15, %v2386_v32  ;;  %v6060_v12 = vld [vmem:[#allocation56_spill] sm:$0xff] }
 0x6cf   : > { %v2695_v8 = vadd.f32 %v6055_v23, %v6054_v58  ;;  %v2692_v10 = vadd.f32 %v6059_v7, %v6058_v5  ;;  %v2779_v25 = vadd.f32 %v2698_v31, %v2385_v57  ;;  %v6063_v32 = vld [vmem:[#allocation75_spill] sm:$0xff]  ;;  %v3142_v61 = vmax.f32 %v3062_v26, %v3102_v53  ;;  %v2928_v31 = vpop.permute.xlu2 %2927  ;;  %v6064_v53 = vld [vmem:[#allocation49_spill] sm:$0xff] }
 0x6d0   : > { %3479 = vmatpush.msra.mxu3 %v3150_v2  ;;  %v6057_v2 = vld [vmem:[#allocation62_spill] sm:$0xff]  ;;  %v3061_v41 = vadd.f32 %v6060_v12, %v2781_v54  ;;  %v3103_v47 = vmul.f32 0.01, %v3063_v28  ;;  %v2689_v48 = vadd.f32 %v6063_v32, %v6062_v60  ;;  %v3060_v15 = vadd.f32 %v2943_v21, %v2780_v27  ;;  %v2101_v27 = vpop.f32.mrf.mxu1 }
 0x6d1   : > { %v2383_v1 = vadd.f32 %v2042_v40, %v6057_v2  ;;  %v2778_v36 = vadd.f32 %v2695_v8, %v2384_v43  ;;  %v3059_v34 = vadd.f32 %v2938_v29, %v2779_v25  ;;  %v2933_v40 = vpop.permute.xlu1 %2932  ;;  %v3161_v29 = vld [vmem:[#allocation7 + $0x8] sm:$0xff]  ;;  %v3164_v25 = vld [vmem:[#allocation7 + $0x20] sm:$0xff] }
 0x6d2   : > { %3480 = vmatpush.msra.mxu3 %v3149_v20  ;;  %v3145_v20 = vmax.f32 %v3065_v11, %v3105_v22  ;;  %v3143_v11 = vmax.f32 %v3063_v28, %v3103_v47  ;;  %v3101_v17 = vmul.f32 0.01, %v3061_v41  ;;  %v2776_v57 = vadd.f32 %v2689_v48, %v2382_v39  ;;  %v3205_v28 = vld [vmem:[#allocation7 + $0x168] sm:$0xff]  ;;  %v3167_v39 = vld [vmem:[#allocation7 + $0x38] sm:$0xff] }
 0x6d3   : > { %v5747_v63 = vpop.f32.mrf.mxu0  ;;  %v3058_v35 = vadd.f32 %v2933_v40, %v2778_v36  ;;  %v3100_v21 = vmul.f32 0.01, %v3060_v15  ;;  %v3099_v4 = vmul.f32 0.01, %v3059_v34  ;;  %v6065_v40 = vld [vmem:[#allocation47_spill] sm:$0xff] }
 0x6d4   : > { %3481 = vmatpush.msra.mxu3 %v3148_v24  ;;  %v1865_v19 = vpop.f32.mrf.mxu3  ;;  %v3141_v54 = vmax.f32 %v3061_v41, %v3101_v17 }
 0x6d5   : > { %3456 = vmatmul.f32.gmra.mxu2 %v3199_v3  ;;  %v2777_v3 = vadd.f32 %v2692_v10, %v2383_v1  ;;  %v3140_v9 = vmax.f32 %v3060_v15, %v3100_v21  ;;  %v3098_v55 = vmul.f32 0.01, %v3058_v35  ;;  %v3139_v43 = vmax.f32 %v3059_v34, %v3099_v4  ;;  %v1235_v1 = vpop.f32.mrf.mxu2  ;;  %v3211_v10 = vld [vmem:[#allocation7 + $0x198] sm:$0xff] }
 0x6d6   : > { %3482 = vmatpush.msra.mxu3 %v3147_v6  ;;  %v2923_v6 = vpop.permute.xlu0 %2922 }
 0x6d7   : > { %v3057_v59 = vadd.f32 %v2928_v31, %v2777_v3  ;;  %v3056_v22 = vadd.f32 %v2923_v6, %v2776_v57  ;;  %v3138_v23 = vmax.f32 %v3058_v35, %v3098_v55  ;;  %v3033_v15 = vpop.permute.xlu2 %3032  ;;  %v2093_v35 = vadd.f32 %v5703_v45, %v5707_v18  ;;  %v6066_v31 = vld [vmem:[#allocation45_spill] sm:$0xff] }
 0x6d8   : > { %3483 = vmatpush.msra.mxu3 %v3146_v42  ;;  %v2104_v5 = vpop.f32.mrf.mxu1 }
 0x6d9   : > { %v3097_v58 = vmul.f32 0.01, %v3057_v59  ;;  %v3096_v8 = vmul.f32 0.01, %v3056_v22 }
 0x6da   : > { %3484 = vmatpush.msra.mxu3 %v3145_v20  ;;  %v3038_v20 = vpop.permute.xlu1 %3037 }
 0x6db   : > { %v5767_v24 = vpop.f32.mrf.mxu0  ;;  %v3137_v26 = vmax.f32 %v3057_v59, %v3097_v58  ;;  %v3136_v42 = vmax.f32 %v3056_v22, %v3096_v8  ;;  %v2090_v22 = vadd.f32 %v5680_v46, %v5682_v13  ;;  %v6069_v58 = vld [vmem:[#allocation43_spill] sm:$0xff] }
 0x6dc   : > { %3485 = vmatpush.msra.mxu3 %v3144_v50  ;;  %v1868_v51 = vpop.f32.mrf.mxu3  ;;  %v2099_v50 = vadd.f32 %v2098_v14, %v1865_v19  ;;  %v3217_v14 = vld [vmem:[#allocation7 + $0x1c8] sm:$0xff]  ;;  %v3170_v19 = vld [vmem:[#allocation7 + $0x50] sm:$0xff] }
 0x6dd   : > { %3459 = vmatmul.f32.gmra.mxu2 %v3202_v16  ;;  %v1238_v41 = vpop.f32.mrf.mxu2  ;;  %v2102_v36 = vadd.f32 %v2101_v27, %v1868_v51  ;;  %v2399_v13 = vadd.f32 %v2090_v22, %v5694_v44  ;;  %v3180_v22 = vld [vmem:[#allocation7 + $0xa0] sm:$0xff] }
 0x6de   : > { %3486 = vmatpush.msra.mxu3 %v3143_v11  ;;  %v2096_v11 = vadd.f32 %v5740_v49, %v5749_v30  ;;  %v2402_v21 = vadd.f32 %v2099_v50, %v1232_v52  ;;  %v3028_v6 = vpop.permute.xlu0 %3027  ;;  %v6067_v30 = vld [vmem:[#allocation44_spill] sm:$0xff]  ;;  %v2400_v52 = vadd.f32 %v2093_v35, %v5730_v56  ;;  %v3185_v35 = vld [vmem:[#allocation7 + $0xc8] sm:$0xff] }
 0x6df   : > { %v2403_v17 = vadd.f32 %v2102_v36, %v1235_v1  ;;  %v3018_v46 = vpop.permute.xlu2 %3017  ;;  %v3173_v1 = vld [vmem:[#allocation7 + $0x68] sm:$0xff]  ;;  %v3176_v36 = vld [vmem:[#allocation7 + $0x80] sm:$0xff] }
 0x6e0   : > { %3487 = vmatpush.msra.mxu3 %v3142_v61  ;;  %v2107_v60 = vpop.f32.mrf.mxu1  ;;  %v2401_v49 = vadd.f32 %v2096_v11, %v5765_v62  ;;  %v6070_v62 = vld [vmem:[#allocation42_spill] sm:$0xff]  ;;  %v3179_v11 = vld [vmem:[#allocation7 + $0x98] sm:$0xff] }
 0x6e2   : > { %3488 = vmatpush.msra.mxu3 %v3141_v54  ;;  %v3023_v18 = vpop.permute.xlu1 %3022 }
 0x6e3   : > { %v2745_v0 = vpop.f32.mrf.mxu0 }
 0x6e4   : > { %3489 = vmatpush.msra.mxu3 %v3140_v9  ;;  %v1871_v7 = vpop.f32.mrf.mxu3 }
 0x6e5   : > { %3462 = vmatmul.f32.gmra.mxu2 %v3205_v28  ;;  %v2105_v47 = vadd.f32 %v2104_v5, %v1871_v7  ;;  %v1241_v61 = vpop.f32.mrf.mxu2  ;;  %v2746_v28 = vadd.f32 %v2745_v0, %v6067_v30  ;;  %v2740_v0 = vadd.f32 %v5747_v63, %v6070_v62  ;;  %v3183_v30 = vld [vmem:[#allocation7 + $0xb8] sm:$0xff] }
 0x6e6   : > { %3490 = vmatpush.msra.mxu3 %v3139_v43  ;;  %v6068_v43 = vld [vmem:[#allocation51_spill] sm:$0xff] }
 0x6e7   : > { %v2404_v16 = vadd.f32 %v2105_v47, %v1238_v41  ;;  %v2793_v7 = vadd.f32 %v2740_v0, %v2399_v13  ;;  %v3195_v13 = vld [vmem:[#allocation7 + $0x118] sm:$0xff] }
 0x6e8   : > { %3491 = vmatpush.msra.mxu3 %v3138_v23  ;;  %v2743_v23 = vadd.f32 %v5767_v24, %v6069_v58  ;;  %v3219_v58 = vld [vmem:[#allocation7 + $0x1d8] sm:$0xff] }
 0x6ea   : > { %3492 = vmatpush.msra.mxu3 %v3137_v26  ;;  %v2795_v26 = vadd.f32 %v2746_v28, %v2401_v49  ;;  %v3008_v63 = vpop.permute.xlu1 %3007  ;;  %v3200_v49 = vld [vmem:[#allocation7 + $0x140] sm:$0xff] }
 0x6eb   : > { %v2748_v2 = vpop.f32.mrf.mxu0 }
 0x6ec   : > { %3493 = vmatpush.msra.mxu3 %v3136_v42  ;;  %v1874_v48 = vpop.f32.mrf.mxu3  ;;  %v2749_v59 = vadd.f32 %v2748_v2, %v6066_v31  ;;  %v3171_v31 = vld [vmem:[#allocation7 + $0x58] sm:$0xff] }
 0x6ed   : > { %3465 = vmatmul.f32.gmra.mxu2 %v3208_v33  ;;  %3494 = vmatmul.f32.vlgmr.msra.gmra.mxu3 %v3161_v29  ;;  %v2108_v34 = vadd.f32 %v2107_v60, %v1874_v48  ;;  %v2794_v29 = vadd.f32 %v2743_v23, %v2400_v52  ;;  %v3003_v60 = vpop.permute.xlu2 %3002  ;;  %v3189_v52 = vld [vmem:[#allocation7 + $0xe8] sm:$0xff] }
 0x6ee   : > { %v2796_v8 = vadd.f32 %v2749_v59, %v2402_v21  ;;  %v3188_v21 = vld [vmem:[#allocation7 + $0xe0] sm:$0xff]  ;;  %v3191_v59 = vld [vmem:[#allocation7 + $0xf8] sm:$0xff] }
 0x6ef   : > { %v2405_v4 = vadd.f32 %v2108_v34, %v1241_v61  ;;  %v3168_v61 = vld [vmem:[#allocation7 + $0x40] sm:$0xff] }
 0x6f0   : > { %v3076_v2 = vadd.f32 %v3023_v18, %v2796_v8  ;;  %v3206_v18 = vld [vmem:[#allocation7 + $0x170] sm:$0xff]  ;;  %v3209_v8 = vld [vmem:[#allocation7 + $0x188] sm:$0xff] }
 0x6f2   : > { %v3116_v47 = vmul.f32 0.01, %v3076_v2 }
 0x6f3   : > { %v2751_v12 = vpop.f32.mrf.mxu0 }
 0x6f4   : > { %v2752_v57 = vadd.f32 %v2751_v12, %v6065_v40  ;;  %v3013_v12 = vpop.permute.xlu0 %3012  ;;  %v3156_v48 = vmax.f32 %v3076_v2, %v3116_v47  ;;  %v3182_v40 = vld [vmem:[#allocation7 + $0xb0] sm:$0xff] }
 0x6f5   : > { %3468 = vmatmul.f32.gmra.mxu2 %v3211_v10  ;;  %3497 = vmatmul.f32.gmra.mxu3 %v3164_v25  ;;  %v3075_v10 = vadd.f32 %v3018_v46, %v2795_v26  ;;  %v3074_v41 = vadd.f32 %v3013_v12, %v2794_v29  ;;  %v3212_v46 = vld [vmem:[#allocation7 + $0x1a0] sm:$0xff]  ;;  %v3215_v26 = vld [vmem:[#allocation7 + $0x1b8] sm:$0xff]  ;;  %v3218_v2 = vld [vmem:[#allocation7 + $0x1d0] sm:$0xff] }
 0x6f6   : > { %v2797_v55 = vadd.f32 %v2752_v57, %v2403_v17  ;;  %v3162_v17 = vld [vmem:[#allocation7 + $0x10] sm:$0xff]  ;;  %v3165_v57 = vld [vmem:[#allocation7 + $0x28] sm:$0xff] }
 0x6f8   : > { %v3077_v42 = vadd.f32 %v3028_v6, %v2797_v55  ;;  %v3197_v6 = vld [vmem:[#allocation7 + $0x128] sm:$0xff]  ;;  %v3203_v55 = vld [vmem:[#allocation7 + $0x158] sm:$0xff] }
 0x6fa   : > { %v3117_v25 = vmul.f32 0.01, %v3077_v42 }
 0x6fb   : > { %v2754_v32 = vpop.f32.mrf.mxu0 }
 0x6fc   : > { %v2755_v3 = vadd.f32 %v2754_v32, %v6064_v53  ;;  %v3072_v32 = vadd.f32 %v3003_v60, %v5723_v37  ;;  %v3243_v12 = vpop.permute.xlu0 %3242  ;;  %v3248_v60 = vpop.permute.xlu1 %3247 }
 0x6fd   : > { %3471 = vmatmul.f32.gmra.mxu2 %v3214_v38  ;;  %3500 = vmatmul.f32.gmra.mxu3 %v3167_v39  ;;  %v3073_v38 = vadd.f32 %v3008_v63, %v2793_v7  ;;  %v3115_v39 = vmul.f32 0.01, %v3075_v10  ;;  %v3204_v7 = vld [vmem:[#allocation7 + $0x160] sm:$0xff] }
 0x6fe   : > { %v2798_v54 = vadd.f32 %v2755_v3, %v2404_v16  ;;  %v3112_v3 = vmul.f32 0.01, %v3072_v32 }
 0x6ff   : > { %v3155_v50 = vmax.f32 %v3075_v10, %v3115_v39  ;;  %v3113_v16 = vmul.f32 0.01, %v3073_v38 }
 0x700   : > { %v3078_v27 = vadd.f32 %v3033_v15, %v2798_v54  ;;  %v3114_v15 = vmul.f32 0.01, %v3074_v41  ;;  %v3152_v37 = vmax.f32 %v3072_v32, %v3112_v3  ;;  %v3174_v54 = vld [vmem:[#allocation7 + $0x70] sm:$0xff] }
 0x701   : > { %v3153_v34 = vmax.f32 %v3073_v38, %v3113_v16  ;;  %v3210_v38 = vld [vmem:[#allocation7 + $0x190] sm:$0xff] }
 0x702   : > { %v3118_v5 = vmul.f32 0.01, %v3078_v27  ;;  %v3154_v53 = vmax.f32 %v3074_v41, %v3114_v15 }
 0x703   : > { %v2757_v9 = vpop.f32.mrf.mxu0 }
 0x704   : > { %v2758_v45 = vadd.f32 %v2757_v9, %v6068_v43  ;;  %v3158_v44 = vmax.f32 %v3078_v27, %v3118_v5  ;;  %v3186_v43 = vld [vmem:[#allocation7 + $0xd0] sm:$0xff]  ;;  %v3192_v27 = vld [vmem:[#allocation7 + $0x100] sm:$0xff] }
 0x705   : > { %3474 = vmatmul.f32.gmra.mxu2 %v3217_v14  ;;  %3503 = vmatmul.f32.gmra.mxu3 %v3170_v19  ;;  %v3194_v14 = vld [vmem:[#allocation7 + $0x110] sm:$0xff]  ;;  %v3177_v19 = vld [vmem:[#allocation7 + $0x88] sm:$0xff] }
 0x706   : > { %v2799_v51 = vadd.f32 %v2758_v45, %v2405_v4  ;;  %v3418_v4 = vpop.f32.mrf.mxu2 }
 0x707   : > { %v3419_v41 = vadd.f32 %v3418_v4, %v3243_v12 }
 0x708   : > { %v3079_v33 = vadd.f32 %v3038_v20, %v2799_v51  ;;  %v3157_v20 = vmax.f32 %v3077_v42, %v3117_v25  ;;  %v3198_v42 = vld [vmem:[#allocation7 + $0x130] sm:$0xff]  ;;  %v3207_v25 = vld [vmem:[#allocation7 + $0x178] sm:$0xff] }
 0x70a   : > { %v3119_v56 = vmul.f32 0.01, %v3079_v33 }
 0x70c   : > { %v3159_v24 = vmax.f32 %v3079_v33, %v3119_v56  ;;  %v3201_v56 = vld [vmem:[#allocation7 + $0x148] sm:$0xff] }
 0x70d   : > { %3506 = vmatmul.f32.gmra.mxu3 %v3173_v1 }
 0x70e   : > { %3563 = vmatpush.msra.mxu1 %v3159_v24  ;;  %3866 = vmatpush.msrb.mxu2 %v3159_v24  ;;  %v5794_v9 = vpop.f32.mrf.mxu2 }
 0x70f   : > { %v3422_v32 = vadd.f32 %v5794_v9, %v3248_v60 }
 0x710   : > { %3564 = vmatpush.msra.mxu1 %v3158_v44  ;;  %3867 = vmatpush.msrb.mxu2 %v3158_v44 }
 0x712   : > { %3565 = vmatpush.msra.mxu1 %v3157_v20  ;;  %3868 = vmatpush.msrb.mxu2 %v3157_v20 }
 0x714   : > { %3566 = vmatpush.msra.mxu1 %v3156_v48  ;;  %3869 = vmatpush.msrb.mxu2 %v3156_v48 }
 0x715   : > { %3509 = vmatmul.f32.gmra.mxu3 %v3176_v36 }
 0x716   : > { %3567 = vmatpush.msra.mxu1 %v3155_v50  ;;  %3870 = vmatpush.msrb.mxu2 %v3155_v50  ;;  %v5798_v28 = vpop.f32.mrf.mxu2  ;;  %v3213_v50 = vld [vmem:[#allocation7 + $0x1a8] sm:$0xff] }
 0x718   : > { %3568 = vmatpush.msra.mxu1 %v3154_v53  ;;  %3871 = vmatpush.msrb.mxu2 %v3154_v53  ;;  %v3253_v53 = vpop.permute.xlu2 %3252 }
 0x71a   : > { %3569 = vmatpush.msra.mxu1 %v3153_v34  ;;  %3872 = vmatpush.msrb.mxu2 %v3153_v34  ;;  %v3425_v34 = vadd.f32 %v5798_v28, %v3253_v53 }
 0x71c   : > { %3570 = vmatpush.msra.mxu1 %v3152_v37  ;;  %3873 = vmatpush.msrb.mxu2 %v3152_v37 }
 0x71d   : > { %3512 = vmatmul.f32.gmra.mxu3 %v3179_v11  ;;  %3840 = vmatmul.msk.f32.vlgmr.msra.gmra.mxu1 %vm3340_vm3, %v3162_v17 }
 0x71e   : > { %v5801_v45 = vpop.f32.mrf.mxu2  ;;  %3859 = vmatmul.msk.f32.vlgmr.msrb.gmra.mxu2 %vm3340_vm3, %v3219_v58 }
 0x720   : > { %v3268_v28 = vpop.permute.xlu2 %3267 }
 0x725   : > { %3515 = vmatmul.f32.gmra.mxu3 %v3182_v40  ;;  %3841 = vmatmul.msk.f32.gmra.mxu1 %vm3340_vm3, %v3165_v57  ;;  %v3216_v40 = vld [vmem:[#allocation7 + $0x1c0] sm:$0xff] }
 0x726   : > { %v5805_v23 = vpop.f32.mrf.mxu2 }
 0x72d   : > { %3518 = vmatmul.f32.gmra.mxu3 %v3185_v35  ;;  %3842 = vmatmul.msk.f32.gmra.mxu1 %vm3340_vm3, %v3168_v61  ;;  %v3258_v35 = vpop.permute.xlu0 %3257 }
 0x72e   : > { %v5808_v62 = vpop.f32.mrf.mxu2  ;;  %v3428_v61 = vadd.f32 %v5801_v45, %v3258_v35 }
 0x735   : > { %3521 = vmatmul.f32.gmra.mxu3 %v3188_v21  ;;  %3843 = vmatmul.msk.f32.gmra.mxu1 %vm3340_vm3, %v3171_v31 }
 0x736   : > { %v5812_v33 = vpop.f32.mrf.mxu2 }
 0x73d   : > { %3524 = vmatmul.f32.gmra.mxu3 %v3191_v59  ;;  %3844 = vmatmul.msk.f32.gmra.mxu1 %vm3340_vm3, %v3174_v54 }
 0x73e   : > { %v5815_v1 = vpop.f32.mrf.mxu2 }
 0x745   : > { %3527 = vmatmul.f32.gmra.mxu3 %v3194_v14  ;;  %3845 = vmatmul.msk.f32.gmra.mxu1 %vm3340_vm3, %v3177_v19  ;;  %v3263_v14 = vpop.permute.xlu1 %3262 }
 0x746   : > { %v5818_v24 = vpop.f32.mrf.mxu2  ;;  %v3431_v19 = vadd.f32 %v5805_v23, %v3263_v14 }
 0x74d   : > { %3530 = vmatmul.f32.gmra.mxu3 %v3197_v6  ;;  %3846 = vmatmul.msk.f32.gmra.mxu1 %vm3340_vm3, %v3180_v22 }
 0x74e   : > { %v5824_v39 = vpop.f32.mrf.mxu2 }
 0x755   : > { %3533 = vmatmul.f32.gmra.mxu3 %v3200_v49  ;;  %3847 = vmatmul.msk.f32.gmra.mxu1 %vm3340_vm3, %v3183_v30 }
 0x756   : > { %v5833_v3 = vpop.f32.mrf.mxu2 }
 0x75d   : > { %3536 = vmatmul.f32.gmra.mxu3 %v3203_v55  ;;  %3848 = vmatmul.msk.f32.gmra.mxu1 %vm3340_vm3, %v3186_v43  ;;  %v3434_v55 = vadd.f32 %v5808_v62, %v3268_v28 }
 0x75e   : > { %v3451_v21 = vpop.f32.mrf.mxu2 }
 0x765   : > { %3539 = vmatmul.f32.gmra.mxu3 %v3206_v18  ;;  %3849 = vmatmul.msk.f32.gmra.mxu1 %vm3340_vm3, %v3189_v52 }
 0x766   : > { %v3454_v9 = vpop.f32.mrf.mxu2 }
 0x76d   : > { %3542 = vmatmul.f32.gmra.mxu3 %v3209_v8  ;;  %3850 = vmatmul.msk.f32.gmra.mxu1 %vm3340_vm3, %v3192_v27  ;;  %v3273_v8 = vpop.permute.xlu0 %3272 }
 0x76e   : > { %v3457_v58 = vpop.f32.mrf.mxu2  ;;  %v3437_v23 = vadd.f32 %v5812_v33, %v3273_v8 }
 0x770   : > { %v3495_v51 = vpop.f32.mrf.mxu3 }
 0x771   : > { %v3496_v47 = vadd.f32 %v3495_v51, %v3419_v41 }
 0x775   : > { %3545 = vmatmul.f32.gmra.mxu3 %v3212_v46  ;;  %3851 = vmatmul.msk.f32.gmra.mxu1 %vm3340_vm3, %v3195_v13 }
 0x778   : > { %v3498_v0 = vpop.f32.mrf.mxu3 }
 0x779   : > { %v3499_v36 = vadd.f32 %v3498_v0, %v3422_v32  ;;  %v3278_v0 = vpop.permute.xlu1 %3277 }
 0x77a   : > { %v3440_v62 = vadd.f32 %v5815_v1, %v3278_v0 }
 0x77d   : > { %3548 = vmatmul.f32.gmra.mxu3 %v3215_v26  ;;  %3852 = vmatmul.msk.f32.gmra.mxu1 %vm3340_vm3, %v3198_v42  ;;  %v3460_v26 = vpop.f32.mrf.mxu2 }
 0x780   : > { %v3501_v29 = vpop.f32.mrf.mxu3 }
 0x781   : > { %v3502_v11 = vadd.f32 %v3501_v29, %v3425_v34  ;;  %v3293_v32 = vpop.permute.xlu1 %3292 }
 0x785   : > { %3551 = vmatmul.f32.gmra.mxu3 %v3218_v2  ;;  %3853 = vmatmul.msk.f32.gmra.mxu1 %vm3340_vm3, %v3201_v56  ;;  %v3463_v33 = vpop.f32.mrf.mxu2 }
 0x788   : > { %v3504_v5 = vpop.f32.mrf.mxu3 }
 0x789   : > { %v3505_v59 = vadd.f32 %v3504_v5, %v3428_v61  ;;  %v3283_v5 = vpop.permute.xlu2 %3282 }
 0x78d   : > { %3854 = vmatmul.msk.f32.gmra.mxu1 %vm3340_vm3, %v3204_v7  ;;  %v3443_v7 = vadd.f32 %v5818_v24, %v3283_v5  ;;  %v3449_v24 = vadd.f32 %v5833_v3, %v3293_v32 }
 0x790   : > { %v3507_v10 = vpop.f32.mrf.mxu3 }
 0x791   : > { %v3508_v22 = vadd.f32 %v3507_v10, %v3431_v19  ;;  %v3298_v53 = vpop.permute.xlu2 %3297 }
 0x792   : > { %v3452_v34 = vadd.f32 %v3451_v21, %v3298_v53 }
 0x795   : > { %3855 = vmatmul.msk.f32.gmra.mxu1 %vm3340_vm3, %v3207_v25 }
 0x798   : > { %v3510_v44 = vpop.f32.mrf.mxu3 }
 0x799   : > { %v3511_v45 = vadd.f32 %v3510_v44, %v3434_v55  ;;  %v3288_v44 = vpop.permute.xlu0 %3287 }
 0x79a   : > { %v3572_v63 = vpop.f32.mrf.mxu1 }
 0x79b   : > { %v3573_v20 = vadd.f32 %v3572_v63, %v3496_v47  ;;  %v3446_v47 = vadd.f32 %v5824_v39, %v3288_v44 }
 0x79d   : > { %3632 = vst [vmem:[%s5826_s24] sm:$0xff] %v3573_v20  ;;  %3856 = vmatmul.msk.f32.gmra.mxu1 %vm3340_vm3, %v3210_v38  ;;  %v3466_v38 = vpop.f32.mrf.mxu2 }
 0x7a0   : > { %v3513_v48 = vpop.f32.mrf.mxu3 }
 0x7a1   : > { %v3514_v51 = vadd.f32 %v3513_v48, %v3437_v23 }
 0x7a2   : > { %v3575_v15 = vpop.f32.mrf.mxu1 }
 0x7a3   : > { %v3576_v16 = vadd.f32 %v3575_v15, %v3499_v36 }
 0x7a5   : > { %3633 = vst [vmem:[%s5826_s24 + $0x8] sm:$0xff] %v3576_v16  ;;  %3857 = vmatmul.msk.f32.gmra.mxu1 %vm3340_vm3, %v3213_v50  ;;  %v3469_v16 = vpop.f32.mrf.mxu2 }
 0x7a8   : > { %v3516_v37 = vpop.f32.mrf.mxu3 }
 0x7a9   : > { %v3517_v29 = vadd.f32 %v3516_v37, %v3440_v62 }
 0x7aa   : > { %v3578_v17 = vpop.f32.mrf.mxu1 }
 0x7ab   : > { %v3579_v57 = vadd.f32 %v3578_v17, %v3502_v11  ;;  %v3308_v11 = vpop.permute.xlu1 %3307 }
 0x7ac   : > { %v3458_v14 = vadd.f32 %v3457_v58, %v3308_v11 }
 0x7ad   : > { %3634 = vst [vmem:[%s5826_s24 + $0x10] sm:$0xff] %v3579_v57  ;;  %3858 = vmatmul.msk.f32.gmra.mxu1 %vm3340_vm3, %v3216_v40  ;;  %v3303_v57 = vpop.permute.xlu0 %3302  ;;  %v3472_v35 = vpop.f32.mrf.mxu2 }
 0x7ae   : > { %v3455_v61 = vadd.f32 %v3454_v9, %v3303_v57 }
 0x7b0   : > { %v3519_v31 = vpop.f32.mrf.mxu3 }
 0x7b1   : > { %v3520_v25 = vadd.f32 %v3519_v31, %v3443_v7 }
 0x7b2   : > { %v3581_v54 = vpop.f32.mrf.mxu1 }
 0x7b3   : > { %v3582_v4 = vadd.f32 %v3581_v54, %v3505_v59 }
 0x7b5   : > { %3635 = vst [vmem:[%s5826_s24 + $0x18] sm:$0xff] %v3582_v4  ;;  %v3323_v4 = vpop.permute.xlu1 %3322  ;;  %v3475_v19 = vpop.f32.mrf.mxu2 }
 0x7b8   : > { %v3522_v6 = vpop.f32.mrf.mxu3 }
 0x7b9   : > { %v3523_v63 = vadd.f32 %v3522_v6, %v3446_v47 }
 0x7ba   : > { %v3584_v49 = vpop.f32.mrf.mxu1 }
 0x7bb   : > { %v3585_v30 = vadd.f32 %v3584_v49, %v3508_v22 }
 0x7bd   : > { %3636 = vst [vmem:[%s5826_s24 + $0x20] sm:$0xff] %v3585_v30  ;;  %v3313_v30 = vpop.permute.xlu2 %3312  ;;  %v3338_v28 = vpop.permute.xlu1 %3337 }
 0x7be   : > { %v3461_v55 = vadd.f32 %v3460_v26, %v3313_v30  ;;  %v3476_v9 = vadd.f32 %v3475_v19, %v3338_v28  ;;  %v3467_v26 = vadd.f32 %v3466_v38, %v3323_v4 }
 0x7c0   : > { %v3525_v43 = vpop.f32.mrf.mxu3 }
 0x7c1   : > { %v3526_v36 = vadd.f32 %v3525_v43, %v3449_v24 }
 0x7c2   : > { %v3587_v18 = vpop.f32.mrf.mxu1 }
 0x7c3   : > { %v3588_v52 = vadd.f32 %v3587_v18, %v3511_v45  ;;  %v3629_v45 = vpop.f32.mrf.mxu2 }
 0x7c5   : > { %3637 = vst [vmem:[%s5826_s24 + $0x28] sm:$0xff] %v3588_v52 }
 0x7c8   : > { %v3528_v27 = vpop.f32.mrf.mxu3 }
 0x7c9   : > { %v3529_v37 = vadd.f32 %v3528_v27, %v3452_v34  ;;  %v3318_v27 = vpop.permute.xlu0 %3317 }
 0x7ca   : > { %v3590_v46 = vpop.f32.mrf.mxu1 }
 0x7cb   : > { %v3591_v13 = vadd.f32 %v3590_v46, %v3514_v51  ;;  %v3464_v51 = vadd.f32 %v3463_v33, %v3318_v27 }
 0x7cd   : > { %3638 = vst [vmem:[%s5826_s24 + $0x30] sm:$0xff] %v3591_v13 }
 0x7d0   : > { %v3531_v42 = vpop.f32.mrf.mxu3 }
 0x7d1   : > { %v3532_v31 = vadd.f32 %v3531_v42, %v3455_v61  ;;  %v3333_v33 = vpop.permute.xlu0 %3332 }
 0x7d2   : > { %v3593_v2 = vpop.f32.mrf.mxu1 }
 0x7d3   : > { %v3594_v56 = vadd.f32 %v3593_v2, %v3517_v29  ;;  %v3328_v2 = vpop.permute.xlu2 %3327 }
 0x7d5   : > { %3639 = vst [vmem:[%s5826_s24 + $0x38] sm:$0xff] %v3594_v56  ;;  %v3470_v56 = vadd.f32 %v3469_v16, %v3328_v2 }
 0x7d8   : > { %v3534_v10 = vpop.f32.mrf.mxu3 }
 0x7d9   : > { %v3535_v21 = vadd.f32 %v3534_v10, %v3458_v14 }
 0x7da   : > { %v3596_v12 = vpop.f32.mrf.mxu1 }
 0x7db   : > { %v3597_v41 = vadd.f32 %v3596_v12, %v3520_v25  ;;  %v3473_v25 = vadd.f32 %v3472_v35, %v3333_v33 }
 0x7dd   : > { %3640 = vst [vmem:[%s5826_s24 + $0x40] sm:$0xff] %v3597_v41 }
 0x7e0   : > { %v3537_v1 = vpop.f32.mrf.mxu3 }
 0x7e1   : > { %v3538_v18 = vadd.f32 %v3537_v1, %v3461_v55 }
 0x7e2   : > { %v3599_v20 = vpop.f32.mrf.mxu1 }
 0x7e3   : > { %v3600_v60 = vadd.f32 %v3599_v20, %v3523_v63 }
 0x7e5   : > { %3641 = vst [vmem:[%s5826_s24 + $0x48] sm:$0xff] %v3600_v60 }
 0x7e8   : > { %v3540_v48 = vpop.f32.mrf.mxu3 }
 0x7e9   : > { %v3541_v46 = vadd.f32 %v3540_v48, %v3464_v51 }
 0x7ea   : > { %v3602_v15 = vpop.f32.mrf.mxu1 }
 0x7eb   : > { %v3603_v50 = vadd.f32 %v3602_v15, %v3526_v36 }
 0x7ed   : > { %3642 = vst [vmem:[%s5826_s24 + $0x50] sm:$0xff] %v3603_v50 }
 0x7f0   : > { %v3543_v39 = vpop.f32.mrf.mxu3 }
 0x7f1   : > { %v3544_v62 = vadd.f32 %v3543_v39, %v3467_v26 }
 0x7f2   : > { %v3605_v17 = vpop.f32.mrf.mxu1 }
 0x7f3   : > { %v3606_v40 = vadd.f32 %v3605_v17, %v3529_v37 }
 0x7f5   : > { %3643 = vst [vmem:[%s5826_s24 + $0x58] sm:$0xff] %v3606_v40 }
 0x7f8   : > { %v3546_v3 = vpop.f32.mrf.mxu3 }
 0x7f9   : > { %v3547_v5 = vadd.f32 %v3546_v3, %v3470_v56 }
 0x7fa   : > { %v3608_v59 = vpop.f32.mrf.mxu1 }
 0x7fb   : > { %v3609_v54 = vadd.f32 %v3608_v59, %v3532_v31 }
 0x7fd   : > { %3644 = vst [vmem:[%s5826_s24 + $0x60] sm:$0xff] %v3609_v54 }
 0x800   : > { %v3549_v6 = vpop.f32.mrf.mxu3 }
 0x801   : > { %v3550_v12 = vadd.f32 %v3549_v6, %v3473_v25 }
 0x802   : > { %v3611_v22 = vpop.f32.mrf.mxu1 }
 0x803   : > { %v3612_v49 = vadd.f32 %v3611_v22, %v3535_v21 }
 0x805   : > { %3645 = vst [vmem:[%s5826_s24 + $0x68] sm:$0xff] %v3612_v49 }
 0x808   : > { %v3552_v43 = vpop.f32.mrf.mxu3 }
 0x809   : > { %v3553_v52 = vadd.f32 %v3552_v43, %v3476_v9 }
 0x80a   : > { %v3614_v8 = vpop.f32.mrf.mxu1 }
 0x80b   : > { %v3615_v58 = vadd.f32 %v3614_v8, %v3538_v18  ;;  %v3630_v23 = vadd.f32 %v3629_v45, %v3553_v52 }
 0x80d   : > { %3646 = vst [vmem:[%s5826_s24 + $0x70] sm:$0xff] %v3615_v58 }
 0x80e   : > { %3651 = vst [vmem:[%s5826_s24 + $0x98] sm:$0xff] %v3630_v23 }
 0x812   : > { %v3617_v13 = vpop.f32.mrf.mxu1 }
 0x813   : > { %v3618_v0 = vadd.f32 %v3617_v13, %v3541_v46 }
 0x815   : > { %3647 = vst [vmem:[%s5826_s24 + $0x78] sm:$0xff] %v3618_v0 }
 0x81a   : > { %v3620_v42 = vpop.f32.mrf.mxu1 }
 0x81b   : > { %v3621_v29 = vadd.f32 %v3620_v42, %v3544_v62 }
 0x81d   : > { %3648 = vst [vmem:[%s5826_s24 + $0x80] sm:$0xff] %v3621_v29 }
 0x822   : > { %v3623_v7 = vpop.f32.mrf.mxu1 }
 0x823   : > { %v3624_v10 = vadd.f32 %v3623_v7, %v3547_v5 }
 0x825   : > { %3649 = vst [vmem:[%s5826_s24 + $0x88] sm:$0xff] %v3624_v10 }
 0x82a   : > { %v3626_v41 = vpop.f32.mrf.mxu1 }
 0x82b   : > { %v3627_v44 = vadd.f32 %v3626_v41, %v3550_v12 }
 0x82d   : > { %3650 = vst [vmem:[%s5826_s24 + $0x90] sm:$0xff] %v3627_v44 }
 0x82e   : > { %4089 = shalt.err (!%p4086_p9)
}
 0x82f   : > { %s4158_s23 = smov 128   ;;  %s4159_s17 = smov 8  }
 0x830   : > { %3888 = dma.vmem_to_hbm [thread:$0]  (%p4270_p4), %s3667_s26, 2560, %s3669_s27, %s3653_s28, %s4158_s23, %s4158_s23, %s4159_s17  }
 0x831 PF: > { %s6074_s24 = sld [smem:[#allocation16_spill]] }
 0x832   : > { %s6075_s15 = sld [smem:[#allocation12_spill]] }
 0x837   : > { %p3910_p10 = scmp.ge.s32.totalorder %s6074_s24, 2 }
 0x838   : > { %s3683_s19 = sand.u32 1, %s6075_s15  }
 0x839   : > { %p3901_p11 = pnand %p3910_p10, %p4277_p8  ;;  %s3684_s13 = scalar_lea.sflag [#allocation4], %s3683_s19 }
 0x83b   : > { %p3902_p12 = pneg %p3901_p11 }
 0x83d   : > { %4123 = dma.done.wait (%p3902_p12), %s3684_s13, 2560  }
 0x83e   : > { %4125 = vsyncadd (%p3902_p12), %s3684_s13, 4294964736  ;;  %s28_s30 = sadd.s32 1, %s6074_s24   ;;  %s6077_s25 = sld [smem:[#allocation13_spill]] }
 0x83f   : > { %p25_p13 = scmp.ge.s32.totalorder %s28_s30, 4   ;;  %s6078_s26 = sld [smem:[#allocation14_spill]] }
 0x840   : > { %s6079_s27 = sld [smem:[#allocation20_spill]] }
 0x841   : > { %s6080_s28 = sld [smem:[#allocation15_spill]]  ;;  %27 = sbr.rel (!%p25_p13) target bundleno = 9 (0x9), region = 123 }
 0x842   : > { %s6081_s29 = sld [smem:[#allocation17_spill]] }
 0x846   :  { %3690 = vsyncpa [#allocation3], 1 }
 0x847   :  { %3692 = vsyncpa [#allocation3 + $0x1], 1 }
 0x848   :  { %3693 = vsyncpa [#allocation6], 1 }
 0x849   :  { %3694 = vsyncpa [#allocation4], 1 }
 0x84a   :  { %3696 = vsyncpa [#allocation4 + $0x1], 1 }

</bundles_post_ra>
